<compile_context>
chip_gen: v7x
topology: tpu7x:2x2x1
jax: 0.10.0
libtpu: 0.0.40
codegen_flags: <defaults>
</compile_context>

<pallas_src>
import functools
import math

import jax
import jax.numpy as jnp
from jax.experimental import pallas as pl
from jax.experimental.pallas import tpu as pltpu

LN_EPS = 1e-5          # PyTorch nn.LayerNorm default
MASK_BIAS = -1e30      # large finite negative additive mask (no -inf NaNs)
NEG_INF = float("-inf")

# MXU operand dtype. bfloat16 is MXU-native on v5e/v6e/v7x; accumulation and
# all softmax / LayerNorm / residual math stay in float32.  Set to jnp.float32
# to recover tight parity with the f32 PyTorch semantics (validation mode).
MATMUL_DTYPE = jnp.bfloat16


# ----------------------------------------------------------------------------
# Fused DecoderLayer kernel — one invocation processes the whole batch.
# ----------------------------------------------------------------------------
def _decoder_layer_kernel(
    # activations / masks
    dec_ref, enc_ref, smask_ref, dmask_ref,
    # self-attention parameters (fused QKV)
    s_wqkv_ref, s_bqkv_ref, s_wo_ref, s_bo_ref, s_g_ref, s_beta_ref,
    # encoder-decoder attention parameters (fused KV)
    e_wq_ref, e_bq_ref, e_wkv_ref, e_bkv_ref, e_wo_ref, e_bo_ref,
    e_g_ref, e_beta_ref,
    # position-wise FFN parameters
    f_w1_ref, f_b1_ref, f_w2_ref, f_b2_ref, f_g_ref, f_beta_ref,
    # outputs
    out_ref, slf_attn_ref, enc_attn_ref, hidden_ref, ctx_ref,
    # static dims (bound via functools.partial)
    *, B, Ld, Le, n_head, d_k, d_v,
):
    H = n_head
    Hdk = H * d_k
    Hdv = H * d_v

    def mm(x, w_ref):
        # bf16 (or f32) operands, f32 accumulation on the MXU.
        return jnp.dot(x.astype(MATMUL_DTYPE), w_ref[...],
                       preferred_element_type=jnp.float32)

    def layer_norm(x, g, beta):
        mu = jnp.mean(x, axis=-1, keepdims=True)
        var = jnp.mean((x - mu) ** 2, axis=-1, keepdims=True)
        return (x - mu) * jax.lax.rsqrt(var + LN_EPS) * g + beta

    def split_heads(x2d, L, d):
        # (B*L, H*d) -> (H*B, L, d), head-major (PyTorch permute(2,0,1,3)).
        return x2d.reshape(B * L, H, d).transpose(1, 0, 2).reshape(H * B, L, d)

    def merge_heads(c, Lq):
        # (H*B, Lq, d_v) -> (B*Lq, H*d_v)  (heads concatenated on features).
        return c.reshape(H, B * Lq, d_v).transpose(1, 0, 2).reshape(B * Lq, Hdv)

    def mask_bias(mask_ref, Lq, Lk):
        m = mask_ref[...].astype(jnp.float32)            # int8 -> f32
        bias = jnp.where(m > 0.0, MASK_BIAS, 0.0)        # (B, Lq, Lk)
        # Tile over heads, head-major (row n = h*B + b), like mask.repeat().
        return jnp.broadcast_to(
            bias[None], (H, B, Lq, Lk)).reshape(H * B, Lq, Lk)

    def attention(q2d, k2d, v2d, bias_hb, Lq, Lk, attn_ref, context_ref):
        qh = split_heads(q2d, Lq, d_k)
        kh = split_heads(k2d, Lk, d_k)
        vh = split_heads(v2d, Lk, d_v)
        # All-head scores in one batched contraction (batch axis = head*batch).
        s = jnp.einsum("nqd,nkd->nqk",
                       qh.astype(MATMUL_DTYPE), kh.astype(MATMUL_DTYPE),
                       preferred_element_type=jnp.float32)
        s = s + bias_hb
        m = jnp.max(s, axis=-1, keepdims=True)
        e = jnp.exp(s - m)
        a = e * pl.reciprocal(jnp.sum(e, axis=-1, keepdims=True), approx=True)
        attn_ref[...] = a                      # single contiguous store
        c = jnp.einsum("nqk,nkd->nqd",
                       a.astype(MATMUL_DTYPE), vh.astype(MATMUL_DTYPE),
                       preferred_element_type=jnp.float32)
        ctx = merge_heads(c, Lq)
        context_ref[...] = ctx
        return ctx

    x0 = dec_ref[...].astype(jnp.float32)      # (B*Ld, Dm), stays resident
    enc = enc_ref[...].astype(jnp.float32)     # (B*Le, Dm)

    # ---- 1) masked self-attention ---------------------------------------
    sbias = mask_bias(smask_ref, Ld, Ld)
    qkv = mm(x0, s_wqkv_ref) + s_bqkv_ref[...]          # fused Q|K|V projection
    q = qkv[:, :Hdk]
    k = qkv[:, Hdk:2 * Hdk]
    v = qkv[:, 2 * Hdk:2 * Hdk + Hdv]
    ctx = attention(q, k, v, sbias, Ld, Ld, slf_attn_ref, hidden_ref)
    o = mm(ctx, s_wo_ref) + s_bo_ref[...]
    x1 = layer_norm(o + x0, s_g_ref[...], s_beta_ref[...])

    # ---- 2) encoder-decoder attention ------------------------------------
    dbias = mask_bias(dmask_ref, Ld, Le)
    q = mm(x1, e_wq_ref) + e_bq_ref[...]
    kv = mm(enc, e_wkv_ref) + e_bkv_ref[...]             # fused K|V projection
    k = kv[:, :Hdk]
    v = kv[:, Hdk:Hdk + Hdv]
    ctx = attention(q, k, v, dbias, Ld, Le, enc_attn_ref, ctx_ref)
    o = mm(ctx, e_wo_ref) + e_bo_ref[...]
    x2 = layer_norm(o + x1, e_g_ref[...], e_beta_ref[...])

    # ---- 3) position-wise FFN (Conv1d k=1 == linear) + residual + LN ------
    h = jnp.maximum(mm(x2, f_w1_ref) + f_b1_ref[...], 0.0)
    o = mm(h, f_w2_ref) + f_b2_ref[...]
    out_ref[...] = layer_norm(o + x2, f_g_ref[...], f_beta_ref[...])


# ----------------------------------------------------------------------------
# Wrapper: one fused pallas_call per DecoderLayer forward.
# ----------------------------------------------------------------------------
def decoder_layer(dec_input, enc_output, slf_attn_mask, dec_enc_attn_mask,
                  params, n_head):
    B, Ld, Dm = dec_input.shape
    Le = enc_output.shape[1]
    Hdk = params["slf"]["wq"].shape[1]
    Hdv = params["slf"]["wv"].shape[1]
    d_k = Hdk // n_head
    d_v = Hdv // n_head
    inv = 1.0 / math.sqrt(d_k)

    slf, enc, ffn = params["slf"], params["enc"], params["ffn"]

    # 1/sqrt(d_k) folded into W_q/b_q; Q|K|V (resp. K|V) fused at trace time;
    # matmul weights shipped as bf16, biases / LN params stay f32.
    s_wqkv = jnp.concatenate([slf["wq"] * inv, slf["wk"], slf["wv"]],
                             axis=1).astype(MATMUL_DTYPE)
    s_bqkv = jnp.concatenate([slf["bq"] * inv, slf["bk"], slf["bv"]], axis=1)
    e_wq = (enc["wq"] * inv).astype(MATMUL_DTYPE)
    e_bq = enc["bq"] * inv
    e_wkv = jnp.concatenate([enc["wk"], enc["wv"]], axis=1).astype(MATMUL_DTYPE)
    e_bkv = jnp.concatenate([enc["bk"], enc["bv"]], axis=1)

    weights = (
        s_wqkv, s_bqkv, slf["wfc"].astype(MATMUL_DTYPE), slf["bfc"],
        slf["ln_g"], slf["ln_b"],
        e_wq, e_bq, e_wkv, e_bkv, enc["wfc"].astype(MATMUL_DTYPE), enc["bfc"],
        enc["ln_g"], enc["ln_b"],
        ffn["w1"].astype(MATMUL_DTYPE), ffn["b1"],
        ffn["w2"].astype(MATMUL_DTYPE), ffn["b2"], ffn["ln_g"], ffn["ln_b"],
    )

    # Whole batch in a single kernel invocation: no grid, every operand is one
    # full VMEM-resident block, B folded into the matmul M dimension.
    dec2 = dec_input.reshape(B * Ld, Dm).astype(jnp.float32)
    enc2 = enc_output.reshape(B * Le, Dm).astype(jnp.float32)
    smask8 = (slf_attn_mask > 0).astype(jnp.int8)
    dmask8 = (dec_enc_attn_mask > 0).astype(jnp.int8)

    kernel = functools.partial(
        _decoder_layer_kernel,
        B=B, Ld=Ld, Le=Le, n_head=n_head, d_k=d_k, d_v=d_v)

    out2, slf_attn, enc_attn, hidden2, ctx2 = pl.pallas_call(
        kernel,
        out_shape=(
            jax.ShapeDtypeStruct((B * Ld, Dm), jnp.float32),
            jax.ShapeDtypeStruct((n_head * B, Ld, Ld), jnp.float32),
            jax.ShapeDtypeStruct((n_head * B, Ld, Le), jnp.float32),
            jax.ShapeDtypeStruct((B * Ld, Hdv), jnp.float32),
            jax.ShapeDtypeStruct((B * Ld, Hdv), jnp.float32),
        ),
    )(dec2, enc2, smask8, dmask8, *weights)

    # Attention probs already come out in the PyTorch (n_head*B, Lq, Lk) layout.
    return (out2.reshape(B, Ld, Dm), slf_attn, enc_attn,
            hidden2.reshape(B, Ld, Hdv), ctx2.reshape(B, Ld, Hdv))


# ----------------------------------------------------------------------------
# Deterministic parameter init (shapes from the module's __init__).
# ----------------------------------------------------------------------------
def init_mha_params(key, d_model, n_head, d_k, d_v):
    ks = jax.random.split(key, 8)
    s = 0.1
    return dict(
        wq=jax.random.normal(ks[0], (d_model, n_head * d_k), jnp.float32) * s,
        bq=jax.random.normal(ks[1], (1, n_head * d_k), jnp.float32) * s,
        wk=jax.random.normal(ks[2], (d_model, n_head * d_k), jnp.float32) * s,
        bk=jax.random.normal(ks[3], (1, n_head * d_k), jnp.float32) * s,
        wv=jax.random.normal(ks[4], (d_model, n_head * d_v), jnp.float32) * s,
        bv=jax.random.normal(ks[5], (1, n_head * d_v), jnp.float32) * s,
        wfc=jax.random.normal(ks[6], (n_head * d_v, d_model), jnp.float32) * s,
        bfc=jax.random.normal(ks[7], (1, d_model), jnp.float32) * s,
        ln_g=jnp.ones((1, d_model), jnp.float32),
        ln_b=jnp.zeros((1, d_model), jnp.float32),
    )


def init_ffn_params(key, d_model, d_inner):
    ks = jax.random.split(key, 4)
    s = 0.1
    return dict(
        w1=jax.random.normal(ks[0], (d_model, d_inner), jnp.float32) * s,
        b1=jax.random.normal(ks[1], (1, d_inner), jnp.float32) * s,
        w2=jax.random.normal(ks[2], (d_inner, d_model), jnp.float32) * s,
        b2=jax.random.normal(ks[3], (1, d_model), jnp.float32) * s,
        ln_g=jnp.ones((1, d_model), jnp.float32),
        ln_b=jnp.zeros((1, d_model), jnp.float32),
    )


# ----------------------------------------------------------------------------
# Pure-JAX f32 reference (mirrors the PyTorch forward) for a correctness check.
# ----------------------------------------------------------------------------
def _mha_ref(x_q, x_kv, mask, p, n_head):
    B, Lq, _ = x_q.shape
    Lk = x_kv.shape[1]
    d_k = p["wq"].shape[1] // n_head
    d_v = p["wv"].shape[1] // n_head
    q = (x_q @ p["wq"] + p["bq"]).reshape(B, Lq, n_head, d_k)
    k = (x_kv @ p["wk"] + p["bk"]).reshape(B, Lk, n_head, d_k)
    v = (x_kv @ p["wv"] + p["bv"]).reshape(B, Lk, n_head, d_v)
    q = jnp.transpose(q, (2, 0, 1, 3)).reshape(-1, Lq, d_k)
    k = jnp.transpose(k, (2, 0, 1, 3)).reshape(-1, Lk, d_k)
    v = jnp.transpose(v, (2, 0, 1, 3)).reshape(-1, Lk, d_v)
    m = jnp.tile(mask, (n_head, 1, 1))
    s = jnp.einsum("nqd,nkd->nqk", q, k) / math.sqrt(d_k)
    s = jnp.where(m > 0, NEG_INF, s)
    a = jax.nn.softmax(s, axis=-1)
    o = jnp.einsum("nqk,nkd->nqd", a, v)
    ctx = jnp.transpose(o.reshape(n_head, B, Lq, d_v),
                        (1, 2, 0, 3)).reshape(B, Lq, n_head * d_v)
    out = ctx @ p["wfc"] + p["bfc"] + x_q
    mean = out.mean(-1, keepdims=True)
    var = ((out - mean) ** 2).mean(-1, keepdims=True)
    out = (out - mean) / jnp.sqrt(var + LN_EPS) * p["ln_g"] + p["ln_b"]
    return out, a, ctx


def _ffn_ref(x, p):
    h = jnp.maximum(x @ p["w1"] + p["b1"], 0.0)
    o = h @ p["w2"] + p["b2"] + x
    mean = o.mean(-1, keepdims=True)
    var = ((o - mean) ** 2).mean(-1, keepdims=True)
    return (o - mean) / jnp.sqrt(var + LN_EPS) * p["ln_g"] + p["ln_b"]


def decoder_layer_ref(dec_input, enc_output, slf_mask, de_mask, params, n_head):
    d1, slf_attn, hidden = _mha_ref(dec_input, dec_input, slf_mask,
                                    params["slf"], n_head)
    d2, enc_attn, contexts = _mha_ref(d1, enc_output, de_mask,
                                      params["enc"], n_head)
    d3 = _ffn_ref(d2, params["ffn"])
    return d3, slf_attn, enc_attn, hidden, contexts


# ----------------------------------------------------------------------------
if __name__ == "__main__":
    key = jax.random.PRNGKey(0)
    B, len_dec, len_enc = 2, 8, 16
    d_model, d_inner, n_head, d_k, d_v = 32, 64, 4, 8, 8

    k_in, k_enc, k_slf, k_ea, k_ffn = jax.random.split(key, 5)
    dec_input = jax.random.normal(k_in, (B, len_dec, d_model), jnp.float32)
    enc_output = jax.random.normal(k_enc, (B, len_enc, d_model), jnp.float32)

    # Self-attention mask: causal ("subsequent" positions masked, 1 = masked).
    slf_attn_mask = jnp.broadcast_to(
        jnp.triu(jnp.ones((len_dec, len_dec), jnp.float32), k=1),
        (B, len_dec, len_dec))
    # Dec-enc attention mask: pad out last 3 encoder positions of batch elem 1.
    dec_enc_attn_mask = jnp.zeros((B, len_dec, len_enc), jnp.float32)
    dec_enc_attn_mask = dec_enc_attn_mask.at[1, :, len_enc - 3:].set(1.0)

    params = dict(
        slf=init_mha_params(k_slf, d_model, n_head, d_k, d_v),
        enc=init_mha_params(k_ea, d_model, n_head, d_k, d_v),
        ffn=init_ffn_params(k_ffn, d_model, d_inner),
    )

    outs = decoder_layer(dec_input, enc_output, slf_attn_mask,
                         dec_enc_attn_mask, params, n_head)
    outs = jax.block_until_ready(outs)

    refs = decoder_layer_ref(dec_input, enc_output, slf_attn_mask,
                             dec_enc_attn_mask, params, n_head)

    # bf16 MXU operands vs. the f32 reference -> loosened tolerance; with
    # MATMUL_DTYPE = float32 the kernel matches at 1e-4.
    if MATMUL_DTYPE == jnp.float32:
        atol = rtol = 1e-4
    else:
        atol = rtol = 3e-2

    names = ["dec_output", "dec_slf_attn", "dec_enc_attn",
             "dec_hidden_states", "enc_dec_contexts"]
    for name, got, ref in zip(names, outs, refs):
        assert got.shape == ref.shape, (name, got.shape, ref.shape)
        assert jnp.allclose(got, ref, atol=atol, rtol=rtol), \
            f"mismatch in {name}"

    print("KERNEL_OK")
</pallas_src>

<mosaic_0001>
module attributes {stable_mosaic.version = 11 : i64} {
  func.func @_decoder_layer_kernel(%arg0: memref<16x32xf32, #tpu.memory_space<vmem>>, %arg1: memref<32x32xf32, #tpu.memory_space<vmem>>, %arg2: memref<2x8x8xi8, #tpu.memory_space<vmem>>, %arg3: memref<2x8x16xi8, #tpu.memory_space<vmem>>, %arg4: memref<32x96xbf16, #tpu.memory_space<vmem>>, %arg5: memref<1x96xf32, #tpu.memory_space<vmem>>, %arg6: memref<32x32xbf16, #tpu.memory_space<vmem>>, %arg7: memref<1x32xf32, #tpu.memory_space<vmem>>, %arg8: memref<1x32xf32, #tpu.memory_space<vmem>>, %arg9: memref<1x32xf32, #tpu.memory_space<vmem>>, %arg10: memref<32x32xbf16, #tpu.memory_space<vmem>>, %arg11: memref<1x32xf32, #tpu.memory_space<vmem>>, %arg12: memref<32x64xbf16, #tpu.memory_space<vmem>>, %arg13: memref<1x64xf32, #tpu.memory_space<vmem>>, %arg14: memref<32x32xbf16, #tpu.memory_space<vmem>>, %arg15: memref<1x32xf32, #tpu.memory_space<vmem>>, %arg16: memref<1x32xf32, #tpu.memory_space<vmem>>, %arg17: memref<1x32xf32, #tpu.memory_space<vmem>>, %arg18: memref<32x64xbf16, #tpu.memory_space<vmem>>, %arg19: memref<1x64xf32, #tpu.memory_space<vmem>>, %arg20: memref<64x32xbf16, #tpu.memory_space<vmem>>, %arg21: memref<1x32xf32, #tpu.memory_space<vmem>>, %arg22: memref<1x32xf32, #tpu.memory_space<vmem>>, %arg23: memref<1x32xf32, #tpu.memory_space<vmem>>, %arg24: memref<16x32xf32, #tpu.memory_space<vmem>>, %arg25: memref<8x8x8xf32, #tpu.memory_space<vmem>>, %arg26: memref<8x8x16xf32, #tpu.memory_space<vmem>>, %arg27: memref<16x32xf32, #tpu.memory_space<vmem>>, %arg28: memref<16x32xf32, #tpu.memory_space<vmem>>) attributes {dimension_semantics = [], scalar_prefetch = 0 : i64, scratch_operands = 0 : i64, tpu.core_type = #tpu.core_type<tc>} {
    %c0 = arith.constant 0 : index
    %c0_0 = arith.constant 0 : index
    %0 = vector.load %arg0[%c0, %c0_0] : memref<16x32xf32, #tpu.memory_space<vmem>>, vector<16x32xf32>
    %c0_1 = arith.constant 0 : index
    %c0_2 = arith.constant 0 : index
    %1 = vector.load %arg1[%c0_1, %c0_2] : memref<32x32xf32, #tpu.memory_space<vmem>>, vector<32x32xf32>
    %c0_3 = arith.constant 0 : index
    %c0_4 = arith.constant 0 : index
    %c0_5 = arith.constant 0 : index
    %2 = vector.load %arg2[%c0_3, %c0_4, %c0_5] : memref<2x8x8xi8, #tpu.memory_space<vmem>>, vector<2x8x8xi8>
    %3 = arith.sitofp %2 : vector<2x8x8xi8> to vector<2x8x8xf32>
    %cst = arith.constant 0.000000e+00 : f32
    %4 = vector.broadcast %cst : f32 to vector<2x8x8xf32>
    %5 = arith.cmpf ogt, %3, %4 : vector<2x8x8xf32>
    %cst_6 = arith.constant -1.000000e+30 : f32
    %cst_7 = arith.constant 0.000000e+00 : f32
    %6 = vector.broadcast %cst_6 : f32 to vector<2x8x8xf32>
    %7 = vector.broadcast %cst_7 : f32 to vector<2x8x8xf32>
    %8 = arith.select %5, %6, %7 : vector<2x8x8xi1>, vector<2x8x8xf32>
    %9 = vector.shape_cast %8 : vector<2x8x8xf32> to vector<1x2x8x8xf32>
    %10 = vector.shape_cast %9 : vector<1x2x8x8xf32> to vector<1x2x8x8xf32>
    %11 = vector.broadcast %10 : vector<1x2x8x8xf32> to vector<4x2x8x8xf32>
    %12 = vector.shape_cast %11 : vector<4x2x8x8xf32> to vector<8x8x8xf32>
    %13 = arith.truncf %0 : vector<16x32xf32> to vector<16x32xbf16>
    %c0_8 = arith.constant 0 : index
    %c0_9 = arith.constant 0 : index
    %14 = vector.load %arg4[%c0_8, %c0_9] : memref<32x96xbf16, #tpu.memory_space<vmem>>, vector<32x96xbf16>
    %cst_10 = arith.constant dense<0.000000e+00> : vector<16x96xf32>
    %15 = tpu.matmul %13, %14, %cst_10 {dimension_numbers = #tpu.dot_dimension_numbers<[1], [0], [0], [1], [0, 0, 1, 1], [], []>} : vector<16x32xbf16>, vector<32x96xbf16>, vector<16x96xf32> -> vector<16x96xf32>
    %c0_11 = arith.constant 0 : index
    %c0_12 = arith.constant 0 : index
    %16 = vector.load %arg5[%c0_11, %c0_12] : memref<1x96xf32, #tpu.memory_space<vmem>>, vector<1x96xf32>
    %17 = vector.broadcast %16 : vector<1x96xf32> to vector<16x96xf32>
    %18 = arith.addf %15, %17 : vector<16x96xf32>
    %19 = vector.extract_strided_slice %18 {offsets = [0, 0], sizes = [16, 32], strides = [1, 1]} : vector<16x96xf32> to vector<16x32xf32>
    %20 = vector.extract_strided_slice %18 {offsets = [0, 32], sizes = [16, 32], strides = [1, 1]} : vector<16x96xf32> to vector<16x32xf32>
    %21 = vector.extract_strided_slice %18 {offsets = [0, 64], sizes = [16, 32], strides = [1, 1]} : vector<16x96xf32> to vector<16x32xf32>
    %22 = vector.shape_cast %19 : vector<16x32xf32> to vector<16x4x8xf32>
    %23 = tpu.transpose %22, [1, 0, 2] : vector<16x4x8xf32> -> vector<4x16x8xf32>
    %24 = vector.shape_cast %23 : vector<4x16x8xf32> to vector<8x8x8xf32>
    %25 = vector.shape_cast %20 : vector<16x32xf32> to vector<16x4x8xf32>
    %26 = tpu.transpose %25, [1, 0, 2] : vector<16x4x8xf32> -> vector<4x16x8xf32>
    %27 = vector.shape_cast %26 : vector<4x16x8xf32> to vector<8x8x8xf32>
    %28 = vector.shape_cast %21 : vector<16x32xf32> to vector<16x4x8xf32>
    %29 = tpu.transpose %28, [1, 0, 2] : vector<16x4x8xf32> -> vector<4x16x8xf32>
    %30 = vector.shape_cast %29 : vector<4x16x8xf32> to vector<8x8x8xf32>
    %31 = arith.truncf %24 : vector<8x8x8xf32> to vector<8x8x8xbf16>
    %32 = arith.truncf %27 : vector<8x8x8xf32> to vector<8x8x8xbf16>
    "tpu.trace_start"() <{level = 10 : i32, message = "nqd,nkd->nqk"}> : () -> ()
    %cst_13 = arith.constant dense<0.000000e+00> : vector<8x8x8xf32>
    %33 = tpu.matmul %31, %32, %cst_13 {dimension_numbers = #tpu.dot_dimension_numbers<[2], [2], [1], [1], [0, 0, 0, 1, 1, 1], [0], [0]>} : vector<8x8x8xbf16>, vector<8x8x8xbf16>, vector<8x8x8xf32> -> vector<8x8x8xf32>
    "tpu.trace_stop"() : () -> ()
    %34 = arith.addf %33, %12 : vector<8x8x8xf32>
    %cst_14 = arith.constant dense<0xFF800000> : vector<8x8xf32>
    %35 = vector.multi_reduction <maximumf>, %34, %cst_14 [2] : vector<8x8x8xf32> to vector<8x8xf32>
    %36 = vector.shape_cast %35 : vector<8x8xf32> to vector<8x8x1xf32>
    %37 = vector.broadcast %36 : vector<8x8x1xf32> to vector<8x8x8xf32>
    %38 = arith.subf %34, %37 : vector<8x8x8xf32>
    %39 = math.exp %38 : vector<8x8x8xf32>
    %cst_15 = arith.constant dense<0.000000e+00> : vector<8x8xf32>
    %40 = vector.multi_reduction <add>, %39, %cst_15 [2] : vector<8x8x8xf32> to vector<8x8xf32>
    %41 = vector.shape_cast %40 : vector<8x8xf32> to vector<8x8x1xf32>
    %42 = tpu.reciprocal %41 {approx = true} : vector<8x8x1xf32> -> vector<8x8x1xf32>
    %43 = vector.broadcast %42 : vector<8x8x1xf32> to vector<8x8x8xf32>
    %44 = arith.mulf %39, %43 : vector<8x8x8xf32>
    %c0_16 = arith.constant 0 : index
    %c0_17 = arith.constant 0 : index
    %c0_18 = arith.constant 0 : index
    %45 = vector.load %arg25[%c0_16, %c0_17, %c0_18] : memref<8x8x8xf32, #tpu.memory_space<vmem>>, vector<8x8x8xf32>
    tpu.vector_store %arg25[%c0_16, %c0_17, %c0_18], %44 {strides = array<i32>} : memref<8x8x8xf32, #tpu.memory_space<vmem>>, vector<8x8x8xf32>,
    %46 = arith.truncf %44 : vector<8x8x8xf32> to vector<8x8x8xbf16>
    %47 = arith.truncf %30 : vector<8x8x8xf32> to vector<8x8x8xbf16>
    "tpu.trace_start"() <{level = 10 : i32, message = "nqk,nkd->nqd"}> : () -> ()
    %cst_19 = arith.constant dense<0.000000e+00> : vector<8x8x8xf32>
    %48 = tpu.matmul %46, %47, %cst_19 {dimension_numbers = #tpu.dot_dimension_numbers<[2], [1], [1], [2], [0, 0, 0, 1, 1, 2], [0], [0]>} : vector<8x8x8xbf16>, vector<8x8x8xbf16>, vector<8x8x8xf32> -> vector<8x8x8xf32>
    "tpu.trace_stop"() : () -> ()
    %49 = vector.shape_cast %48 : vector<8x8x8xf32> to vector<4x16x8xf32>
    %50 = tpu.transpose %49, [1, 0, 2] : vector<4x16x8xf32> -> vector<16x4x8xf32>
    %51 = vector.shape_cast %50 : vector<16x4x8xf32> to vector<16x32xf32>
    %c0_20 = arith.constant 0 : index
    %c0_21 = arith.constant 0 : index
    %52 = vector.load %arg27[%c0_20, %c0_21] : memref<16x32xf32, #tpu.memory_space<vmem>>, vector<16x32xf32>
    tpu.vector_store %arg27[%c0_20, %c0_21], %51 {strides = array<i32>} : memref<16x32xf32, #tpu.memory_space<vmem>>, vector<16x32xf32>,
    %53 = arith.truncf %51 : vector<16x32xf32> to vector<16x32xbf16>
    %c0_22 = arith.constant 0 : index
    %c0_23 = arith.constant 0 : index
    %54 = vector.load %arg6[%c0_22, %c0_23] : memref<32x32xbf16, #tpu.memory_space<vmem>>, vector<32x32xbf16>
    %cst_24 = arith.constant dense<0.000000e+00> : vector<16x32xf32>
    %55 = tpu.matmul %53, %54, %cst_24 {dimension_numbers = #tpu.dot_dimension_numbers<[1], [0], [0], [1], [0, 0, 1, 1], [], []>} : vector<16x32xbf16>, vector<32x32xbf16>, vector<16x32xf32> -> vector<16x32xf32>
    %c0_25 = arith.constant 0 : index
    %c0_26 = arith.constant 0 : index
    %56 = vector.load %arg7[%c0_25, %c0_26] : memref<1x32xf32, #tpu.memory_space<vmem>>, vector<1x32xf32>
    %57 = vector.broadcast %56 : vector<1x32xf32> to vector<16x32xf32>
    %58 = arith.addf %55, %57 : vector<16x32xf32>
    %59 = arith.addf %58, %0 : vector<16x32xf32>
    %c0_27 = arith.constant 0 : index
    %c0_28 = arith.constant 0 : index
    %60 = vector.load %arg8[%c0_27, %c0_28] : memref<1x32xf32, #tpu.memory_space<vmem>>, vector<1x32xf32>
    %c0_29 = arith.constant 0 : index
    %c0_30 = arith.constant 0 : index
    %61 = vector.load %arg9[%c0_29, %c0_30] : memref<1x32xf32, #tpu.memory_space<vmem>>, vector<1x32xf32>
    %cst_31 = arith.constant dense<0.000000e+00> : vector<16xf32>
    %62 = vector.multi_reduction <add>, %59, %cst_31 [1] : vector<16x32xf32> to vector<16xf32>
    %63 = vector.shape_cast %62 : vector<16xf32> to vector<16x1xf32>
    %cst_32 = arith.constant 3.200000e+01 : f32
    %64 = vector.broadcast %cst_32 : f32 to vector<16x1xf32>
    %65 = arith.divf %63, %64 : vector<16x1xf32>
    %66 = vector.broadcast %65 : vector<16x1xf32> to vector<16x32xf32>
    %67 = arith.subf %59, %66 : vector<16x32xf32>
    %68 = arith.mulf %67, %67 : vector<16x32xf32>
    %cst_33 = arith.constant dense<0.000000e+00> : vector<16xf32>
    %69 = vector.multi_reduction <add>, %68, %cst_33 [1] : vector<16x32xf32> to vector<16xf32>
    %70 = vector.shape_cast %69 : vector<16xf32> to vector<16x1xf32>
    %cst_34 = arith.constant 3.200000e+01 : f32
    %71 = vector.broadcast %cst_34 : f32 to vector<16x1xf32>
    %72 = arith.divf %70, %71 : vector<16x1xf32>
    %73 = vector.broadcast %65 : vector<16x1xf32> to vector<16x32xf32>
    %74 = arith.subf %59, %73 : vector<16x32xf32>
    %cst_35 = arith.constant 9.99999974E-6 : f32
    %75 = vector.broadcast %cst_35 : f32 to vector<16x1xf32>
    %76 = arith.addf %72, %75 : vector<16x1xf32>
    %77 = math.rsqrt %76 : vector<16x1xf32>
    %78 = vector.broadcast %77 : vector<16x1xf32> to vector<16x32xf32>
    %79 = arith.mulf %74, %78 : vector<16x32xf32>
    %80 = vector.broadcast %60 : vector<1x32xf32> to vector<16x32xf32>
    %81 = arith.mulf %79, %80 : vector<16x32xf32>
    %82 = vector.broadcast %61 : vector<1x32xf32> to vector<16x32xf32>
    %83 = arith.addf %81, %82 : vector<16x32xf32>
    %c0_36 = arith.constant 0 : index
    %c0_37 = arith.constant 0 : index
    %c0_38 = arith.constant 0 : index
    %84 = vector.load %arg3[%c0_36, %c0_37, %c0_38] : memref<2x8x16xi8, #tpu.memory_space<vmem>>, vector<2x8x16xi8>
    %85 = arith.sitofp %84 : vector<2x8x16xi8> to vector<2x8x16xf32>
    %cst_39 = arith.constant 0.000000e+00 : f32
    %86 = vector.broadcast %cst_39 : f32 to vector<2x8x16xf32>
    %87 = arith.cmpf ogt, %85, %86 : vector<2x8x16xf32>
    %cst_40 = arith.constant -1.000000e+30 : f32
    %cst_41 = arith.constant 0.000000e+00 : f32
    %88 = vector.broadcast %cst_40 : f32 to vector<2x8x16xf32>
    %89 = vector.broadcast %cst_41 : f32 to vector<2x8x16xf32>
    %90 = arith.select %87, %88, %89 : vector<2x8x16xi1>, vector<2x8x16xf32>
    %91 = vector.shape_cast %90 : vector<2x8x16xf32> to vector<1x2x8x16xf32>
    %92 = vector.shape_cast %91 : vector<1x2x8x16xf32> to vector<1x2x8x16xf32>
    %93 = vector.broadcast %92 : vector<1x2x8x16xf32> to vector<4x2x8x16xf32>
    %94 = vector.shape_cast %93 : vector<4x2x8x16xf32> to vector<8x8x16xf32>
    %95 = arith.truncf %83 : vector<16x32xf32> to vector<16x32xbf16>
    %c0_42 = arith.constant 0 : index
    %c0_43 = arith.constant 0 : index
    %96 = vector.load %arg10[%c0_42, %c0_43] : memref<32x32xbf16, #tpu.memory_space<vmem>>, vector<32x32xbf16>
    %cst_44 = arith.constant dense<0.000000e+00> : vector<16x32xf32>
    %97 = tpu.matmul %95, %96, %cst_44 {dimension_numbers = #tpu.dot_dimension_numbers<[1], [0], [0], [1], [0, 0, 1, 1], [], []>} : vector<16x32xbf16>, vector<32x32xbf16>, vector<16x32xf32> -> vector<16x32xf32>
    %c0_45 = arith.constant 0 : index
    %c0_46 = arith.constant 0 : index
    %98 = vector.load %arg11[%c0_45, %c0_46] : memref<1x32xf32, #tpu.memory_space<vmem>>, vector<1x32xf32>
    %99 = vector.broadcast %98 : vector<1x32xf32> to vector<16x32xf32>
    %100 = arith.addf %97, %99 : vector<16x32xf32>
    %101 = arith.truncf %1 : vector<32x32xf32> to vector<32x32xbf16>
    %c0_47 = arith.constant 0 : index
    %c0_48 = arith.constant 0 : index
    %102 = vector.load %arg12[%c0_47, %c0_48] : memref<32x64xbf16, #tpu.memory_space<vmem>>, vector<32x64xbf16>
    %cst_49 = arith.constant dense<0.000000e+00> : vector<32x64xf32>
    %103 = tpu.matmul %101, %102, %cst_49 {dimension_numbers = #tpu.dot_dimension_numbers<[1], [0], [0], [1], [0, 0, 1, 1], [], []>} : vector<32x32xbf16>, vector<32x64xbf16>, vector<32x64xf32> -> vector<32x64xf32>
    %c0_50 = arith.constant 0 : index
    %c0_51 = arith.constant 0 : index
    %104 = vector.load %arg13[%c0_50, %c0_51] : memref<1x64xf32, #tpu.memory_space<vmem>>, vector<1x64xf32>
    %105 = vector.broadcast %104 : vector<1x64xf32> to vector<32x64xf32>
    %106 = arith.addf %103, %105 : vector<32x64xf32>
    %107 = vector.extract_strided_slice %106 {offsets = [0, 0], sizes = [32, 32], strides = [1, 1]} : vector<32x64xf32> to vector<32x32xf32>
    %108 = vector.extract_strided_slice %106 {offsets = [0, 32], sizes = [32, 32], strides = [1, 1]} : vector<32x64xf32> to vector<32x32xf32>
    %109 = vector.shape_cast %100 : vector<16x32xf32> to vector<16x4x8xf32>
    %110 = tpu.transpose %109, [1, 0, 2] : vector<16x4x8xf32> -> vector<4x16x8xf32>
    %111 = vector.shape_cast %110 : vector<4x16x8xf32> to vector<8x8x8xf32>
    %112 = vector.shape_cast %107 : vector<32x32xf32> to vector<32x4x8xf32>
    %113 = tpu.transpose %112, [1, 0, 2] : vector<32x4x8xf32> -> vector<4x32x8xf32>
    %114 = vector.shape_cast %113 : vector<4x32x8xf32> to vector<8x16x8xf32>
    %115 = vector.shape_cast %108 : vector<32x32xf32> to vector<32x4x8xf32>
    %116 = tpu.transpose %115, [1, 0, 2] : vector<32x4x8xf32> -> vector<4x32x8xf32>
    %117 = vector.shape_cast %116 : vector<4x32x8xf32> to vector<8x16x8xf32>
    %118 = arith.truncf %111 : vector<8x8x8xf32> to vector<8x8x8xbf16>
    %119 = arith.truncf %114 : vector<8x16x8xf32> to vector<8x16x8xbf16>
    "tpu.trace_start"() <{level = 10 : i32, message = "nqd,nkd->nqk"}> : () -> ()
    %cst_52 = arith.constant dense<0.000000e+00> : vector<8x8x16xf32>
    %120 = tpu.matmul %118, %119, %cst_52 {dimension_numbers = #tpu.dot_dimension_numbers<[2], [2], [1], [1], [0, 0, 0, 1, 1, 1], [0], [0]>} : vector<8x8x8xbf16>, vector<8x16x8xbf16>, vector<8x8x16xf32> -> vector<8x8x16xf32>
    "tpu.trace_stop"() : () -> ()
    %121 = arith.addf %120, %94 : vector<8x8x16xf32>
    %cst_53 = arith.constant dense<0xFF800000> : vector<8x8xf32>
    %122 = vector.multi_reduction <maximumf>, %121, %cst_53 [2] : vector<8x8x16xf32> to vector<8x8xf32>
    %123 = vector.shape_cast %122 : vector<8x8xf32> to vector<8x8x1xf32>
    %124 = vector.broadcast %123 : vector<8x8x1xf32> to vector<8x8x16xf32>
    %125 = arith.subf %121, %124 : vector<8x8x16xf32>
    %126 = math.exp %125 : vector<8x8x16xf32>
    %cst_54 = arith.constant dense<0.000000e+00> : vector<8x8xf32>
    %127 = vector.multi_reduction <add>, %126, %cst_54 [2] : vector<8x8x16xf32> to vector<8x8xf32>
    %128 = vector.shape_cast %127 : vector<8x8xf32> to vector<8x8x1xf32>
    %129 = tpu.reciprocal %128 {approx = true} : vector<8x8x1xf32> -> vector<8x8x1xf32>
    %130 = vector.broadcast %129 : vector<8x8x1xf32> to vector<8x8x16xf32>
    %131 = arith.mulf %126, %130 : vector<8x8x16xf32>
    %c0_55 = arith.constant 0 : index
    %c0_56 = arith.constant 0 : index
    %c0_57 = arith.constant 0 : index
    %132 = vector.load %arg26[%c0_55, %c0_56, %c0_57] : memref<8x8x16xf32, #tpu.memory_space<vmem>>, vector<8x8x16xf32>
    tpu.vector_store %arg26[%c0_55, %c0_56, %c0_57], %131 {strides = array<i32>} : memref<8x8x16xf32, #tpu.memory_space<vmem>>, vector<8x8x16xf32>,
    %133 = arith.truncf %131 : vector<8x8x16xf32> to vector<8x8x16xbf16>
    %134 = arith.truncf %117 : vector<8x16x8xf32> to vector<8x16x8xbf16>
    "tpu.trace_start"() <{level = 10 : i32, message = "nqk,nkd->nqd"}> : () -> ()
    %cst_58 = arith.constant dense<0.000000e+00> : vector<8x8x8xf32>
    %135 = tpu.matmul %133, %134, %cst_58 {dimension_numbers = #tpu.dot_dimension_numbers<[2], [1], [1], [2], [0, 0, 0, 1, 1, 2], [0], [0]>} : vector<8x8x16xbf16>, vector<8x16x8xbf16>, vector<8x8x8xf32> -> vector<8x8x8xf32>
    "tpu.trace_stop"() : () -> ()
    %136 = vector.shape_cast %135 : vector<8x8x8xf32> to vector<4x16x8xf32>
    %137 = tpu.transpose %136, [1, 0, 2] : vector<4x16x8xf32> -> vector<16x4x8xf32>
    %138 = vector.shape_cast %137 : vector<16x4x8xf32> to vector<16x32xf32>
    %c0_59 = arith.constant 0 : index
    %c0_60 = arith.constant 0 : index
    %139 = vector.load %arg28[%c0_59, %c0_60] : memref<16x32xf32, #tpu.memory_space<vmem>>, vector<16x32xf32>
    tpu.vector_store %arg28[%c0_59, %c0_60], %138 {strides = array<i32>} : memref<16x32xf32, #tpu.memory_space<vmem>>, vector<16x32xf32>,
    %140 = arith.truncf %138 : vector<16x32xf32> to vector<16x32xbf16>
    %c0_61 = arith.constant 0 : index
    %c0_62 = arith.constant 0 : index
    %141 = vector.load %arg14[%c0_61, %c0_62] : memref<32x32xbf16, #tpu.memory_space<vmem>>, vector<32x32xbf16>
    %cst_63 = arith.constant dense<0.000000e+00> : vector<16x32xf32>
    %142 = tpu.matmul %140, %141, %cst_63 {dimension_numbers = #tpu.dot_dimension_numbers<[1], [0], [0], [1], [0, 0, 1, 1], [], []>} : vector<16x32xbf16>, vector<32x32xbf16>, vector<16x32xf32> -> vector<16x32xf32>
    %c0_64 = arith.constant 0 : index
    %c0_65 = arith.constant 0 : index
    %143 = vector.load %arg15[%c0_64, %c0_65] : memref<1x32xf32, #tpu.memory_space<vmem>>, vector<1x32xf32>
    %144 = vector.broadcast %143 : vector<1x32xf32> to vector<16x32xf32>
    %145 = arith.addf %142, %144 : vector<16x32xf32>
    %146 = arith.addf %145, %83 : vector<16x32xf32>
    %c0_66 = arith.constant 0 : index
    %c0_67 = arith.constant 0 : index
    %147 = vector.load %arg16[%c0_66, %c0_67] : memref<1x32xf32, #tpu.memory_space<vmem>>, vector<1x32xf32>
    %c0_68 = arith.constant 0 : index
    %c0_69 = arith.constant 0 : index
    %148 = vector.load %arg17[%c0_68, %c0_69] : memref<1x32xf32, #tpu.memory_space<vmem>>, vector<1x32xf32>
    %cst_70 = arith.constant dense<0.000000e+00> : vector<16xf32>
    %149 = vector.multi_reduction <add>, %146, %cst_70 [1] : vector<16x32xf32> to vector<16xf32>
    %150 = vector.shape_cast %149 : vector<16xf32> to vector<16x1xf32>
    %cst_71 = arith.constant 3.200000e+01 : f32
    %151 = vector.broadcast %cst_71 : f32 to vector<16x1xf32>
    %152 = arith.divf %150, %151 : vector<16x1xf32>
    %153 = vector.broadcast %152 : vector<16x1xf32> to vector<16x32xf32>
    %154 = arith.subf %146, %153 : vector<16x32xf32>
    %155 = arith.mulf %154, %154 : vector<16x32xf32>
    %cst_72 = arith.constant dense<0.000000e+00> : vector<16xf32>
    %156 = vector.multi_reduction <add>, %155, %cst_72 [1] : vector<16x32xf32> to vector<16xf32>
    %157 = vector.shape_cast %156 : vector<16xf32> to vector<16x1xf32>
    %cst_73 = arith.constant 3.200000e+01 : f32
    %158 = vector.broadcast %cst_73 : f32 to vector<16x1xf32>
    %159 = arith.divf %157, %158 : vector<16x1xf32>
    %160 = vector.broadcast %152 : vector<16x1xf32> to vector<16x32xf32>
    %161 = arith.subf %146, %160 : vector<16x32xf32>
    %cst_74 = arith.constant 9.99999974E-6 : f32
    %162 = vector.broadcast %cst_74 : f32 to vector<16x1xf32>
    %163 = arith.addf %159, %162 : vector<16x1xf32>
    %164 = math.rsqrt %163 : vector<16x1xf32>
    %165 = vector.broadcast %164 : vector<16x1xf32> to vector<16x32xf32>
    %166 = arith.mulf %161, %165 : vector<16x32xf32>
    %167 = vector.broadcast %147 : vector<1x32xf32> to vector<16x32xf32>
    %168 = arith.mulf %166, %167 : vector<16x32xf32>
    %169 = vector.broadcast %148 : vector<1x32xf32> to vector<16x32xf32>
    %170 = arith.addf %168, %169 : vector<16x32xf32>
    %171 = arith.truncf %170 : vector<16x32xf32> to vector<16x32xbf16>
    %c0_75 = arith.constant 0 : index
    %c0_76 = arith.constant 0 : index
    %172 = vector.load %arg18[%c0_75, %c0_76] : memref<32x64xbf16, #tpu.memory_space<vmem>>, vector<32x64xbf16>
    %cst_77 = arith.constant dense<0.000000e+00> : vector<16x64xf32>
    %173 = tpu.matmul %171, %172, %cst_77 {dimension_numbers = #tpu.dot_dimension_numbers<[1], [0], [0], [1], [0, 0, 1, 1], [], []>} : vector<16x32xbf16>, vector<32x64xbf16>, vector<16x64xf32> -> vector<16x64xf32>
    %c0_78 = arith.constant 0 : index
    %c0_79 = arith.constant 0 : index
    %174 = vector.load %arg19[%c0_78, %c0_79] : memref<1x64xf32, #tpu.memory_space<vmem>>, vector<1x64xf32>
    %175 = vector.broadcast %174 : vector<1x64xf32> to vector<16x64xf32>
    %176 = arith.addf %173, %175 : vector<16x64xf32>
    %cst_80 = arith.constant 0.000000e+00 : f32
    %177 = vector.broadcast %cst_80 : f32 to vector<16x64xf32>
    %178 = arith.maximumf %176, %177 : vector<16x64xf32>
    %179 = arith.truncf %178 : vector<16x64xf32> to vector<16x64xbf16>
    %c0_81 = arith.constant 0 : index
    %c0_82 = arith.constant 0 : index
    %180 = vector.load %arg20[%c0_81, %c0_82] : memref<64x32xbf16, #tpu.memory_space<vmem>>, vector<64x32xbf16>
    %cst_83 = arith.constant dense<0.000000e+00> : vector<16x32xf32>
    %181 = tpu.matmul %179, %180, %cst_83 {dimension_numbers = #tpu.dot_dimension_numbers<[1], [0], [0], [1], [0, 0, 1, 1], [], []>} : vector<16x64xbf16>, vector<64x32xbf16>, vector<16x32xf32> -> vector<16x32xf32>
    %c0_84 = arith.constant 0 : index
    %c0_85 = arith.constant 0 : index
    %182 = vector.load %arg21[%c0_84, %c0_85] : memref<1x32xf32, #tpu.memory_space<vmem>>, vector<1x32xf32>
    %183 = vector.broadcast %182 : vector<1x32xf32> to vector<16x32xf32>
    %184 = arith.addf %181, %183 : vector<16x32xf32>
    %185 = arith.addf %184, %170 : vector<16x32xf32>
    %c0_86 = arith.constant 0 : index
    %c0_87 = arith.constant 0 : index
    %186 = vector.load %arg22[%c0_86, %c0_87] : memref<1x32xf32, #tpu.memory_space<vmem>>, vector<1x32xf32>
    %c0_88 = arith.constant 0 : index
    %c0_89 = arith.constant 0 : index
    %187 = vector.load %arg23[%c0_88, %c0_89] : memref<1x32xf32, #tpu.memory_space<vmem>>, vector<1x32xf32>
    %cst_90 = arith.constant dense<0.000000e+00> : vector<16xf32>
    %188 = vector.multi_reduction <add>, %185, %cst_90 [1] : vector<16x32xf32> to vector<16xf32>
    %189 = vector.shape_cast %188 : vector<16xf32> to vector<16x1xf32>
    %cst_91 = arith.constant 3.200000e+01 : f32
    %190 = vector.broadcast %cst_91 : f32 to vector<16x1xf32>
    %191 = arith.divf %189, %190 : vector<16x1xf32>
    %192 = vector.broadcast %191 : vector<16x1xf32> to vector<16x32xf32>
    %193 = arith.subf %185, %192 : vector<16x32xf32>
    %194 = arith.mulf %193, %193 : vector<16x32xf32>
    %cst_92 = arith.constant dense<0.000000e+00> : vector<16xf32>
    %195 = vector.multi_reduction <add>, %194, %cst_92 [1] : vector<16x32xf32> to vector<16xf32>
    %196 = vector.shape_cast %195 : vector<16xf32> to vector<16x1xf32>
    %cst_93 = arith.constant 3.200000e+01 : f32
    %197 = vector.broadcast %cst_93 : f32 to vector<16x1xf32>
    %198 = arith.divf %196, %197 : vector<16x1xf32>
    %199 = vector.broadcast %191 : vector<16x1xf32> to vector<16x32xf32>
    %200 = arith.subf %185, %199 : vector<16x32xf32>
    %cst_94 = arith.constant 9.99999974E-6 : f32
    %201 = vector.broadcast %cst_94 : f32 to vector<16x1xf32>
    %202 = arith.addf %198, %201 : vector<16x1xf32>
    %203 = math.rsqrt %202 : vector<16x1xf32>
    %204 = vector.broadcast %203 : vector<16x1xf32> to vector<16x32xf32>
    %205 = arith.mulf %200, %204 : vector<16x32xf32>
    %206 = vector.broadcast %186 : vector<1x32xf32> to vector<16x32xf32>
    %207 = arith.mulf %205, %206 : vector<16x32xf32>
    %208 = vector.broadcast %187 : vector<1x32xf32> to vector<16x32xf32>
    %209 = arith.addf %207, %208 : vector<16x32xf32>
    %c0_95 = arith.constant 0 : index
    %c0_96 = arith.constant 0 : index
    %210 = vector.load %arg24[%c0_95, %c0_96] : memref<16x32xf32, #tpu.memory_space<vmem>>, vector<16x32xf32>
    tpu.vector_store %arg24[%c0_95, %c0_96], %209 {strides = array<i32>} : memref<16x32xf32, #tpu.memory_space<vmem>>, vector<16x32xf32>,
    return
  }
}

</mosaic_0001>

<bundles_post_ra>
// kernel: tpu_custom_call.1
= control target key start
LH: loop header
LB: loop body
LE: loop exit
PB: predicated region body
PF: predicated region fallthrough
CT: control target
= control target key end

     0   :  { %s8282_s0 = inlined_call_operand.vmem [shape: f32[16,32], index: 0, kind: input, shape index: {}]   ;;  %s8283_s1 = inlined_call_operand.vmem [shape: f32[32,32], index: 1, kind: input, shape index: {}]   ;;  %s8284_s2 = inlined_call_operand.hbm [shape: s8[2,8,8], index: 2, kind: input, shape index: {}]   ;;  %s8285_s3 = inlined_call_operand.hbm [shape: s8[2,8,16], index: 3, kind: input, shape index: {}]   ;;  %s8286_s4 = inlined_call_operand.hbm [shape: bf16[32,96], index: 4, kind: input, shape index: {}]   ;;  %s8287_s5 = inlined_call_operand.hbm [shape: f32[1,96], index: 5, kind: input, shape index: {}]   ;;  %s8288_s6 = inlined_call_operand.hbm [shape: bf16[32,32], index: 6, kind: input, shape index: {}]   ;;  %s8289_s7 = inlined_call_operand.hbm [shape: f32[1,32], index: 7, kind: input, shape index: {}]   ;;  %s8290_s8 = inlined_call_operand.hbm [shape: f32[1,32], index: 8, kind: input, shape index: {}]   ;;  %s8291_s9 = inlined_call_operand.hbm [shape: f32[1,32], index: 9, kind: input, shape index: {}]   ;;  %s8292_s10 = inlined_call_operand.vmem [shape: bf16[32,32], index: 10, kind: input, shape index: {}]   ;;  %s8293_s11 = inlined_call_operand.hbm [shape: f32[1,32], index: 11, kind: input, shape index: {}]   ;;  %s8294_s12 = inlined_call_operand.hbm [shape: bf16[32,64], index: 12, kind: input, shape index: {}]   ;;  %s8295_s13 = inlined_call_operand.hbm [shape: f32[1,64], index: 13, kind: input, shape index: {}]   ;;  %s8296_s14 = inlined_call_operand.vmem [shape: bf16[32,32], index: 14, kind: input, shape index: {}]   ;;  %s8297_s15 = inlined_call_operand.hbm [shape: f32[1,32], index: 15, kind: input, shape index: {}]   ;;  %s8298_s16 = inlined_call_operand.hbm [shape: f32[1,32], index: 16, kind: input, shape index: {}]   ;;  %s8299_s17 = inlined_call_operand.hbm [shape: f32[1,32], index: 17, kind: input, shape index: {}]   ;;  %s8300_s18 = inlined_call_operand.vmem [shape: bf16[32,64], index: 18, kind: input, shape index: {}]   ;;  %s8301_s19 = inlined_call_operand.vmem [shape: f32[1,64], index: 19, kind: input, shape index: {}]   ;;  %s8302_s20 = inlined_call_operand.vmem [shape: bf16[64,32], index: 20, kind: input, shape index: {}]   ;;  %s8303_s21 = inlined_call_operand.vmem [shape: f32[1,32], index: 21, kind: input, shape index: {}]   ;;  %s8304_s22 = inlined_call_operand.vmem [shape: f32[1,32], index: 22, kind: input, shape index: {}]   ;;  %s8305_s23 = inlined_call_operand.vmem [shape: f32[1,32], index: 23, kind: input, shape index: {}]   ;;  %s8306_s24 = inlined_call_operand.hbm [shape: f32[16,32], index: 24, kind: output, shape index: {0}]   ;;  %s8307_s25 = inlined_call_operand.hbm [shape: f32[8,8,8], index: 25, kind: output, shape index: {1}]   ;;  %s8308_s26 = inlined_call_operand.hbm [shape: f32[8,8,16], index: 26, kind: output, shape index: {2}]   ;;  %s8309_s27 = inlined_call_operand.hbm [shape: f32[16,32], index: 27, kind: output, shape index: {3}]   ;;  %s8310_s28 = inlined_call_operand.hbm [shape: f32[16,32], index: 28, kind: output, shape index: {4}]  }
   0x1   :  { %8329 = sst [smem:[#allocation43_spill]] %s8282_s0 }
   0x2   :  { %8330 = sst [smem:[#allocation44_spill]] %s8283_s1 }
   0x3   :  { %8331 = sst [smem:[#allocation45_spill]] %s8284_s2 }
   0x4   :  { %8332 = sst [smem:[#allocation46_spill]] %s8285_s3 }
   0x5   :  { %8333 = sst [smem:[#allocation47_spill]] %s8286_s4 }
   0x6   :  { %8334 = sst [smem:[#allocation48_spill]] %s8287_s5 }
   0x7   :  { %8335 = sst [smem:[#allocation49_spill]] %s8288_s6 }
   0x8   :  { %8336 = sst [smem:[#allocation50_spill]] %s8289_s7 }
   0x9   :  { %8337 = sst [smem:[#allocation51_spill]] %s8290_s8 }
   0xa   :  { %8338 = sst [smem:[#allocation52_spill]] %s8291_s9 }
   0xb   :  { %8339 = sst [smem:[#allocation53_spill]] %s8292_s10 }
   0xc   :  { %8340 = sst [smem:[#allocation54_spill]] %s8293_s11 }
   0xd   :  { %8341 = sst [smem:[#allocation55_spill]] %s8294_s12 }
   0xe   :  { %8342 = sst [smem:[#allocation56_spill]] %s8305_s23 }
   0xf   :  { %8343 = sst [smem:[#allocation57_spill]] %s8306_s24 }
  0x10   :  { %34 = vsyncpa [#allocation3], 0 }
  0x11   :  { %35 = vsyncpa [#allocation6], 0 }
  0x12   :  { %36 = vsyncpa [#allocation9], 0 }
  0x13   :  { %37 = vsyncpa [#allocation12], 0 }
  0x14   :  { %38 = vsyncpa [#allocation15], 0 }
  0x15   :  { %39 = vsyncpa [#allocation18], 0 }
  0x16   :  { %40 = vsyncpa [#allocation21], 0 }
  0x17   :  { %41 = vsyncpa [#allocation24], 0 }
  0x18   :  { %42 = vsyncpa [#allocation4], 0 }
  0x19   :  { %43 = vsyncpa [#allocation27], 0 }
  0x1a   :  { %44 = vsyncpa [#allocation30], 0  ;;  %s6713_s8 = smov [#allocation5]   ;;  %s6714_s9 = smov [#allocation8]  }
  0x1b   :  { %s66_s5 = sshll.u32 %s6713_s8, 4  ;;  %s91_s30 = sshll.u32 %s6714_s9, 4  ;;  %s67_s5 = int_to_ptr.vmem [resolvable:$true] %s66_s5  ;;  %s6893_s30 = int_to_ptr.vmem [resolvable:$true] %s91_s30 }
  0x1c   :  { %s8344_s10 = sld [smem:[#allocation46_spill]] }
  0x22   :  { %s6273_s0 = scalar_lea.hbm %s8344_s10, 64 }
  0x23   :  { %p6274_p0 = scmp.ne.s32.totalorder %s8344_s10, %s6273_s0  ;;  %p6277_p1 = scmp.lt.u32.totalorder %s6273_s0, %s8344_s10 }
  0x25   :  { %p6279_p2 = pnand %p6277_p1, %p6274_p0 }
  0x27   :  { %6282 = shalt.err (!%p6279_p2)
}
  0x28   :  { %s6283_s12 = scalar_lea.vmem %s67_s5, 64  ;;  %p6288_p4 = scmp.lt.s32.totalorder %s67_s5, %s67_s5 }
  0x29   :  { %p6284_p3 = scmp.ne.s32.totalorder %s67_s5, %s6283_s12  ;;  %p6289_p5 = scmp.lt.s32.totalorder %s6283_s12, %s6283_s12 }
  0x2b   :  { %p6290_p6 = por %p6289_p5, %p6288_p4 }
  0x2d   :  { %p6291_p7 = pnand %p6290_p6, %p6284_p3 }
  0x2f   :  { %6294 = shalt.err (!%p6291_p7)
}
  0x30   :  { %s8324_s1 = smov 32   ;;  %s8325_s4 = smov 2  }
  0x31   :  { %72 = dma.hbm_to_vmem [thread:$0]  %s8344_s10, 64, %s67_s5, [#allocation6], %s8324_s1, %s8324_s1, %s8325_s4  }
  0x32   :  { %s8345_s0 = sld [smem:[#allocation48_spill]] }
  0x38   :  { %s6295_s11 = scalar_lea.hbm %s8345_s0, 16 }
  0x39   :  { %p6296_p8 = scmp.ne.s32.totalorder %s8345_s0, %s6295_s11  ;;  %p6299_p9 = scmp.lt.u32.totalorder %s6295_s11, %s8345_s0 }
  0x3b   :  { %p6301_p10 = pnand %p6299_p9, %p6296_p8 }
  0x3d   :  { %6304 = shalt.err (!%p6301_p10)
}
  0x3e   :  { %s6305_s8 = scalar_lea.vmem %s6893_s30, 16  ;;  %s6309_s5 = scalar_lea.vmem %s6893_s30, 32 }
  0x3f   :  { %p6306_p11 = scmp.ne.s32.totalorder %s6893_s30, %s6305_s8  ;;  %p6310_p12 = scmp.lt.s32.totalorder %s6893_s30, %s6893_s30 }
  0x40   :  { %p6311_p13 = scmp.lt.s32.totalorder %s6309_s5, %s6305_s8 }
  0x42   :  { %p6312_p0 = por %p6311_p13, %p6310_p12 }
  0x44   :  { %p6313_p1 = pnand %p6312_p0, %p6306_p11 }
  0x46   :  { %6316 = shalt.err (!%p6313_p1)
}
  0x47   :  { %94 = dma.hbm_to_vmem [thread:$0]  %s8345_s0, 16, %s6893_s30, [#allocation9]  }
  0x48   :  { %s6717_s3 = smov [#allocation11]   ;;  %s6718_s11 = smov [#allocation14]  }
  0x49   :  { %s113_s6 = sshll.u32 %s6717_s3, 4  ;;  %s133_s29 = sshll.u32 %s6718_s11, 4  ;;  %s114_s6 = int_to_ptr.vmem [resolvable:$true] %s113_s6  ;;  %s134_s29 = int_to_ptr.vmem [resolvable:$true] %s133_s29 }
  0x4a   :  { %s8346_s12 = sld [smem:[#allocation50_spill]] }
  0x50   :  { %s6317_s1 = scalar_lea.hbm %s8346_s12, 16 }
  0x51   :  { %p6318_p2 = scmp.ne.s32.totalorder %s8346_s12, %s6317_s1  ;;  %p6321_p3 = scmp.lt.u32.totalorder %s6317_s1, %s8346_s12 }
  0x53   :  { %p6323_p4 = pnand %p6321_p3, %p6318_p2 }
  0x55   :  { %6326 = shalt.err (!%p6323_p4)
}
  0x56   :  { %s6327_s30 = scalar_lea.vmem %s114_s6, 16  ;;  %s6331_s0 = scalar_lea.vmem %s114_s6, 32 }
  0x57   :  { %p6328_p5 = scmp.ne.s32.totalorder %s114_s6, %s6327_s30  ;;  %p6332_p6 = scmp.lt.s32.totalorder %s114_s6, %s114_s6 }
  0x58   :  { %p6333_p7 = scmp.lt.s32.totalorder %s6331_s0, %s6327_s30 }
  0x5a   :  { %p6334_p8 = por %p6333_p7, %p6332_p6 }
  0x5c   :  { %p6335_p9 = pnand %p6334_p8, %p6328_p5 }
  0x5e   :  { %6338 = shalt.err (!%p6335_p9)
}
  0x5f   :  { %116 = dma.hbm_to_vmem [thread:$0]  %s8346_s12, 16, %s114_s6, [#allocation12]  }
  0x60   :  { %s8347_s11 = sld [smem:[#allocation52_spill]] }
  0x66   :  { %s6339_s2 = scalar_lea.hbm %s8347_s11, 16 }
  0x67   :  { %p6340_p10 = scmp.ne.s32.totalorder %s8347_s11, %s6339_s2  ;;  %p6343_p11 = scmp.lt.u32.totalorder %s6339_s2, %s8347_s11 }
  0x69   :  { %p6345_p12 = pnand %p6343_p11, %p6340_p10 }
  0x6b   :  { %6348 = shalt.err (!%p6345_p12)
}
  0x6c   :  { %s6349_s5 = scalar_lea.vmem %s134_s29, 16  ;;  %s6353_s30 = scalar_lea.vmem %s134_s29, 32 }
  0x6d   :  { %p6350_p13 = scmp.ne.s32.totalorder %s134_s29, %s6349_s5  ;;  %p6354_p0 = scmp.lt.s32.totalorder %s134_s29, %s134_s29 }
  0x6e   :  { %p6355_p1 = scmp.lt.s32.totalorder %s6353_s30, %s6349_s5 }
  0x70   :  { %p6356_p2 = por %p6355_p1, %p6354_p0 }
  0x72   :  { %p6357_p3 = pnand %p6356_p2, %p6350_p13 }
  0x74   :  { %6360 = shalt.err (!%p6357_p3)
}
  0x75   :  { %136 = dma.hbm_to_vmem [thread:$0]  %s8347_s11, 16, %s134_s29, [#allocation15]  }
  0x76   :  { %s6719_s0 = smov [#allocation17]   ;;  %s6720_s9 = smov [#allocation20]  }
  0x77   :  { %s154_s10 = sshll.u32 %s6719_s0, 4  ;;  %s179_s4 = sshll.u32 %s6720_s9, 4  ;;  %s155_s10 = int_to_ptr.vmem [resolvable:$true] %s154_s10  ;;  %s6952_s4 = int_to_ptr.vmem [resolvable:$true] %s179_s4 }
  0x78   :  { %s8348_s24 = sld [smem:[#allocation55_spill]] }
  0x7e   :  { %s6361_s1 = scalar_lea.hbm %s8348_s24, 256 }
  0x7f   :  { %p6362_p4 = scmp.ne.s32.totalorder %s8348_s24, %s6361_s1  ;;  %p6365_p5 = scmp.lt.u32.totalorder %s6361_s1, %s8348_s24 }
  0x81   :  { %p6367_p6 = pnand %p6365_p5, %p6362_p4 }
  0x83   :  { %6370 = shalt.err (!%p6367_p6)
}
  0x84   :  { %s6371_s29 = scalar_lea.vmem %s155_s10, 256  ;;  %p6376_p8 = scmp.lt.s32.totalorder %s155_s10, %s155_s10 }
  0x85   :  { %p6372_p7 = scmp.ne.s32.totalorder %s155_s10, %s6371_s29  ;;  %p6377_p9 = scmp.lt.s32.totalorder %s6371_s29, %s6371_s29 }
  0x87   :  { %p6378_p10 = por %p6377_p9, %p6376_p8 }
  0x89   :  { %p6379_p11 = pnand %p6378_p10, %p6372_p7 }
  0x8b   :  { %6382 = shalt.err (!%p6379_p11)
}
  0x8c   :  { %s8327_s11 = smov 64   ;;  %s6722_s6 = smov 4  }
  0x8d   :  { %160 = dma.hbm_to_vmem [thread:$0]  %s8348_s24, 256, %s155_s10, [#allocation18], %s8327_s11, %s8327_s11, %s6722_s6  }
  0x8e   :  { %s6383_s2 = scalar_lea.hbm %s8297_s15, 16 }
  0x8f   :  { %p6384_p12 = scmp.ne.s32.totalorder %s8297_s15, %s6383_s2  ;;  %p6387_p13 = scmp.lt.u32.totalorder %s6383_s2, %s8297_s15 }
  0x91   :  { %p6389_p0 = pnand %p6387_p13, %p6384_p12 }
  0x93   :  { %6392 = shalt.err (!%p6389_p0)
}
  0x94   :  { %s6393_s30 = scalar_lea.vmem %s6952_s4, 16  ;;  %s6397_s10 = scalar_lea.vmem %s6952_s4, 32 }
  0x95   :  { %p6394_p1 = scmp.ne.s32.totalorder %s6952_s4, %s6393_s30  ;;  %p6398_p2 = scmp.lt.s32.totalorder %s6952_s4, %s6952_s4 }
  0x96   :  { %p6399_p3 = scmp.lt.s32.totalorder %s6397_s10, %s6393_s30 }
  0x98   :  { %p6400_p4 = por %p6399_p3, %p6398_p2 }
  0x9a   :  { %p6401_p5 = pnand %p6400_p4, %p6394_p1 }
  0x9c   :  { %6404 = shalt.err (!%p6401_p5)
}
  0x9d   :  { %182 = dma.hbm_to_vmem [thread:$0]  %s8297_s15, 16, %s6952_s4, [#allocation21]  }
  0x9e   :  { %s6723_s12 = smov [#allocation2]   ;;  %s6724_s9 = smov [#allocation7]  }
  0x9f   :  { %s54_s0 = sshll.u32 %s6723_s12, 4  ;;  %s78_s3 = sshll.u32 %s6724_s9, 4  ;;  %s55_s0 = int_to_ptr.vmem [resolvable:$true] %s54_s0  ;;  %s6987_s3 = int_to_ptr.vmem [resolvable:$true] %s78_s3 }
  0xa0   :  { %s8349_s7 = sld [smem:[#allocation45_spill]] }
  0xa6   :  { %s6405_s8 = scalar_lea.hbm %s8349_s7, 64 }
  0xa7   :  { %p6406_p6 = scmp.ne.s32.totalorder %s8349_s7, %s6405_s8  ;;  %p6409_p7 = scmp.lt.u32.totalorder %s6405_s8, %s8349_s7 }
  0xa9   :  { %p6411_p8 = pnand %p6409_p7, %p6406_p6 }
  0xab   :  { %6414 = shalt.err (!%p6411_p8)
}
  0xac   :  { %s6415_s15 = scalar_lea.vmem %s55_s0, 64  ;;  %p6420_p10 = scmp.lt.s32.totalorder %s55_s0, %s55_s0 }
  0xad   :  { %p6416_p9 = scmp.ne.s32.totalorder %s55_s0, %s6415_s15  ;;  %p6421_p11 = scmp.lt.s32.totalorder %s6415_s15, %s6415_s15 }
  0xaf   :  { %p6422_p12 = por %p6421_p11, %p6420_p10 }
  0xb1   :  { %p6423_p13 = pnand %p6422_p12, %p6416_p9 }
  0xb3   :  { %6426 = shalt.err (!%p6423_p13)
}
  0xb4   :  { %s8350_s4 = smov 2   ;;  %s8351_s24 = smov 32  }
  0xb5   :  { %60 = dma.hbm_to_vmem [thread:$0]  %s8349_s7, 64, %s55_s0, [#allocation3], %s8351_s24, %s8351_s24, %s8350_s4  }
  0xb6   :  { %s8352_s11 = sld [smem:[#allocation47_spill]] }
  0xbc   :  { %s6427_s1 = scalar_lea.hbm %s8352_s11, 256 }
  0xbd   :  { %p6428_p0 = scmp.ne.s32.totalorder %s8352_s11, %s6427_s1  ;;  %p6431_p1 = scmp.lt.u32.totalorder %s6427_s1, %s8352_s11 }
  0xbf   :  { %p6433_p2 = pnand %p6431_p1, %p6428_p0 }
  0xc1   :  { %6436 = shalt.err (!%p6433_p2)
}
  0xc2   :  { %s6437_s15 = scalar_lea.vmem %s6987_s3, 256  ;;  %p6442_p4 = scmp.lt.s32.totalorder %s6987_s3, %s6987_s3 }
  0xc3   :  { %p6438_p3 = scmp.ne.s32.totalorder %s6987_s3, %s6437_s15  ;;  %p6443_p5 = scmp.lt.s32.totalorder %s6437_s15, %s6437_s15 }
  0xc5   :  { %p6444_p6 = por %p6443_p5, %p6442_p4 }
  0xc7   :  { %p6445_p7 = pnand %p6444_p6, %p6438_p3 }
  0xc9   :  { %6448 = shalt.err (!%p6445_p7)
}
  0xca   :  { %s8353_s0 = smov 64   ;;  %s6725_s24 = smov [#allocation10]  }
  0xcb   :  { %84 = dma.hbm_to_vmem [thread:$0]  %s8352_s11, 256, %s6987_s3, [#allocation6], %s8353_s0, %s8353_s0, %s6722_s6  }
  0xcc   :  { %s100_s29 = sshll.u32 %s6725_s24, 4  ;;  %s6726_s12 = smov [#allocation13]   ;;  %s101_s29 = int_to_ptr.vmem [resolvable:$true] %s100_s29 }
  0xcd   :  { %s123_s9 = sshll.u32 %s6726_s12, 4  ;;  %s8354_s8 = sld [smem:[#allocation49_spill]]  ;;  %s124_s9 = int_to_ptr.vmem [resolvable:$true] %s123_s9 }
  0xd3   :  { %s6449_s5 = scalar_lea.hbm %s8354_s8, 256 }
  0xd4   :  { %p6450_p8 = scmp.ne.s32.totalorder %s8354_s8, %s6449_s5  ;;  %p6453_p9 = scmp.lt.u32.totalorder %s6449_s5, %s8354_s8 }
  0xd6   :  { %p6455_p10 = pnand %p6453_p9, %p6450_p8 }
  0xd8   :  { %6458 = shalt.err (!%p6455_p10)
}
  0xd9   :  { %s6459_s3 = scalar_lea.vmem %s101_s29, 256  ;;  %p6464_p12 = scmp.lt.s32.totalorder %s101_s29, %s101_s29 }
  0xda   :  { %p6460_p11 = scmp.ne.s32.totalorder %s101_s29, %s6459_s3  ;;  %p6465_p13 = scmp.lt.s32.totalorder %s6459_s3, %s6459_s3 }
  0xdc   :  { %p6466_p0 = por %p6465_p13, %p6464_p12 }
  0xde   :  { %p6467_p1 = pnand %p6466_p0, %p6460_p11 }
  0xe0   :  { %6470 = shalt.err (!%p6467_p1)
}
  0xe1   :  { %106 = dma.hbm_to_vmem [thread:$0]  %s8354_s8, 256, %s101_s29, [#allocation9], %s8353_s0, %s8353_s0, %s6722_s6  }
  0xe2   :  { %s8355_s23 = sld [smem:[#allocation51_spill]] }
  0xe8   :  { %s6471_s12 = scalar_lea.hbm %s8355_s23, 16 }
  0xe9   :  { %p6472_p2 = scmp.ne.s32.totalorder %s8355_s23, %s6471_s12  ;;  %p6475_p3 = scmp.lt.u32.totalorder %s6471_s12, %s8355_s23 }
  0xeb   :  { %p6477_p4 = pnand %p6475_p3, %p6472_p2 }
  0xed   :  { %6480 = shalt.err (!%p6477_p4)
}
  0xee   :  { %s6481_s10 = scalar_lea.vmem %s124_s9, 16  ;;  %s6485_s15 = scalar_lea.vmem %s124_s9, 32 }
  0xef   :  { %p6482_p5 = scmp.ne.s32.totalorder %s124_s9, %s6481_s10  ;;  %p6486_p6 = scmp.lt.s32.totalorder %s124_s9, %s124_s9 }
  0xf0   :  { %p6487_p7 = scmp.lt.s32.totalorder %s6485_s15, %s6481_s10 }
  0xf2   :  { %p6488_p8 = por %p6487_p7, %p6486_p6 }
  0xf4   :  { %p6489_p9 = pnand %p6488_p8, %p6482_p5 }
  0xf6   :  { %6492 = shalt.err (!%p6489_p9)
}
  0xf7   :  { %126 = dma.hbm_to_vmem [thread:$0]  %s8355_s23, 16, %s124_s9, [#allocation12]  }
  0xf8   :  { %s6727_s8 = smov [#allocation16]   ;;  %s6728_s11 = smov [#allocation19]  }
  0xf9   :  { %s145_s3 = sshll.u32 %s6727_s8, 4  ;;  %s167_s7 = sshll.u32 %s6728_s11, 4  ;;  %s146_s3 = int_to_ptr.vmem [resolvable:$true] %s145_s3  ;;  %s168_s7 = int_to_ptr.vmem [resolvable:$true] %s167_s7 }
  0xfa   :  { %s8356_s12 = sld [smem:[#allocation54_spill]] }
 0x100   :  { %s6493_s2 = scalar_lea.hbm %s8356_s12, 16 }
 0x101   :  { %p6494_p10 = scmp.ne.s32.totalorder %s8356_s12, %s6493_s2  ;;  %p6497_p11 = scmp.lt.u32.totalorder %s6493_s2, %s8356_s12 }
 0x103   :  { %p6499_p12 = pnand %p6497_p11, %p6494_p10 }
 0x105   :  { %6502 = shalt.err (!%p6499_p12)
}
 0x106   :  { %s6503_s9 = scalar_lea.vmem %s146_s3, 16  ;;  %s6507_s23 = scalar_lea.vmem %s146_s3, 32 }
 0x107   :  { %p6504_p13 = scmp.ne.s32.totalorder %s146_s3, %s6503_s9  ;;  %p6508_p0 = scmp.lt.s32.totalorder %s146_s3, %s146_s3 }
 0x108   :  { %p6509_p1 = scmp.lt.s32.totalorder %s6507_s23, %s6503_s9 }
 0x10a   :  { %p6510_p2 = por %p6509_p1, %p6508_p0 }
 0x10c   :  { %p6511_p3 = pnand %p6510_p2, %p6504_p13 }
 0x10e   :  { %6514 = shalt.err (!%p6511_p3)
}
 0x10f   :  { %148 = dma.hbm_to_vmem [thread:$0]  %s8356_s12, 16, %s146_s3, [#allocation15]  }
 0x110   :  { %s6515_s11 = scalar_lea.hbm %s8295_s13, 16 }
 0x111   :  { %p6516_p4 = scmp.ne.s32.totalorder %s8295_s13, %s6515_s11  ;;  %p6519_p5 = scmp.lt.u32.totalorder %s6515_s11, %s8295_s13 }
 0x113   :  { %p6521_p6 = pnand %p6519_p5, %p6516_p4 }
 0x115   :  { %6524 = shalt.err (!%p6521_p6)
}
 0x116   :  { %s6525_s5 = scalar_lea.vmem %s168_s7, 16  ;;  %s6529_s30 = scalar_lea.vmem %s168_s7, 32 }
 0x117   :  { %p6526_p7 = scmp.ne.s32.totalorder %s168_s7, %s6525_s5  ;;  %p6530_p8 = scmp.lt.s32.totalorder %s168_s7, %s168_s7 }
 0x118   :  { %p6531_p9 = scmp.lt.s32.totalorder %s6529_s30, %s6525_s5 }
 0x11a   :  { %p6532_p10 = por %p6531_p9, %p6530_p8 }
 0x11c   :  { %p6533_p11 = pnand %p6532_p10, %p6526_p7 }
 0x11e   :  { %6536 = shalt.err (!%p6533_p11)
}
 0x11f   :  { %170 = dma.hbm_to_vmem [thread:$0]  %s8295_s13, 16, %s168_s7, [#allocation18]  }
 0x120   :  { %s6729_s10 = smov [#allocation22]   ;;  %s6730_s23 = smov [#allocation23]  }
 0x121   :  { %s189_s9 = sshll.u32 %s6729_s10, 4  ;;  %s199_s15 = sshll.u32 %s6730_s23, 4  ;;  %s190_s9 = int_to_ptr.vmem [resolvable:$true] %s189_s9  ;;  %s200_s15 = int_to_ptr.vmem [resolvable:$true] %s199_s15 }
 0x122   :  { %s6537_s8 = scalar_lea.hbm %s8298_s16, 16 }
 0x123   :  { %p6538_p12 = scmp.ne.s32.totalorder %s8298_s16, %s6537_s8  ;;  %p6541_p13 = scmp.lt.u32.totalorder %s6537_s8, %s8298_s16 }
 0x125   :  { %p6543_p0 = pnand %p6541_p13, %p6538_p12 }
 0x127   :  { %6546 = shalt.err (!%p6543_p0)
}
 0x128   :  { %s6547_s13 = scalar_lea.vmem %s190_s9, 16  ;;  %s6551_s7 = scalar_lea.vmem %s190_s9, 32 }
 0x129   :  { %p6548_p1 = scmp.ne.s32.totalorder %s190_s9, %s6547_s13  ;;  %p6552_p2 = scmp.lt.s32.totalorder %s190_s9, %s190_s9 }
 0x12a   :  { %p6553_p3 = scmp.lt.s32.totalorder %s6551_s7, %s6547_s13 }
 0x12c   :  { %p6554_p4 = por %p6553_p3, %p6552_p2 }
 0x12e   :  { %p6555_p5 = pnand %p6554_p4, %p6548_p1 }
 0x130   :  { %6558 = shalt.err (!%p6555_p5)
}
 0x131   :  { %192 = dma.hbm_to_vmem [thread:$0]  %s8298_s16, 16, %s190_s9, [#allocation21]  }
 0x132   :  { %s6559_s12 = scalar_lea.hbm %s8299_s17, 16 }
 0x133   :  { %p6560_p6 = scmp.ne.s32.totalorder %s8299_s17, %s6559_s12  ;;  %p6563_p7 = scmp.lt.u32.totalorder %s6559_s12, %s8299_s17 }
 0x135   :  { %p6565_p8 = pnand %p6563_p7, %p6560_p6 }
 0x137   :  { %6568 = shalt.err (!%p6565_p8)
}
 0x138   :  { %s6569_s8 = scalar_lea.vmem %s200_s15, 16  ;;  %s6573_s11 = scalar_lea.vmem %s200_s15, 32 }
 0x139   :  { %p6570_p9 = scmp.ne.s32.totalorder %s200_s15, %s6569_s8  ;;  %p6574_p10 = scmp.lt.s32.totalorder %s200_s15, %s200_s15 }
 0x13a   :  { %p6575_p11 = scmp.lt.s32.totalorder %s6573_s11, %s6569_s8 }
 0x13c   :  { %p6576_p12 = por %p6575_p11, %p6574_p10 }
 0x13e   :  { %p6577_p13 = pnand %p6576_p12, %p6570_p9 }
 0x140   :  { %6580 = shalt.err (!%p6577_p13)
}
 0x141   :  { %202 = dma.hbm_to_vmem [thread:$0]  %s8299_s17, 16, %s200_s15, [#allocation24]  }
 0x142   :  { %6691 = dma.done.wait [#allocation3], 64  }
 0x143   :  { %6692 = vsyncadd [#allocation3], 4294967232 }
 0x144   :  { %6693 = dma.done.wait [#allocation6], 320  }
 0x145   :  { %6694 = vsyncadd [#allocation6], 4294966976 }
 0x146   :  { %6695 = dma.done.wait [#allocation9], 272  }
 0x147   :  { %6696 = vsyncadd [#allocation9], 4294967024 }
 0x148   :  { %6697 = dma.done.wait [#allocation12], 32  }
 0x149   :  { %6698 = vsyncadd [#allocation12], 4294967264 }
 0x14a   :  { %6699 = dma.done.wait [#allocation15], 32  }
 0x14b   :  { %6700 = vsyncadd [#allocation15], 4294967264 }
 0x14c   :  { %6701 = dma.done.wait [#allocation18], 272  }
 0x14d   :  { %6702 = vsyncadd [#allocation18], 4294967024 }
 0x14e   :  { %6703 = dma.done.wait [#allocation21], 32  }
 0x14f   :  { %6704 = vsyncadd [#allocation21], 4294967264 }
 0x150   :  { %6705 = dma.done.wait [#allocation24], 16  }
 0x151   :  { %6706 = vsyncadd [#allocation24], 4294967280  ;;  %v6731_v0 = vmov 0.0   ;;  %vm6732_vm0 = vmmov 0   ;;  %v6179_v1 = vld [vmem:[#allocation7] sm:$0xff]   ;;  %v6180_v2 = vld [vmem:[#allocation7 + $0x8] sm:$0xff]   ;;  %v368_v21 = vlaneseq }
 0x152   :  { %5892 = vmatprep.subr.bf16.mxu1 %v6731_v0  ;;  %5896 = vmatprep.mubr.msk.bf16.mxu1 %vm6732_vm0, %v6731_v0  ;;  %s8357_s4 = sld [smem:[#allocation43_spill]]  ;;  %vm298_vm1 = vcmask 261120   ;;  %v5687_v6 = vld [vmem:[#allocation8] ss:$0 sm:$0xff]  ;;  %s6733_s13 = smov 112   ;;  %vm1243_vm2 = vcmask 64512  }
 0x153   :  { %5906 = vmatprep.subr.bf16.mxu0 %v6731_v0  ;;  %5908 = vmatprep.mubr.msk.bf16.mxu0 %vm6732_vm0, %v6731_v0  ;;  %s6734_s7 = smov 120   ;;  %s6735_s1 = smov 104   ;;  %v6737_v19 = vmov 1983009808   ;;  %v369_v23 = vshrl.u32 %v368_v21, 7  ;;  %vm1727_vm5 = vcmask 1043456  }
 0x154   :  { %5893 = vmatpush3.bf16.msra.mxu1 %v6179_v1  ;;  %s6736_s5 = smov 96   ;;  %v366_v20 = vunpack.c.l.s4 %v6737_v19  ;;  %v6738_v24 = vmov 1934713408   ;;  %s6740_s30 = smov 16   ;;  %vm2391_vm6 = vcmask 130048   ;;  %vm2394_vm7 = vcmask 195584  }
 0x155   :  { %5894 = vmatprep.subr.bf16.mxu1 %v6731_v0  ;;  %v398_v25 = vunpack.c.l.s4 %v6738_v24  ;;  %s6741_s3 = smov 24   ;;  %s8358_s11 = sld [smem:[#allocation44_spill]]  ;;  %vm5508_vm10 = vcmask 523264  }
 0x156   :  { %v367_v22 = vunpack.c.0.s8 %v366_v20  ;;  %s8359_s10 = sld [smem:[#allocation53_spill]] }
 0x157   :  { %v399_v30 = vunpack.c.0.s8 %v398_v25 }
 0x158   :  { %v258_v3 = vld [vmem:[%s8357_s4] sm:$0xff]  ;;  %v259_v4 = vld [vmem:[%s8357_s4 + $0x8] sm:$0xff]  ;;  %5895 = vmatpush3.bf16.msra.mxu1 %v6180_v2  ;;  %v7147_v27 = vsub.s32 %v367_v22, %v369_v23 }
 0x159   :  { %v274_v5 = vpack.c.bf16 %v259_v4, %v258_v3  ;;  %5900 = vmatprep.subr.bf16.mxu1 %v6731_v0  ;;  %v7159_v39 = vsub.s32 %v399_v30, %v369_v23 }
 0x15b   :  { %5897 = vmatmul.mubr.msk.bf16.vlgmr.msra.gmra.mrb[0].mxu1 %vm298_vm1, %v274_v5 }
 0x15c   :  { %5902 = vmatprep.mubr.msk.bf16.mxu1 %vm6732_vm0, %v6731_v0 }
 0x22e   :  { %v336_v7 = vpop.f32.mrb[0].mxu1 }
 0x22f   :  { %v337_v8 = vadd.f32 %v5687_v6, %v336_v7  ;;  %v5898_v9 = vpop.f32.mrb[1].mxu1 }
 0x230   :  { %v339_v10 = vpop.f32.mrb[2].mxu1 }
 0x231   :  { %351 = vrot.lane.b32.xlu1 %v337_v8, %s6733_s13  ;;  %345 = vrot.lane.b32.xlu0 %v337_v8, %s6734_s7  ;;  %v5899_v11 = vpop.f32.mrb[3].mxu1  ;;  %v340_v12 = vadd.f32 %v5687_v6, %v339_v10 }
 0x235   :  { %353 = vrot.lane.b32.xlu1 %v340_v12, %s6733_s13  ;;  %347 = vrot.lane.b32.xlu0 %v340_v12, %s6734_s7 }
 0x239   :  { %359 = vrot.lane.b32.xlu1 %v340_v12, %s6735_s1  ;;  %357 = vrot.lane.b32.xlu0 %v337_v8, %s6735_s1 }
 0x23d   :  { %637 = vrot.lane.b32.xlu1 %v340_v12, %s6736_s5  ;;  %635 = vrot.lane.b32.xlu0 %v337_v8, %s6736_s5 }
 0x2a3   :  { %v7124_v13 = vpop.permute.xlu1 %351  ;;  %v346_v14 = vpop.permute.xlu0 %345 }
 0x2a4   :  { %639 = vrot.lane.b32.xlu0 %v346_v14, %s6736_s5  ;;  %v363_v32 = vcombine.low %v337_v8, %v7124_v13  ;;  %v364_v36 = vcombine.high %v337_v8, %v7124_v13 }
 0x2a6   :  { %v371_v42 = vrot.slane %v363_v32, %v7147_v27  ;;  %v378_v47 = vrot.slane %v364_v36, %v7147_v27 }
 0x2a7   :  { %v348_v15 = vpop.permute.xlu0 %347  ;;  %v7130_v16 = vpop.permute.xlu1 %353 }
 0x2a8   :  { %643 = vrot.lane.b32.xlu0 %v7124_v13, %s6736_s5  ;;  %641 = vrot.lane.b32.xlu1 %v348_v15, %s6736_s5  ;;  %v431_v28 = vcombine.low %v340_v12, %v7130_v16  ;;  %v432_v35 = vcombine.high %v340_v12, %v7130_v16 }
 0x2aa   :  { %v439_v37 = vrot.slane %v431_v28, %v7147_v27  ;;  %v446_v46 = vrot.slane %v432_v35, %v7147_v27 }
 0x2ab   :  { %v7132_v17 = vpop.permute.xlu0 %357  ;;  %v7138_v18 = vpop.permute.xlu1 %359 }
 0x2ac   :  { %645 = vrot.lane.b32.xlu1 %v7130_v16, %s6736_s5  ;;  %647 = vrot.lane.b32.xlu0 %v7132_v17, %s6736_s5  ;;  %v447_v26 = vcombine.low %v348_v15, %v7138_v18  ;;  %v379_v29 = vcombine.low %v346_v14, %v7132_v17  ;;  %v448_v31 = vcombine.high %v348_v15, %v7138_v18 }
 0x2ad   :  { %v380_v34 = vcombine.high %v346_v14, %v7132_v17 }
 0x2ae   :  { %v455_v33 = vrot.slane %v447_v26, %v7147_v27  ;;  %v387_v38 = vrot.slane %v379_v29, %v7147_v27  ;;  %v462_v40 = vrot.slane %v448_v31, %v7147_v27 }
 0x2af   :  { %v636_v41 = vpop.permute.xlu0 %635  ;;  %v394_v45 = vrot.slane %v380_v34, %v7147_v27  ;;  %v638_v52 = vpop.permute.xlu1 %637 }
 0x2b0   :  { %649 = vrot.lane.b32.xlu1 %v7138_v18, %s6736_s5  ;;  %933 = vrot.lane.b32.xlu0 %v340_v12, %s8353_s0  ;;  %v463_v43 = vcombine.low %v439_v37, %v455_v33  ;;  %v464_v44 = vcombine.high %v439_v37, %v455_v33  ;;  %v395_v48 = vcombine.low %v371_v42, %v387_v38 }
 0x2b1   :  { %v396_v49 = vcombine.high %v371_v42, %v387_v38  ;;  %v479_v50 = vcombine.low %v446_v46, %v462_v40  ;;  %v480_v51 = vcombine.high %v446_v46, %v462_v40  ;;  %v411_v56 = vcombine.low %v378_v47, %v394_v45 }
 0x2b2   :  { %v471_v54 = vrot.slane %v463_v43, %v7159_v39  ;;  %v478_v55 = vrot.slane %v464_v44, %v7159_v39  ;;  %v412_v57 = vcombine.high %v378_v47, %v394_v45  ;;  %v403_v58 = vrot.slane %v395_v48, %v7159_v39 }
 0x2b3   :  { %v410_v59 = vrot.slane %v396_v49, %v7159_v39  ;;  %v7171_v60 = vrot.slane %v479_v50, %v7159_v39  ;;  %v7174_v63 = vrot.slane %v480_v51, %v7159_v39  ;;  %v419_v1 = vrot.slane %v411_v56, %v7159_v39 }
 0x2b4   :  { %931 = vrot.lane.b32.xlu1 %v337_v8, %s8353_s0  ;;  %v426_v2 = vrot.slane %v412_v57, %v7159_v39  ;;  %v567_v3 = vcombine.low %v471_v54, %v478_v55  ;;  %v5693_v4 = vcombine.high %v471_v54, %v478_v55 }
 0x2b5   :  { %v499_v5 = vcombine.low %v403_v58, %v410_v59  ;;  %v5691_v6 = vcombine.high %v403_v58, %v410_v59  ;;  %v5694_v22 = vcombine.high %v7171_v60, %v7174_v63 }
 0x2b6   :  { %v515_v10 = vcombine.low %v419_v1, %v426_v2  ;;  %v5692_v11 = vcombine.high %v419_v1, %v426_v2  ;;  %v7184_v21 = vrot.slane %v5693_v4, %v7147_v27 }
 0x2b7   :  { %v7189_v25 = vrot.slane %v499_v5, %v7147_v27  ;;  %v7192_v26 = vrot.slane %v5691_v6, %v7147_v27 }
 0x2b8   :  { %935 = vrot.lane.b32.xlu1 %v346_v14, %s8353_s0  ;;  %v7179_v14 = vrot.slane %v567_v3, %v7147_v27  ;;  %v7199_v35 = vrot.slane %v515_v10, %v7147_v27  ;;  %v7202_v36 = vrot.slane %v5692_v11, %v7147_v27  ;;  %v7224_v10 = vrot.slane %v5694_v22, %v7147_v27 }
 0x2bc   :  { %937 = vrot.lane.b32.xlu1 %v348_v15, %s8353_s0  ;;  %v583_v15 = vcombine.low %v7171_v60, %v7174_v63 }
 0x316   :  { %v640_v53 = vpop.permute.xlu0 %639 }
 0x31a   :  { %v642_v61 = vpop.permute.xlu1 %641  ;;  %v644_v62 = vpop.permute.xlu0 %643 }
 0x31b   :  { %v659_v7 = vcombine.low %v636_v41, %v644_v62  ;;  %v660_v8 = vcombine.high %v636_v41, %v644_v62 }
 0x31d   :  { %v667_v28 = vrot.slane %v659_v7, %v7147_v27  ;;  %v674_v29 = vrot.slane %v660_v8, %v7147_v27 }
 0x31e   :  { %v646_v9 = vpop.permute.xlu1 %645  ;;  %v648_v12 = vpop.permute.xlu0 %647 }
 0x31f   :  { %v675_v19 = vcombine.low %v640_v53, %v648_v12  ;;  %v676_v20 = vcombine.high %v640_v53, %v648_v12  ;;  %v727_v23 = vcombine.low %v638_v52, %v646_v9  ;;  %v728_v24 = vcombine.high %v638_v52, %v646_v9 }
 0x320   :  { %v7221_v9 = vrot.slane %v583_v15, %v7147_v27  ;;  %v547_v15 = vcombine.low %v7199_v35, %v7202_v36 }
 0x321   :  { %v683_v30 = vrot.slane %v675_v19, %v7147_v27  ;;  %v690_v31 = vrot.slane %v676_v20, %v7147_v27  ;;  %v735_v42 = vrot.slane %v727_v23, %v7147_v27  ;;  %v742_v43 = vrot.slane %v728_v24, %v7147_v27 }
 0x322   :  { %v650_v32 = vpop.permute.xlu1 %649 }
 0x323   :  { %v743_v33 = vcombine.low %v642_v61, %v650_v32  ;;  %v744_v34 = vcombine.high %v642_v61, %v650_v32  ;;  %v691_v37 = vcombine.low %v667_v28, %v683_v30  ;;  %v692_v38 = vcombine.high %v667_v28, %v683_v30 }
 0x324   :  { %v707_v40 = vcombine.low %v674_v29, %v690_v31  ;;  %v708_v41 = vcombine.high %v674_v29, %v690_v31  ;;  %v531_v28 = vcombine.low %v7189_v25, %v7192_v26 }
 0x325   :  { %v751_v44 = vrot.slane %v743_v33, %v7147_v27  ;;  %v758_v45 = vrot.slane %v744_v34, %v7147_v27  ;;  %v699_v46 = vrot.slane %v691_v37, %v7159_v39  ;;  %v706_v47 = vrot.slane %v692_v38, %v7159_v39 }
 0x326   :  { %v715_v48 = vrot.slane %v707_v40, %v7159_v39  ;;  %v722_v49 = vrot.slane %v708_v41, %v7159_v39  ;;  %v599_v33 = vcombine.low %v7179_v14, %v7184_v21  ;;  %v615_v34 = vcombine.low %v7221_v9, %v7224_v10 }
 0x327   :  { %v759_v50 = vcombine.low %v735_v42, %v751_v44  ;;  %v760_v51 = vcombine.high %v735_v42, %v751_v44  ;;  %v775_v52 = vcombine.low %v742_v43, %v758_v45  ;;  %v776_v53 = vcombine.high %v742_v43, %v758_v45 }
 0x328   :  { %v795_v54 = vcombine.low %v699_v46, %v706_v47  ;;  %v5695_v55 = vcombine.high %v699_v46, %v706_v47  ;;  %v811_v56 = vcombine.low %v715_v48, %v722_v49  ;;  %v5696_v57 = vcombine.high %v715_v48, %v722_v49 }
 0x329   :  { %v767_v58 = vrot.slane %v759_v50, %v7159_v39  ;;  %v774_v59 = vrot.slane %v760_v51, %v7159_v39  ;;  %v783_v60 = vrot.slane %v775_v52, %v7159_v39  ;;  %v790_v61 = vrot.slane %v776_v53, %v7159_v39 }
 0x32a   :  { %v802_v62 = vrot.slane %v795_v54, %v7147_v27  ;;  %v810_v63 = vrot.slane %v5695_v55, %v7147_v27  ;;  %v818_v1 = vrot.slane %v811_v56, %v7147_v27  ;;  %v826_v2 = vrot.slane %v5696_v57, %v7147_v27 }
 0x32b   :  { %v863_v3 = vcombine.low %v767_v58, %v774_v59  ;;  %v5697_v4 = vcombine.high %v767_v58, %v774_v59  ;;  %v879_v5 = vcombine.low %v783_v60, %v790_v61  ;;  %v5698_v6 = vcombine.high %v783_v60, %v790_v61 }
 0x32c   :  { %v827_v7 = vcombine.low %v802_v62, %v810_v63  ;;  %v843_v8 = vcombine.low %v818_v1, %v826_v2  ;;  %v539_v38 = vrot.slane %v531_v28, %v7159_v39  ;;  %v555_v40 = vrot.slane %v547_v15, %v7159_v39 }
 0x32d   :  { %v870_v11 = vrot.slane %v863_v3, %v7147_v27  ;;  %v878_v12 = vrot.slane %v5697_v4, %v7147_v27  ;;  %v886_v19 = vrot.slane %v879_v5, %v7147_v27  ;;  %v894_v20 = vrot.slane %v5698_v6, %v7147_v27 }
 0x32e   :  { %v835_v23 = vrot.slane %v827_v7, %v7159_v39  ;;  %v851_v24 = vrot.slane %v843_v8, %v7159_v39  ;;  %v828_v44 = vcombine.high %v802_v62, %v810_v63  ;;  %v844_v45 = vcombine.high %v818_v1, %v826_v2 }
 0x32f   :  { %v895_v22 = vcombine.low %v870_v11, %v878_v12  ;;  %v911_v29 = vcombine.low %v886_v19, %v894_v20  ;;  %v607_v47 = vrot.slane %v599_v33, %v7159_v39  ;;  %v623_v48 = vrot.slane %v615_v34, %v7159_v39 }
 0x330   :  { %v859_v30 = vcombine.low %v835_v23, %v851_v24  ;;  %v860_v43 = vcombine.high %v835_v23, %v851_v24  ;;  %v563_v49 = vcombine.low %v539_v38, %v555_v40  ;;  %v896_v52 = vcombine.high %v870_v11, %v878_v12 }
 0x331   :  { %v903_v31 = vrot.slane %v895_v22, %v7159_v39  ;;  %v919_v32 = vrot.slane %v911_v29, %v7159_v39  ;;  %v912_v53 = vcombine.high %v886_v19, %v894_v20  ;;  %v842_v55 = vrot.slane %v828_v44, %v7159_v39 }
 0x332   :  { %v1235_v37 = vpack.c.bf16 %v859_v30, %v859_v30  ;;  %v1237_v54 = vpack.c.bf16 %v860_v43, %v860_v43  ;;  %v858_v56 = vrot.slane %v844_v45, %v7159_v39  ;;  %v631_v57 = vcombine.low %v607_v47, %v623_v48 }
 0x333   :  { %v927_v41 = vcombine.low %v903_v31, %v919_v32  ;;  %v928_v51 = vcombine.high %v903_v31, %v919_v32  ;;  %v1227_v58 = vpack.c.bf16 %v563_v49, %v563_v49  ;;  %v910_v60 = vrot.slane %v896_v52, %v7159_v39 }
 0x334   :  { %v1248_v42 = vsel %vm1243_vm2, %v1235_v37, 0  ;;  %v926_v61 = vrot.slane %v912_v53, %v7159_v39  ;;  %v1340_v62 = vsel %vm1243_vm2, %v1237_v54, 0  ;;  %v861_v63 = vcombine.low %v842_v55, %v858_v56 }
 0x335   :  { %5901 = vmatpush3.bf16.xpose.msra.mxu1 %v1248_v42  ;;  %v1236_v46 = vpack.c.bf16 %v927_v41, %v927_v41  ;;  %v1238_v59 = vpack.c.bf16 %v928_v51, %v928_v51  ;;  %v1228_v1 = vpack.c.bf16 %v631_v57, %v631_v57  ;;  %v564_v2 = vcombine.high %v539_v38, %v555_v40  ;;  %v5797_v40 = vld [vmem:[#allocation2] sm:$0xf]  }
 0x336   :  { %5912 = vmatprep.subr.bf16.mxu1 %v6731_v0  ;;  %v532_v3 = vcombine.high %v7189_v25, %v7192_v26  ;;  %v548_v4 = vcombine.high %v7199_v35, %v7202_v36  ;;  %v929_v6 = vcombine.low %v910_v60, %v926_v61  ;;  %v1239_v7 = vpack.c.bf16 %v861_v63, %v861_v63 }
 0x337   :  { %v1294_v50 = vsel %vm1243_vm2, %v1236_v46, 0  ;;  %v1386_v5 = vsel %vm1243_vm2, %v1238_v59, 0  ;;  %v600_v8 = vcombine.high %v7179_v14, %v7184_v21  ;;  %v616_v11 = vcombine.high %v7221_v9, %v7224_v10 }
 0x338   :  { %5907 = vmatpush3.bf16.xpose.msra.mxu0 %v1294_v50  ;;  %v632_v25 = vcombine.high %v607_v47, %v623_v48  ;;  %v1229_v26 = vpack.c.bf16 %v564_v2, %v564_v2  ;;  %v546_v35 = vrot.slane %v532_v3, %v7159_v39  ;;  %v562_v36 = vrot.slane %v548_v4, %v7159_v39 }
 0x339   :  { %5918 = vmatprep.subr.bf16.mxu0 %v6731_v0  ;;  %v1240_v12 = vpack.c.bf16 %v929_v6, %v929_v6  ;;  %v1432_v19 = vsel %vm1243_vm2, %v1239_v7, 0  ;;  %v862_v20 = vcombine.high %v842_v55, %v858_v56  ;;  %v614_v14 = vrot.slane %v600_v8, %v7159_v39 }
 0x33a   :  { %v1230_v23 = vpack.c.bf16 %v632_v25, %v632_v25  ;;  %v630_v21 = vrot.slane %v616_v11, %v7159_v39  ;;  %v565_v9 = vcombine.low %v546_v35, %v562_v36  ;;  %v930_v24 = vcombine.high %v910_v60, %v926_v61 }
 0x33b   :  { %v1478_v10 = vsel %vm1243_vm2, %v1240_v12, 0  ;;  %v1241_v28 = vpack.c.bf16 %v862_v20, %v862_v20  ;;  %v566_v32 = vcombine.high %v546_v35, %v562_v36  ;;  %v5798_v41 = vunpack.c.0.s8 %v5797_v40 }
 0x33c   :  { %5903 = vmatmul.mubr.msk.bf16.vlgmr.msra.gmra.mrb[4].mxu1 %vm1243_vm2, %v1227_v58  ;;  %v633_v15 = vcombine.low %v614_v14, %v630_v21  ;;  %v1231_v22 = vpack.c.bf16 %v565_v9, %v565_v9  ;;  %v1242_v29 = vpack.c.bf16 %v930_v24, %v930_v24  ;;  %v634_v34 = vcombine.high %v614_v14, %v630_v21 }
 0x33d   :  { %5913 = vmatpush3.bf16.xpose.msra.mxu1 %v1340_v62  ;;  %5914 = vmatprep.mubr.msk.bf16.mxu1 %vm6732_vm0, %v6731_v0  ;;  %v1524_v30 = vsel %vm1243_vm2, %v1241_v28, 0  ;;  %v1233_v37 = vpack.c.bf16 %v566_v32, %v566_v32  ;;  %v5799_v42 = vunpack.c.1.s8 %v5797_v40  ;;  %v268_v43 = vcvt.s32.f32 %v5798_v41  ;;  %v7332_v40 = vpop.permute.xlu0 %933 }
 0x33e   :  { %5924 = vmatprep.subr.bf16.mxu1 %v6731_v0  ;;  %v1232_v31 = vpack.c.bf16 %v633_v15, %v633_v15  ;;  %v1570_v33 = vsel %vm1243_vm2, %v1242_v29, 0  ;;  %v1234_v38 = vpack.c.bf16 %v634_v34, %v634_v34 }
 0x33f   :  { %5909 = vmatmul.mubr.msk.bf16.vlgmr.msra.gmra.mrb[0].mxu0 %vm1243_vm2, %v1228_v1  ;;  %v269_v44 = vcvt.s32.f32 %v5799_v42  ;;  %vm270_vm3 = vcmp.gt.f32.partialorder %v268_v43, 0.0 }
 0x340   :  { %5919 = vmatpush3.bf16.xpose.msra.mxu0 %v1386_v5  ;;  %5920 = vmatprep.mubr.msk.bf16.mxu0 %vm6732_vm0, %v6731_v0  ;;  %v272_v45 = vsel %vm270_vm3, -1e+30, %v6731_v0 }
 0x341   :  { %5930 = vmatprep.subr.bf16.mxu0 %v6731_v0  ;;  %vm271_vm4 = vcmp.gt.f32.partialorder %v269_v44, 0.0 }
 0x342   :  { %v273_v49 = vsel %vm271_vm4, -1e+30, %v6731_v0 }
 0x344   :  { %5915 = vmatmul.mubr.msk.bf16.vlgmr.msra.gmra.mrb[8].mxu1 %vm1243_vm2, %v1229_v26 }
 0x345   :  { %5925 = vmatpush3.bf16.xpose.msra.mxu1 %v1432_v19  ;;  %5926 = vmatprep.mubr.msk.bf16.mxu1 %vm6732_vm0, %v6731_v0 }
 0x346   :  { %5936 = vmatprep.subr.bf16.mxu1 %v6731_v0 }
 0x347   :  { %5921 = vmatmul.mubr.msk.bf16.vlgmr.msra.gmra.mrb[4].mxu0 %vm1243_vm2, %v1230_v23 }
 0x348   :  { %5931 = vmatpush3.bf16.xpose.msra.mxu0 %v1478_v10  ;;  %5932 = vmatprep.mubr.msk.bf16.mxu0 %vm6732_vm0, %v6731_v0 }
 0x349   :  { %5942 = vmatprep.subr.bf16.mxu0 %v6731_v0 }
 0x34c   :  { %5927 = vmatmul.mubr.msk.bf16.vlgmr.msra.gmra.mrb[12].mxu1 %vm1243_vm2, %v1231_v22 }
 0x34d   :  { %5937 = vmatpush3.bf16.xpose.msra.mxu1 %v1524_v30  ;;  %5938 = vmatprep.mubr.msk.bf16.mxu1 %vm6732_vm0, %v6731_v0 }
 0x34e   :  { %5948 = vmatprep.subr.bf16.mxu1 %v6731_v0 }
 0x34f   :  { %5933 = vmatmul.mubr.msk.bf16.vlgmr.msra.gmra.mrb[8].mxu0 %vm1243_vm2, %v1232_v31 }
 0x350   :  { %5943 = vmatpush3.bf16.xpose.msra.mxu0 %v1570_v33  ;;  %5944 = vmatprep.mubr.msk.bf16.mxu0 %vm6732_vm0, %v6731_v0 }
 0x351   :  { %5954 = vmatprep.subr.bf16.mxu0 %v6731_v0 }
 0x354   :  { %5939 = vmatmul.mubr.msk.bf16.vlgmr.msra.gmra.mrb[16].mxu1 %vm1243_vm2, %v1233_v37  ;;  %v7328_v37 = vpop.permute.xlu1 %931 }
 0x355   :  { %5950 = vmatprep.mubr.msk.bf16.mxu1 %vm6732_vm0, %v6731_v0 }
 0x357   :  { %5945 = vmatmul.mubr.msk.bf16.vlgmr.msra.gmra.mrb[12].mxu0 %vm1243_vm2, %v1234_v38 }
 0x358   :  { %5956 = vmatprep.mubr.msk.bf16.mxu0 %vm6732_vm0, %v6731_v0  ;;  %v7330_v38 = vpop.permute.xlu1 %935 }
 0x35c   :  { %v7334_v41 = vpop.permute.xlu1 %937 }
 0x40f   :  { %v1284_v46 = vpop.f32.mrb[4].mxu1 }
 0x410   :  { %v7303_v47 = vadd.f32 %v1284_v46, %v272_v45  ;;  %v5904_v48 = vpop.f32.mrb[5].mxu1 }
 0x411   :  { %v1287_v50 = vpop.f32.mrb[6].mxu1 }
 0x412   :  { %v5905_v51 = vpop.f32.mrb[7].mxu1  ;;  %v1330_v52 = vpop.f32.mrb[0].mxu0  ;;  %v1612_v53 = vsel %vm1243_vm2, %v7303_v47, -inf }
 0x413   :  { %v1331_v54 = vadd.f32 %v1330_v52, %v273_v49  ;;  %1613 = vmax.xlane.f32.xlu0 %v1612_v53  ;;  %v5910_v55 = vpop.f32.mrb[1].mxu0 }
 0x414   :  { %v1333_v56 = vpop.f32.mrb[2].mxu0 }
 0x415   :  { %v5911_v57 = vpop.f32.mrb[3].mxu0  ;;  %v1615_v58 = vsel %vm1243_vm2, %v1331_v54, -inf }
 0x416   :  { %1616 = vmax.xlane.f32.xlu1 %v1615_v58 }
 0x417   :  { %v1376_v59 = vpop.f32.mrb[8].mxu1 }
 0x418   :  { %v7309_v60 = vadd.f32 %v1376_v59, %v272_v45  ;;  %v5916_v61 = vpop.f32.mrb[9].mxu1 }
 0x419   :  { %v1379_v62 = vpop.f32.mrb[10].mxu1 }
 0x41a   :  { %v5917_v63 = vpop.f32.mrb[11].mxu1  ;;  %v1422_v1 = vpop.f32.mrb[4].mxu0  ;;  %v1618_v2 = vsel %vm1243_vm2, %v7309_v60, -inf }
 0x41b   :  { %v7313_v3 = vadd.f32 %v1422_v1, %v273_v49  ;;  %1619 = vmax.xlane.f32.xlu0 %v1618_v2  ;;  %v5922_v4 = vpop.f32.mrb[5].mxu0 }
 0x41c   :  { %v1425_v5 = vpop.f32.mrb[6].mxu0 }
 0x41d   :  { %v5923_v6 = vpop.f32.mrb[7].mxu0  ;;  %v1621_v7 = vsel %vm1243_vm2, %v7313_v3, -inf }
 0x41f   :  { %1622 = vmax.xlane.f32.xlu0 %v1621_v7  ;;  %v1468_v8 = vpop.f32.mrb[12].mxu1 }
 0x420   :  { %v7317_v11 = vadd.f32 %v1468_v8, %v272_v45  ;;  %v5928_v25 = vpop.f32.mrb[13].mxu1 }
 0x421   :  { %v1471_v26 = vpop.f32.mrb[14].mxu1 }
 0x422   :  { %v5929_v35 = vpop.f32.mrb[15].mxu1  ;;  %v1514_v36 = vpop.f32.mrb[8].mxu0  ;;  %v1624_v12 = vsel %vm1243_vm2, %v7317_v11, -inf }
 0x423   :  { %v1515_v19 = vadd.f32 %v1514_v36, %v273_v49  ;;  %1625 = vmax.xlane.f32.xlu1 %v1624_v12  ;;  %v5934_v20 = vpop.f32.mrb[9].mxu0 }
 0x424   :  { %v1517_v23 = vpop.f32.mrb[10].mxu0 }
 0x425   :  { %v5935_v14 = vpop.f32.mrb[11].mxu0  ;;  %v1627_v21 = vsel %vm1243_vm2, %v1515_v19, -inf }
 0x426   :  { %1628 = vmax.xlane.f32.xlu0 %v1627_v21 }
 0x427   :  { %v1560_v9 = vpop.f32.mrb[16].mxu1 }
 0x428   :  { %v1561_v10 = vadd.f32 %v1560_v9, %v272_v45  ;;  %v5940_v24 = vpop.f32.mrb[17].mxu1 }
 0x429   :  { %v1563_v28 = vpop.f32.mrb[18].mxu1 }
 0x42a   :  { %v5941_v15 = vpop.f32.mrb[19].mxu1  ;;  %v1606_v22 = vpop.f32.mrb[12].mxu0  ;;  %v1630_v29 = vsel %vm1243_vm2, %v1561_v10, -inf }
 0x42b   :  { %v1607_v30 = vadd.f32 %v1606_v22, %v273_v49  ;;  %1631 = vmax.xlane.f32.xlu1 %v1630_v29  ;;  %v5946_v31 = vpop.f32.mrb[13].mxu0 }
 0x42c   :  { %v1609_v32 = vpop.f32.mrb[14].mxu0 }
 0x42d   :  { %v5947_v33 = vpop.f32.mrb[15].mxu0  ;;  %v1633_v34 = vsel %vm1243_vm2, %v1607_v30, -inf }
 0x42e   :  { %1634 = vmax.xlane.f32.xlu0 %v1633_v34 }
 0x43c   :  { %941 = vrot.lane.b32.xlu1 %v7130_v16, %s8353_s0 }
 0x444   :  { %939 = vrot.lane.b32.xlu0 %v7124_v13, %s8353_s0 }
 0x4a0   :  { %v1614_v42 = vpop.xlane.xlu0 %1613 }
 0x4a1   :  { %v1636_v43 = vsub.f32 %v7303_v47, %v1614_v42 }
 0x4a3   :  { %v1644_v44 = vmul.f32 1.442695, %v1636_v43  ;;  %v1617_v45 = vpop.xlane.xlu1 %1616 }
 0x4a4   :  { %v1637_v46 = vsub.f32 %v1331_v54, %v1617_v45 }
 0x4a5   :  { %6195 = vpow2.f32 %v1644_v44 }
 0x4a6   :  { %v1646_v48 = vmul.f32 1.442695, %v1637_v46 }
 0x4a8   :  { %6197 = vpow2.f32 %v1646_v48  ;;  %v1620_v47 = vpop.xlane.xlu0 %1619 }
 0x4a9   :  { %v1638_v55 = vsub.f32 %v7309_v60, %v1620_v47 }
 0x4ab   :  { %v1648_v58 = vmul.f32 1.442695, %v1638_v55 }
 0x4ac   :  { %v1623_v51 = vpop.xlane.xlu0 %1622 }
 0x4ad   :  { %v1639_v53 = vsub.f32 %v7313_v3, %v1623_v51 }
 0x4af   :  { %v7337_v16 = vpop.eup %6195  ;;  %v1650_v56 = vmul.f32 1.442695, %v1639_v53 }
 0x4b0   :  { %v1660_v13 = vsel %vm1243_vm2, %v7337_v16, 0.0  ;;  %v1626_v52 = vpop.xlane.xlu1 %1625 }
 0x4b1   :  { %1661 = vadd.xlane.f32.xlu1 %v1660_v13  ;;  %v1640_v59 = vsub.f32 %v7317_v11, %v1626_v52  ;;  %6199 = vpow2.f32 %v1650_v56 }
 0x4b2   :  { %v7341_v49 = vpop.eup %6197  ;;  %6201 = vpow2.f32 %v1648_v58 }
 0x4b3   :  { %v1663_v50 = vsel %vm1243_vm2, %v7341_v49, 0.0  ;;  %v1629_v61 = vpop.xlane.xlu0 %1628 }
 0x4b4   :  { %1664 = vadd.xlane.f32.xlu0 %v1663_v50  ;;  %v1641_v63 = vsub.f32 %v1515_v19, %v1629_v61 }
 0x4b6   :  { %v1654_v1 = vmul.f32 1.442695, %v1641_v63 }
 0x4b8   :  { %v1632_v54 = vpop.xlane.xlu1 %1631 }
 0x4b9   :  { %v1642_v57 = vsub.f32 %v1561_v10, %v1632_v54 }
 0x4bb   :  { %v1656_v62 = vmul.f32 1.442695, %v1642_v57  ;;  %v7352_v3 = vpop.eup %6199 }
 0x4bc   :  { %v7354_v4 = vpop.eup %6201  ;;  %v1669_v5 = vsel %vm1243_vm2, %v7352_v3, 0.0  ;;  %v942_v19 = vpop.permute.xlu1 %941 }
 0x4bd   :  { %6203 = vpow2.f32 %v1656_v62  ;;  %v1666_v7 = vsel %vm1243_vm2, %v7354_v4, 0.0  ;;  %v1023_v14 = vcombine.low %v7332_v40, %v942_v19  ;;  %v1024_v21 = vcombine.high %v7332_v40, %v942_v19 }
 0x4bf   :  { %v1031_v29 = vrot.slane %v1023_v14, %v7147_v27 }
 0x4c2   :  { %945 = vrot.lane.b32.xlu1 %v7138_v18, %s8353_s0  ;;  %v1652_v18 = vmul.f32 1.442695, %v1640_v59 }
 0x4c4   :  { %6205 = vpow2.f32 %v1652_v18 }
 0x4c5   :  { %6207 = vpow2.f32 %v1654_v1 }
 0x4c7   :  { %v7358_v6 = vpop.eup %6203 }
 0x4c8   :  { %v1678_v11 = vsel %vm1243_vm2, %v7358_v6, 0.0 }
 0x4ca   :  { %943 = vrot.lane.b32.xlu0 %v7132_v17, %s8353_s0  ;;  %v1635_v17 = vpop.xlane.xlu0 %1634  ;;  %s6739_s0 = smov 8  }
 0x4cb   :  { %v1643_v2 = vsub.f32 %v1607_v30, %v1635_v17  ;;  %v1038_v30 = vrot.slane %v1024_v21, %v7147_v27 }
 0x4cd   :  { %v1658_v60 = vmul.f32 1.442695, %v1643_v2 }
 0x4ce   :  { %v7362_v8 = vpop.eup %6205  ;;  %v940_v20 = vpop.permute.xlu0 %939 }
 0x4cf   :  { %6209 = vpow2.f32 %v1658_v60  ;;  %v1672_v25 = vsel %vm1243_vm2, %v7362_v8, 0.0  ;;  %v7368_v26 = vpop.eup %6207  ;;  %v955_v15 = vcombine.low %v7328_v37, %v940_v20  ;;  %v956_v22 = vcombine.high %v7328_v37, %v940_v20 }
 0x4d0   :  { %v1675_v35 = vsel %vm1243_vm2, %v7368_v26, 0.0 }
 0x4d1   :  { %v963_v45 = vrot.slane %v955_v15, %v7147_v27  ;;  %v970_v37 = vrot.slane %v956_v22, %v7147_v27 }
 0x4d9   :  { %v7372_v36 = vpop.eup %6209 }
 0x4da   :  { %v1681_v12 = vsel %vm1243_vm2, %v7372_v36, 0.0 }
 0x4e6   :  { %1670 = vadd.xlane.f32.xlu1 %v1669_v5 }
 0x4e9   :  { %1667 = vadd.xlane.f32.xlu0 %v1666_v7 }
 0x4ea   :  { %1679 = vadd.xlane.f32.xlu1 %v1678_v11 }
 0x4ed   :  { %1673 = vadd.xlane.f32.xlu0 %v1672_v25 }
 0x4f1   :  { %1676 = vadd.xlane.f32.xlu0 %v1675_v35 }
 0x4f5   :  { %1682 = vadd.xlane.f32.xlu0 %v1681_v12 }
 0x53e   :  { %v1662_v23 = vpop.xlane.xlu1 %1661 }
 0x53f   :  { %6211 = vrcp.f32 %v1662_v23 }
 0x541   :  { %v1665_v9 = vpop.xlane.xlu0 %1664 }
 0x542   :  { %6213 = vrcp.f32 %v1665_v9  ;;  %v946_v10 = vpop.permute.xlu1 %945 }
 0x543   :  { %v1039_v24 = vcombine.low %v7334_v41, %v946_v10  ;;  %v1040_v28 = vcombine.high %v7334_v41, %v946_v10 }
 0x545   :  { %v1047_v31 = vrot.slane %v1039_v24, %v7147_v27  ;;  %v1054_v32 = vrot.slane %v1040_v28, %v7147_v27  ;;  %v944_v33 = vpop.permute.xlu0 %943 }
 0x546   :  { %v971_v34 = vcombine.low %v7330_v38, %v944_v33  ;;  %v972_v40 = vcombine.high %v7330_v38, %v944_v33 }
 0x547   :  { %v1055_v42 = vcombine.low %v1031_v29, %v1047_v31  ;;  %v1056_v43 = vcombine.high %v1031_v29, %v1047_v31  ;;  %v1071_v41 = vcombine.low %v1038_v30, %v1054_v32  ;;  %v1072_v44 = vcombine.high %v1038_v30, %v1054_v32 }
 0x548   :  { %v979_v46 = vrot.slane %v971_v34, %v7147_v27  ;;  %v986_v48 = vrot.slane %v972_v40, %v7147_v27 }
 0x549   :  { %v6212_v13 = vpop.eup %6211  ;;  %v1063_v50 = vrot.slane %v1055_v42, %v7159_v39  ;;  %v1070_v47 = vrot.slane %v1056_v43, %v7159_v39  ;;  %v1079_v51 = vrot.slane %v1071_v41, %v7159_v39  ;;  %v1086_v38 = vrot.slane %v1072_v44, %v7159_v39 }
 0x54a   :  { %v1692_v52 = vmul.f32 %v6212_v13, %v7337_v16  ;;  %v987_v53 = vcombine.low %v963_v45, %v979_v46  ;;  %v988_v54 = vcombine.high %v963_v45, %v979_v46  ;;  %v1003_v55 = vcombine.low %v970_v37, %v986_v48 }
 0x54b   :  { %v1159_v56 = vcombine.low %v1063_v50, %v1070_v47  ;;  %v5701_v57 = vcombine.high %v1063_v50, %v1070_v47  ;;  %v1175_v58 = vcombine.low %v1079_v51, %v1086_v38  ;;  %v5702_v59 = vcombine.high %v1079_v51, %v1086_v38 }
 0x54c   :  { %v6214_v61 = vpop.eup %6213  ;;  %1700 = vst.msk [vmem:[#allocation26] sm:$0xff] %vm1243_vm2, %v1692_v52  ;;  %v995_v62 = vrot.slane %v987_v53, %v7159_v39  ;;  %v1002_v18 = vrot.slane %v988_v54, %v7159_v39  ;;  %v1004_v63 = vcombine.high %v970_v37, %v986_v48  ;;  %v1011_v17 = vrot.slane %v1003_v55, %v7159_v39 }
 0x54d   :  { %v1693_v1 = vmul.f32 %v6214_v61, %v7341_v49  ;;  %v1166_v16 = vrot.slane %v1159_v56, %v7147_v27  ;;  %v1174_v2 = vrot.slane %v5701_v57, %v7147_v27  ;;  %v1182_v60 = vrot.slane %v1175_v58, %v7147_v27 }
 0x54e   :  { %v1190_v5 = vrot.slane %v5702_v59, %v7147_v27  ;;  %v1018_v7 = vrot.slane %v1004_v63, %v7159_v39  ;;  %v1091_v11 = vcombine.low %v995_v62, %v1002_v18  ;;  %v5699_v25 = vcombine.high %v995_v62, %v1002_v18 }
 0x54f   :  { %1701 = vst.msk [vmem:[#allocation26 + $0x8] sm:$0xff] %vm1243_vm2, %v1693_v1  ;;  %v1191_v35 = vcombine.low %v1166_v16, %v1174_v2  ;;  %v1709_v43 = vpack.c.bf16 %v1693_v1, %v1693_v1  ;;  %v1708_v37 = vpack.c.bf16 %v1692_v52, %v1692_v52  ;;  %v1192_v13 = vcombine.high %v1166_v16, %v1174_v2 }
 0x550   :  { %v1098_v12 = vrot.slane %v1091_v11, %v7147_v27  ;;  %v1106_v19 = vrot.slane %v5699_v25, %v7147_v27  ;;  %v1107_v49 = vcombine.low %v1011_v17, %v1018_v7  ;;  %v5700_v20 = vcombine.high %v1011_v17, %v1018_v7 }
 0x551   :  { %v1199_v23 = vrot.slane %v1191_v35, %v7159_v39  ;;  %v1207_v14 = vcombine.low %v1182_v60, %v1190_v5  ;;  %v1208_v50 = vcombine.high %v1182_v60, %v1190_v5  ;;  %v1206_v53 = vrot.slane %v1192_v13, %v7159_v39 }
 0x552   :  { %v1114_v21 = vrot.slane %v1107_v49, %v7147_v27  ;;  %v1122_v9 = vrot.slane %v5700_v20, %v7147_v27  ;;  %v1123_v10 = vcombine.low %v1098_v12, %v1106_v19  ;;  %v1124_v51 = vcombine.high %v1098_v12, %v1106_v19 }
 0x553   :  { %v1215_v24 = vrot.slane %v1207_v14, %v7159_v39  ;;  %v1222_v54 = vrot.slane %v1208_v50, %v7159_v39 }
 0x554   :  { %v1131_v28 = vrot.slane %v1123_v10, %v7159_v39  ;;  %v1139_v15 = vcombine.low %v1114_v21, %v1122_v9  ;;  %v1140_v38 = vcombine.high %v1114_v21, %v1122_v9  ;;  %v1138_v56 = vrot.slane %v1124_v51, %v7159_v39 }
 0x555   :  { %v1223_v22 = vcombine.low %v1199_v23, %v1215_v24  ;;  %v1224_v29 = vcombine.high %v1199_v23, %v1215_v24  ;;  %v1225_v58 = vcombine.low %v1206_v53, %v1222_v54  ;;  %v1226_v12 = vcombine.high %v1206_v53, %v1222_v54 }
 0x556   :  { %v1147_v30 = vrot.slane %v1139_v15, %v7159_v39  ;;  %v1154_v57 = vrot.slane %v1140_v38, %v7159_v39 }
 0x557   :  { %v1717_v31 = vpack.c.bf16 %v1223_v22, %v1223_v22  ;;  %v1719_v40 = vpack.c.bf16 %v1224_v29, %v1224_v29  ;;  %v1721_v63 = vpack.c.bf16 %v1225_v58, %v1225_v58  ;;  %v1723_v23 = vpack.c.bf16 %v1226_v12, %v1226_v12 }
 0x558   :  { %v1155_v32 = vcombine.low %v1131_v28, %v1147_v30  ;;  %v1156_v33 = vcombine.high %v1131_v28, %v1147_v30  ;;  %v1157_v62 = vcombine.low %v1138_v56, %v1154_v57  ;;  %v1158_v35 = vcombine.high %v1138_v56, %v1154_v57 }
 0x559   :  { %v1775_v34 = vsel %vm1727_vm5, %v1717_v31, 0  ;;  %v1867_v45 = vsel %vm1727_vm5, %v1719_v40, 0  ;;  %v1959_v11 = vsel %vm1727_vm5, %v1721_v63, 0  ;;  %v2051_v24 = vsel %vm1727_vm5, %v1723_v23, 0 }
 0x55a   :  { %5955 = vmatpush3.bf16.msra.mxu0 %v1775_v34  ;;  %v1716_v42 = vpack.c.bf16 %v1155_v32, %v1155_v32  ;;  %v1718_v44 = vpack.c.bf16 %v1156_v33, %v1156_v33  ;;  %v1720_v5 = vpack.c.bf16 %v1157_v62, %v1157_v62  ;;  %v1722_v20 = vpack.c.bf16 %v1158_v35, %v1158_v35 }
 0x55b   :  { %5966 = vmatprep.subr.bf16.mxu0 %v6731_v0 }
 0x55c   :  { %v1729_v41 = vsel %vm1727_vm5, %v1716_v42, 0  ;;  %v1821_v46 = vsel %vm1727_vm5, %v1718_v44, 0  ;;  %v2005_v10 = vsel %vm1727_vm5, %v1722_v20, 0 }
 0x55d   :  { %5957 = vmatmul.mubr.msk.bf16.vlgmr.msra.gmra.mrb[16].mxu0 %vm1243_vm2, %v1709_v43  ;;  %5949 = vmatpush3.bf16.msra.mxu1 %v1729_v41 }
 0x55e   :  { %5967 = vmatpush3.bf16.msra.mxu0 %v1867_v45  ;;  %5960 = vmatprep.subr.bf16.mxu1 %v6731_v0 }
 0x55f   :  { %5968 = vmatprep.mubr.msk.bf16.mxu0 %vm6732_vm0, %v6731_v0  ;;  %5978 = vmatprep.subr.bf16.mxu0 %v6731_v0 }
 0x560   :  { %5951 = vmatmul.mubr.msk.bf16.vlgmr.msra.gmra.mrb[20].mxu1 %vm1243_vm2, %v1708_v37 }
 0x561   :  { %5961 = vmatpush3.bf16.msra.mxu1 %v1821_v46  ;;  %5962 = vmatprep.mubr.msk.bf16.mxu1 %vm6732_vm0, %v6731_v0 }
 0x562   :  { %5972 = vmatprep.subr.bf16.mxu1 %v6731_v0 }
 0x573   :  { %v1671_v48 = vpop.xlane.xlu1 %1670 }
 0x574   :  { %6215 = vrcp.f32 %v1671_v48 }
 0x576   :  { %v1668_v47 = vpop.xlane.xlu0 %1667 }
 0x577   :  { %6217 = vrcp.f32 %v1668_v47  ;;  %v1680_v52 = vpop.xlane.xlu1 %1679 }
 0x578   :  { %6219 = vrcp.f32 %v1680_v52 }
 0x57a   :  { %v1674_v55 = vpop.xlane.xlu0 %1673 }
 0x57b   :  { %6221 = vrcp.f32 %v1674_v55 }
 0x57e   :  { %v6216_v59 = vpop.eup %6215  ;;  %v1677_v61 = vpop.xlane.xlu0 %1676 }
 0x57f   :  { %v1695_v18 = vmul.f32 %v6216_v59, %v7352_v3  ;;  %6223 = vrcp.f32 %v1677_v61 }
 0x581   :  { %v6218_v17 = vpop.eup %6217  ;;  %1703 = vst.msk [vmem:[#allocation26 + $0x18] sm:$0xff] %vm1243_vm2, %v1695_v18  ;;  %v1711_v1 = vpack.c.bf16 %v1695_v18, %v1695_v18 }
 0x582   :  { %v6220_v16 = vpop.eup %6219  ;;  %v1694_v2 = vmul.f32 %v6218_v17, %v7354_v4  ;;  %v1683_v60 = vpop.xlane.xlu0 %1682 }
 0x583   :  { %v1698_v7 = vmul.f32 %v6220_v16, %v7358_v6  ;;  %6225 = vrcp.f32 %v1683_v60  ;;  %5969 = vmatmul.mubr.msk.bf16.vlgmr.msra.gmra.mrb[20].mxu0 %vm1243_vm2, %v1711_v1  ;;  %v1913_v6 = vsel %vm1727_vm5, %v1720_v5, 0 }
 0x584   :  { %1702 = vst.msk [vmem:[#allocation26 + $0x10] sm:$0xff] %vm1243_vm2, %v1694_v2  ;;  %5979 = vmatpush3.bf16.msra.mxu0 %v1959_v11  ;;  %v1710_v3 = vpack.c.bf16 %v1694_v2, %v1694_v2  ;;  %5980 = vmatprep.mubr.msk.bf16.mxu0 %vm6732_vm0, %v6731_v0 }
 0x585   :  { %v6222_v25 = vpop.eup %6221  ;;  %1706 = vst.msk [vmem:[#allocation26 + $0x30] sm:$0xff] %vm1243_vm2, %v1698_v7  ;;  %5990 = vmatprep.subr.bf16.mxu0 %v6731_v0 }
 0x586   :  { %v1696_v4 = vmul.f32 %v6222_v25, %v7362_v8  ;;  %5963 = vmatmul.mubr.msk.bf16.vlgmr.msra.gmra.mrb[24].mxu1 %vm1243_vm2, %v1710_v3 }
 0x587   :  { %5973 = vmatpush3.bf16.msra.mxu1 %v1913_v6  ;;  %5974 = vmatprep.mubr.msk.bf16.mxu1 %vm6732_vm0, %v6731_v0 }
 0x588   :  { %1704 = vst.msk [vmem:[#allocation26 + $0x20] sm:$0xff] %vm1243_vm2, %v1696_v4  ;;  %5984 = vmatprep.subr.bf16.mxu1 %v6731_v0  ;;  %v1712_v8 = vpack.c.bf16 %v1696_v4, %v1696_v4 }
 0x589   :  { %v6224_v19 = vpop.eup %6223 }
 0x58a   :  { %v1697_v49 = vmul.f32 %v6224_v19, %v7368_v26  ;;  %v1714_v26 = vpack.c.bf16 %v1698_v7, %v1698_v7 }
 0x58c   :  { %1705 = vst.msk [vmem:[#allocation26 + $0x28] sm:$0xff] %vm1243_vm2, %v1697_v49  ;;  %v1713_v14 = vpack.c.bf16 %v1697_v49, %v1697_v49 }
 0x58d   :  { %v6226_v21 = vpop.eup %6225 }
 0x58e   :  { %v1699_v9 = vmul.f32 %v6226_v21, %v7372_v36  ;;  %5975 = vmatmul.mubr.msk.bf16.vlgmr.msra.gmra.mrb[28].mxu1 %vm1243_vm2, %v1712_v8  ;;  %5981 = vmatmul.mubr.msk.bf16.vlgmr.msra.gmra.mrb[24].mxu0 %vm1243_vm2, %v1713_v14 }
 0x58f   :  { %5985 = vmatpush3.bf16.msra.mxu1 %v2005_v10  ;;  %5991 = vmatpush3.bf16.msra.mxu0 %v2051_v24 }
 0x590   :  { %1707 = vst.msk [vmem:[#allocation26 + $0x38] sm:$0xff] %vm1243_vm2, %v1699_v9  ;;  %5986 = vmatprep.mubr.msk.bf16.mxu1 %vm6732_vm0, %v6731_v0  ;;  %5992 = vmatprep.mubr.msk.bf16.mxu0 %vm6732_vm0, %v6731_v0  ;;  %v1715_v36 = vpack.c.bf16 %v1699_v9, %v1699_v9 }
 0x591   :  { %5996 = vmatprep.subr.bf16.mxu1 %v6731_v0  ;;  %6004 = vmatprep.subr.bf16.mxu0 %v6731_v0 }
 0x596   :  { %5987 = vmatmul.mubr.msk.bf16.vlgmr.msra.gmra.mrb[32].mxu1 %vm1243_vm2, %v1714_v26  ;;  %5993 = vmatmul.mubr.msk.bf16.vlgmr.msra.gmra.mrb[28].mxu0 %vm1243_vm2, %v1715_v36 }
 0x597   :  { %6000 = vmatprep.mubr.msk.bf16.mxu1 %vm6732_vm0, %v6731_v0  ;;  %6008 = vmatprep.mubr.msk.bf16.mxu0 %vm6732_vm0, %v6731_v0 }
 0x630   :  { %v1811_v28 = vpop.f32.mrb[16].mxu0 }
 0x631   :  { %v5958_v15 = vpop.f32.mrb[17].mxu0 }
 0x632   :  { %v1814_v22 = vpop.f32.mrb[18].mxu0 }
 0x633   :  { %v5959_v29 = vpop.f32.mrb[19].mxu0  ;;  %v1765_v30 = vpop.f32.mrb[20].mxu1 }
 0x634   :  { %v5952_v31 = vpop.f32.mrb[21].mxu1 }
 0x635   :  { %v1768_v32 = vpop.f32.mrb[22].mxu1 }
 0x636   :  { %v5953_v33 = vpop.f32.mrb[23].mxu1 }
 0x656   :  { %v1903_v34 = vpop.f32.mrb[20].mxu0 }
 0x657   :  { %v5970_v40 = vpop.f32.mrb[21].mxu0 }
 0x658   :  { %v1906_v42 = vpop.f32.mrb[22].mxu0 }
 0x659   :  { %v5971_v43 = vpop.f32.mrb[23].mxu0  ;;  %v1857_v41 = vpop.f32.mrb[24].mxu1 }
 0x65a   :  { %v5964_v44 = vpop.f32.mrb[25].mxu1  ;;  %v6181_v43 = vld [vmem:[#allocation10] sm:$0xff]  }
 0x65b   :  { %v1860_v45 = vpop.f32.mrb[26].mxu1  ;;  %5997 = vmatpush3.bf16.msra.mxu1 %v6181_v43  ;;  %v6184_v43 = vld [vmem:[#allocation17 + $0x8] sm:$0xff]  }
 0x65c   :  { %v5965_v37 = vpop.f32.mrb[27].mxu1  ;;  %5998 = vmatprep.subr.bf16.mxu1 %v6731_v0 }
 0x661   :  { %v1949_v46 = vpop.f32.mrb[28].mxu1  ;;  %v1995_v48 = vpop.f32.mrb[24].mxu0 }
 0x662   :  { %v2093_v13 = vcombine.low %v1765_v30, %v1949_v46  ;;  %v2094_v50 = vcombine.high %v1765_v30, %v1949_v46  ;;  %v2161_v47 = vcombine.low %v1811_v28, %v1995_v48  ;;  %v2162_v51 = vcombine.high %v1811_v28, %v1995_v48  ;;  %v5976_v38 = vpop.f32.mrb[29].mxu1  ;;  %v5982_v52 = vpop.f32.mrb[25].mxu0 }
 0x663   :  { %v1952_v53 = vpop.f32.mrb[30].mxu1  ;;  %v1998_v54 = vpop.f32.mrb[26].mxu0 }
 0x664   :  { %v5977_v55 = vpop.f32.mrb[31].mxu1  ;;  %v5983_v56 = vpop.f32.mrb[27].mxu0  ;;  %v2101_v1 = vrot.slane %v2093_v13, %v7147_v27  ;;  %v2108_v16 = vrot.slane %v2094_v50, %v7147_v27  ;;  %v2169_v6 = vrot.slane %v2161_v47, %v7147_v27  ;;  %v2176_v35 = vrot.slane %v2162_v51, %v7147_v27 }
 0x669   :  { %v2041_v57 = vpop.f32.mrb[32].mxu1  ;;  %v2087_v58 = vpop.f32.mrb[28].mxu0 }
 0x66a   :  { %v2109_v59 = vcombine.low %v1857_v41, %v2041_v57  ;;  %v2110_v61 = vcombine.high %v1857_v41, %v2041_v57  ;;  %v2177_v62 = vcombine.low %v1903_v34, %v2087_v58  ;;  %v2178_v18 = vcombine.high %v1903_v34, %v2087_v58  ;;  %v5988_v63 = vpop.f32.mrb[33].mxu1  ;;  %v5994_v17 = vpop.f32.mrb[29].mxu0  ;;  %v6182_v57 = vld [vmem:[#allocation10 + $0x8] sm:$0xff]  }
 0x66b   :  { %v2044_v2 = vpop.f32.mrb[34].mxu1  ;;  %v2090_v60 = vpop.f32.mrb[30].mxu0  ;;  %5999 = vmatpush3.bf16.msra.mxu1 %v6182_v57  ;;  %v6185_v57 = vld [vmem:[%s8359_s10] sm:$0xff]  }
 0x66c   :  { %v2117_v5 = vrot.slane %v2109_v59, %v7147_v27  ;;  %v2124_v7 = vrot.slane %v2110_v61, %v7147_v27  ;;  %v2185_v11 = vrot.slane %v2177_v62, %v7147_v27  ;;  %v2192_v3 = vrot.slane %v2178_v18, %v7147_v27  ;;  %v5989_v25 = vpop.f32.mrb[35].mxu1  ;;  %v5995_v4 = vpop.f32.mrb[31].mxu0  ;;  %6005 = vmatpush3.bf16.msra.mxu0 %v6185_v57 }
 0x66d   :  { %6006 = vmatprep.subr.bf16.mxu0 %v6731_v0 }
 0x66e   :  { %v2125_v12 = vcombine.low %v2101_v1, %v2117_v5  ;;  %v2126_v19 = vcombine.high %v2101_v1, %v2117_v5  ;;  %v2141_v49 = vcombine.low %v2108_v16, %v2124_v7  ;;  %v2142_v20 = vcombine.high %v2108_v16, %v2124_v7 }
 0x66f   :  { %v2193_v23 = vcombine.low %v2169_v6, %v2185_v11  ;;  %v2194_v8 = vcombine.high %v2169_v6, %v2185_v11  ;;  %v2209_v14 = vcombine.low %v2176_v35, %v2192_v3  ;;  %v2210_v21 = vcombine.high %v2176_v35, %v2192_v3 }
 0x670   :  { %v2133_v9 = vrot.slane %v2125_v12, %v7159_v39  ;;  %v2140_v10 = vrot.slane %v2126_v19, %v7159_v39  ;;  %v2149_v24 = vrot.slane %v2141_v49, %v7159_v39  ;;  %v2156_v26 = vrot.slane %v2142_v20, %v7159_v39 }
 0x671   :  { %v2201_v36 = vrot.slane %v2193_v23, %v7159_v39  ;;  %v2208_v28 = vrot.slane %v2194_v8, %v7159_v39  ;;  %v2217_v15 = vrot.slane %v2209_v14, %v7159_v39  ;;  %v2224_v22 = vrot.slane %v2210_v21, %v7159_v39 }
 0x672   :  { %v2229_v29 = vcombine.low %v2133_v9, %v2140_v10  ;;  %v5719_v30 = vcombine.high %v2133_v9, %v2140_v10  ;;  %v2245_v31 = vcombine.low %v2149_v24, %v2156_v26  ;;  %v5720_v32 = vcombine.high %v2149_v24, %v2156_v26  ;;  %v5723_v24 = vld [vmem:[#allocation11] ss:$0 sm:$0xff] }
 0x673   :  { %v2297_v33 = vcombine.low %v2201_v36, %v2208_v28  ;;  %v5721_v34 = vcombine.high %v2201_v36, %v2208_v28  ;;  %v2313_v40 = vcombine.low %v2217_v15, %v2224_v22  ;;  %v5722_v42 = vcombine.high %v2217_v15, %v2224_v22 }
 0x674   :  { %v2236_v41 = vrot.slane %v2229_v29, %v7147_v27  ;;  %v2244_v44 = vrot.slane %v5719_v30, %v7147_v27  ;;  %v2252_v45 = vrot.slane %v2245_v31, %v7147_v27  ;;  %v2260_v37 = vrot.slane %v5720_v32, %v7147_v27  ;;  %v6271_v30 = vld [vmem:[%s8357_s4] sm:$0xff] }
 0x675   :  { %v2304_v46 = vrot.slane %v2297_v33, %v7147_v27  ;;  %v2312_v48 = vrot.slane %v5721_v34, %v7147_v27  ;;  %v2320_v13 = vrot.slane %v2313_v40, %v7147_v27  ;;  %v2328_v50 = vrot.slane %v5722_v42, %v7147_v27  ;;  %v6272_v33 = vld [vmem:[%s8357_s4 + $0x8] sm:$0xff]  ;;  %v6183_v42 = vld [vmem:[#allocation17] sm:$0xff]  }
 0x676   :  { %v2261_v47 = vcombine.low %v2236_v41, %v2244_v44  ;;  %v2277_v51 = vcombine.low %v2252_v45, %v2260_v37  ;;  %v2262_v38 = vcombine.high %v2236_v41, %v2244_v44  ;;  %v2278_v52 = vcombine.high %v2252_v45, %v2260_v37  ;;  %6012 = vmatprep.subr.bf16.mxu1 %v6183_v42  ;;  %v260_v41 = vld [vmem:[%s8358_s11] sm:$0xff]  ;;  %v261_v44 = vld [vmem:[%s8358_s11 + $0x8] sm:$0xff]  ;;  %v262_v45 = vld [vmem:[%s8358_s11 + $0x10] sm:$0xff] }
 0x677   :  { %v2329_v53 = vcombine.low %v2304_v46, %v2312_v48  ;;  %v2345_v54 = vcombine.low %v2320_v13, %v2328_v50  ;;  %v2330_v55 = vcombine.high %v2304_v46, %v2312_v48  ;;  %v2346_v56 = vcombine.high %v2320_v13, %v2328_v50  ;;  %v263_v46 = vld [vmem:[%s8358_s11 + $0x18] sm:$0xff] }
 0x678   :  { %v2269_v58 = vrot.slane %v2261_v47, %v7159_v39  ;;  %v2285_v59 = vrot.slane %v2277_v51, %v7159_v39  ;;  %v2276_v61 = vrot.slane %v2262_v38, %v7159_v39  ;;  %v2292_v62 = vrot.slane %v2278_v52, %v7159_v39 }
 0x679   :  { %v2337_v18 = vrot.slane %v2329_v53, %v7159_v39  ;;  %v2353_v63 = vrot.slane %v2345_v54, %v7159_v39  ;;  %v2344_v17 = vrot.slane %v2330_v55, %v7159_v39  ;;  %v2360_v1 = vrot.slane %v2346_v56, %v7159_v39 }
 0x67a   :  { %v2294_v16 = vcombine.high %v2269_v58, %v2285_v59  ;;  %v2296_v2 = vcombine.high %v2276_v61, %v2292_v62  ;;  %v2295_v60 = vcombine.low %v2276_v61, %v2292_v62  ;;  %v2293_v5 = vcombine.low %v2269_v58, %v2285_v59  ;;  %v6186_v58 = vld [vmem:[%s8359_s10 + $0x8] sm:$0xff]   ;;  %v5733_v59 = vld [vmem:[#allocation19] ss:$0 sm:$0xff]  ;;  %s6743_s10 = smov [#allocation29]  }
 0x67b   :  { %v2362_v7 = vcombine.high %v2337_v18, %v2353_v63  ;;  %v2363_v11 = vcombine.low %v2344_v17, %v2360_v1  ;;  %v2364_v3 = vcombine.high %v2344_v17, %v2360_v1  ;;  %v2361_v25 = vcombine.low %v2337_v18, %v2353_v63  ;;  %6007 = vmatpush3.bf16.msra.mxu0 %v6186_v58  ;;  %s5642_s23 = sshll.u32 %s6743_s10, 4  ;;  %s5643_s23 = int_to_ptr.vmem [resolvable:$true] %s5642_s23 }
 0x67c   :  { %2367 = vrot.lane.b32.xlu1 %v2294_v16, %s6739_s0  ;;  %v2592_v37 = vpack.c.bf16 %v261_v44, %v260_v41  ;;  %v2593_v48 = vpack.c.bf16 %v263_v46, %v262_v45  ;;  %6020 = vmatprep.subr.bf16.mxu0 %v6731_v0 }
 0x67d   :  { %2369 = vrot.lane.b32.xlu0 %v2362_v7, %s6739_s0 }
 0x680   :  { %2375 = vrot.lane.b32.xlu1 %v2295_v60, %s6740_s30 }
 0x681   :  { %2383 = vrot.lane.b32.xlu0 %v2296_v2, %s6741_s3 }
 0x684   :  { %2377 = vrot.lane.b32.xlu1 %v2363_v11, %s6740_s30 }
 0x688   :  { %2385 = vrot.lane.b32.xlu1 %v2364_v3, %s6741_s3 }
 0x6ee   :  { %v2368_v4 = vpop.permute.xlu1 %2367 }
 0x6ef   :  { %v2370_v6 = vpop.permute.xlu0 %2369  ;;  %v2389_v35 = vsel %vm1243_vm2, %v2293_v5, %v2368_v4 }
 0x6f0   :  { %v2390_v8 = vsel %vm1243_vm2, %v2361_v25, %v2370_v6 }
 0x6f2   :  { %v2376_v12 = vpop.permute.xlu1 %2375 }
 0x6f3   :  { %v2384_v19 = vpop.permute.xlu0 %2383  ;;  %v2392_v49 = vsel %vm2391_vm6, %v2389_v35, %v2376_v12  ;;  %v5727_v35 = vld [vmem:[#allocation13] ss:$0 sm:$0xff] }
 0x6f4   :  { %v2395_v20 = vsel %vm2394_vm7, %v2392_v49, %v2384_v19 }
 0x6f5   :  { %2397 = vst.msk [vmem:[#allocation29] sm:$0xff] %vm298_vm1, %v2395_v20 }
 0x6f6   :  { %v2378_v23 = vpop.permute.xlu1 %2377 }
 0x6f7   :  { %v2393_v14 = vsel %vm2391_vm6, %v2390_v8, %v2378_v23 }
 0x6fa   :  { %v2386_v21 = vpop.permute.xlu1 %2385 }
 0x6fb   :  { %v2396_v9 = vsel %vm2394_vm7, %v2393_v14, %v2386_v21 }
 0x6fc   :  { %2398 = vst.msk [vmem:[#allocation29 + $0x8] sm:$0xff] %vm298_vm1, %v2396_v9  ;;  %v2399_v10 = vpack.c.bf16 %v2396_v9, %v2395_v20  ;;  %v5728_v20 = vld [vmem:[#allocation14] ss:$0 sm:$0xff] }
 0x6fe   :  { %6001 = vmatmul.mubr.msk.bf16.vlgmr.msra.gmra.mrb[36].mxu1 %vm298_vm1, %v2399_v10 }
 0x6ff   :  { %6013 = vmatpush3.bf16.msra.mxu1 %v6183_v42  ;;  %6016 = vmatprep.mubr.msk.bf16.mxu1 %vm298_vm1, %v2592_v37 }
 0x700   :  { %6014 = vmatprep.subr.bf16.mxu1 %v6184_v43 }
 0x703   :  { %6015 = vmatpush3.bf16.msra.mxu1 %v6184_v43 }
 0x704   :  { %6026 = vmatprep.subr.bf16.mxu1 %v6731_v0 }
 0x706   :  { %6017 = vmatmul.mubr.msk.bf16.vlgmr.msra.gmra.mrb[40].mxu1 %vm298_vm1, %v2593_v48 }
 0x707   :  { %6028 = vmatprep.mubr.msk.bf16.mxu1 %vm6732_vm0, %v6731_v0 }
 0x7d1   :  { %v2460_v26 = vpop.f32.mrb[36].mxu1 }
 0x7d2   :  { %v2461_v36 = vadd.f32 %v5723_v24, %v2460_v26  ;;  %v6002_v28 = vpop.f32.mrb[37].mxu1 }
 0x7d3   :  { %v2463_v15 = vpop.f32.mrb[38].mxu1 }
 0x7d4   :  { %v2464_v22 = vadd.f32 %v5723_v24, %v2463_v15  ;;  %v6003_v29 = vpop.f32.mrb[39].mxu1  ;;  %v2467_v31 = vadd.f32 %v6271_v30, %v2461_v36 }
 0x7d6   :  { %v2471_v32 = vsel %vm298_vm1, %v2467_v31, 0.0  ;;  %v2468_v34 = vadd.f32 %v6272_v33, %v2464_v22 }
 0x7d7   :  { %2472 = vadd.xlane.f32.xlu0 %v2471_v32 }
 0x7d8   :  { %v2474_v40 = vsel %vm298_vm1, %v2468_v34, 0.0 }
 0x7d9   :  { %2475 = vadd.xlane.f32.xlu1 %v2474_v40  ;;  %v6018_v61 = vpop.f32.mrb[40].mxu1 }
 0x7da   :  { %v2657_v62 = vpop.f32.mrb[41].mxu1  ;;  %v7557_v1 = vadd.f32 %v6018_v61, %v5733_v59 }
 0x7db   :  { %v7555_v18 = vadd.f32 %v5733_v59, %v2657_v62  ;;  %v6019_v63 = vpop.f32.mrb[42].mxu1 }
 0x7dc   :  { %v2660_v17 = vpop.f32.mrb[43].mxu1  ;;  %v7565_v2 = vadd.f32 %v6019_v63, %v5733_v59 }
 0x7dd   :  { %v7561_v16 = vadd.f32 %v5733_v59, %v2660_v17 }
 0x7ea   :  { %2968 = vrot.lane.b32.xlu1 %v7555_v18, %s6734_s7 }
 0x7ee   :  { %2972 = vrot.lane.b32.xlu1 %v7557_v1, %s6734_s7 }
 0x7f2   :  { %2974 = vrot.lane.b32.xlu1 %v7565_v2, %s6734_s7 }
 0x7f6   :  { %2982 = vrot.lane.b32.xlu1 %v7561_v16, %s6733_s13 }
 0x7fa   :  { %2986 = vrot.lane.b32.xlu1 %v7565_v2, %s6733_s13 }
 0x7fe   :  { %2994 = vrot.lane.b32.xlu1 %v7561_v16, %s6735_s1 }
 0x802   :  { %2998 = vrot.lane.b32.xlu1 %v7565_v2, %s6735_s1 }
 0x864   :  { %v2473_v13 = vpop.xlane.xlu0 %2472 }
 0x865   :  { %v2478_v50 = vmul.f32 0.03125, %v2473_v13 }
 0x866   :  { %v2476_v47 = vpop.xlane.xlu1 %2475 }
 0x867   :  { %v2480_v51 = vsub.f32 %v2467_v31, %v2478_v50  ;;  %v2479_v38 = vmul.f32 0.03125, %v2476_v47 }
 0x869   :  { %v2481_v52 = vsub.f32 %v2468_v34, %v2479_v38  ;;  %v2482_v53 = vmul.f32 %v2480_v51, %v2480_v51 }
 0x86a   :  { %v7596_v9 = vpop.permute.xlu1 %2968 }
 0x86b   :  { %v2484_v54 = vsel %vm298_vm1, %v2482_v53, 0.0  ;;  %v2483_v55 = vmul.f32 %v2481_v52, %v2481_v52 }
 0x86c   :  { %2485 = vadd.xlane.f32.xlu0 %v2484_v54 }
 0x86d   :  { %v2487_v56 = vsel %vm298_vm1, %v2483_v55, 0.0 }
 0x86e   :  { %v7600_v24 = vpop.permute.xlu1 %2972 }
 0x870   :  { %2488 = vadd.xlane.f32.xlu0 %v2487_v56 }
 0x872   :  { %v7604_v36 = vpop.permute.xlu1 %2974 }
 0x876   :  { %v7612_v29 = vpop.permute.xlu1 %2982 }
 0x877   :  { %v3072_v30 = vcombine.low %v7561_v16, %v7612_v29  ;;  %v3073_v31 = vcombine.high %v7561_v16, %v7612_v29 }
 0x879   :  { %v3080_v13 = vrot.slane %v3072_v30, %v7147_v27  ;;  %v3087_v50 = vrot.slane %v3073_v31, %v7147_v27 }
 0x87a   :  { %v7630_v44 = vpop.permute.xlu1 %2986 }
 0x87b   :  { %v3208_v45 = vcombine.low %v7565_v2, %v7630_v44  ;;  %v3209_v37 = vcombine.high %v7565_v2, %v7630_v44 }
 0x87d   :  { %v7648_v53 = vrot.slane %v3209_v37, %v7147_v27 }
 0x87e   :  { %v7650_v58 = vpop.permute.xlu1 %2994 }
 0x886   :  { %2970 = vrot.lane.b32.xlu0 %v7561_v16, %s6734_s7 }
 0x88a   :  { %2980 = vrot.lane.b32.xlu0 %v7555_v18, %s6733_s13 }
 0x88e   :  { %2984 = vrot.lane.b32.xlu0 %v7557_v1, %s6733_s13 }
 0x892   :  { %2992 = vrot.lane.b32.xlu0 %v7555_v18, %s6735_s1 }
 0x896   :  { %2996 = vrot.lane.b32.xlu0 %v7557_v1, %s6735_s1 }
 0x8f9   :  { %v2486_v60 = vpop.xlane.xlu0 %2485 }
 0x8fa   :  { %v2490_v5 = vmul.f32 0.03125, %v2486_v60 }
 0x8fc   :  { %v2492_v7 = vadd.f32 1e-05, %v2490_v5 }
 0x8fd   :  { %v2489_v11 = vpop.xlane.xlu0 %2488 }
 0x8fe   :  { %6227 = vrsqrt.f32 %v2492_v7  ;;  %v2491_v3 = vmul.f32 0.03125, %v2489_v11 }
 0x900   :  { %v2493_v25 = vadd.f32 1e-05, %v2491_v3 }
 0x901   :  { %v7598_v10 = vpop.permute.xlu0 %2970 }
 0x902   :  { %6229 = vrsqrt.f32 %v2493_v25  ;;  %v3088_v17 = vcombine.low %v7598_v10, %v7650_v58  ;;  %v3089_v60 = vcombine.high %v7598_v10, %v7650_v58 }
 0x905   :  { %v7602_v26 = vpop.permute.xlu0 %2980 }
 0x906   :  { %v3004_v15 = vcombine.low %v7555_v18, %v7602_v26  ;;  %v3005_v22 = vcombine.high %v7555_v18, %v7602_v26 }
 0x908   :  { %v6228_v4 = vpop.eup %6227  ;;  %v3012_v40 = vrot.slane %v3004_v15, %v7147_v27  ;;  %v3019_v41 = vrot.slane %v3005_v22, %v7147_v27 }
 0x909   :  { %v2496_v6 = vmul.f32 %v6228_v4, %v2480_v51  ;;  %v7606_v28 = vpop.permute.xlu0 %2984 }
 0x90a   :  { %v3140_v32 = vcombine.low %v7557_v1, %v7606_v28  ;;  %v3141_v33 = vcombine.high %v7557_v1, %v7606_v28 }
 0x90b   :  { %v2504_v19 = vmul.f32 %v5727_v35, %v2496_v6  ;;  %v3096_v6 = vrot.slane %v3088_v17, %v7147_v27 }
 0x90c   :  { %v6230_v12 = vpop.eup %6229  ;;  %v3148_v47 = vrot.slane %v3140_v32, %v7147_v27  ;;  %v3155_v51 = vrot.slane %v3141_v33, %v7147_v27 }
 0x90d   :  { %v2497_v49 = vmul.f32 %v6230_v12, %v2481_v52  ;;  %v7587_v8 = vadd.f32 %v5728_v20, %v2504_v19  ;;  %v7622_v34 = vpop.permute.xlu0 %2992  ;;  %v7645_v52 = vrot.slane %v3208_v45, %v7147_v27  ;;  %v7674_v45 = vpop.permute.xlu1 %2998 }
 0x90e   :  { %v3020_v42 = vcombine.low %v7596_v9, %v7622_v34  ;;  %v3021_v43 = vcombine.high %v7596_v9, %v7622_v34 }
 0x90f   :  { %v2505_v23 = vmul.f32 %v5727_v35, %v2497_v49  ;;  %v3103_v35 = vrot.slane %v3089_v60, %v7147_v27 }
 0x910   :  { %v3028_v46 = vrot.slane %v3020_v42, %v7147_v27  ;;  %v3035_v48 = vrot.slane %v3021_v43, %v7147_v27 }
 0x911   :  { %v7589_v14 = vadd.f32 %v5728_v20, %v2505_v23  ;;  %v7642_v38 = vpop.permute.xlu0 %2996  ;;  %v3104_v23 = vcombine.low %v3080_v13, %v3096_v6  ;;  %v3120_v15 = vcombine.low %v3087_v50, %v3103_v35  ;;  %v3121_v22 = vcombine.high %v3087_v50, %v3103_v35 }
 0x912   :  { %v3036_v54 = vcombine.low %v3012_v40, %v3028_v46  ;;  %v3037_v55 = vcombine.high %v3012_v40, %v3028_v46  ;;  %v3052_v56 = vcombine.low %v3019_v41, %v3035_v48  ;;  %v3053_v57 = vcombine.high %v3019_v41, %v3035_v48 }
 0x913   :  { %v2524_v21 = vpack.c.bf16 %v7589_v14, %v7587_v8  ;;  %v3156_v59 = vcombine.low %v7600_v24, %v7642_v38  ;;  %v3157_v61 = vcombine.high %v7600_v24, %v7642_v38  ;;  %v3112_v40 = vrot.slane %v3104_v23, %v7159_v39 }
 0x914   :  { %v3044_v62 = vrot.slane %v3036_v54, %v7159_v39  ;;  %v3051_v63 = vrot.slane %v3037_v55, %v7159_v39  ;;  %v3060_v5 = vrot.slane %v3052_v56, %v7159_v39  ;;  %v3067_v7 = vrot.slane %v3053_v57, %v7159_v39 }
 0x915   :  { %6009 = vmatmul.mubr.msk.bf16.vlgmr.msra.gmra.mrb[32].mxu0 %vm298_vm1, %v2524_v21  ;;  %v3164_v11 = vrot.slane %v3156_v59, %v7147_v27  ;;  %v3171_v3 = vrot.slane %v3157_v61, %v7147_v27  ;;  %v3105_v21 = vcombine.high %v3080_v13, %v3096_v6  ;;  %v3128_v43 = vrot.slane %v3120_v15, %v7159_v39 }
 0x916   :  { %6022 = vmatprep.mubr.msk.bf16.mxu0 %vm6732_vm0, %v6731_v0  ;;  %v3276_v25 = vcombine.low %v3044_v62, %v3051_v63  ;;  %v5742_v4 = vcombine.high %v3044_v62, %v3051_v63  ;;  %v3292_v12 = vcombine.low %v3060_v5, %v3067_v7  ;;  %v5743_v19 = vcombine.high %v3060_v5, %v3067_v7 }
 0x917   :  { %v3172_v49 = vcombine.low %v3148_v47, %v3164_v11  ;;  %v3173_v20 = vcombine.high %v3148_v47, %v3164_v11  ;;  %v3188_v32 = vcombine.low %v3155_v51, %v3171_v3  ;;  %v3189_v33 = vcombine.high %v3155_v51, %v3171_v3 }
 0x918   :  { %v3119_v42 = vrot.slane %v3105_v21, %v7159_v39  ;;  %v3135_v41 = vrot.slane %v3121_v22, %v7159_v39  ;;  %v3224_v57 = vcombine.low %v7604_v36, %v7674_v45  ;;  %v3225_v59 = vcombine.high %v7604_v36, %v7674_v45 }
 0x919   :  { %v3180_v30 = vrot.slane %v3172_v49, %v7159_v39  ;;  %v3187_v31 = vrot.slane %v3173_v20, %v7159_v39  ;;  %v3196_v37 = vrot.slane %v3188_v32, %v7159_v39  ;;  %v3203_v46 = vrot.slane %v3189_v33, %v7159_v39 }
 0x91a   :  { %v3344_v50 = vcombine.low %v3112_v40, %v3119_v42  ;;  %v5744_v47 = vcombine.high %v3112_v40, %v3119_v42  ;;  %v3360_v54 = vcombine.low %v3128_v43, %v3135_v41  ;;  %v5745_v51 = vcombine.high %v3128_v43, %v3135_v41 }
 0x91b   :  { %v3412_v48 = vcombine.low %v3180_v30, %v3187_v31  ;;  %v5746_v13 = vcombine.high %v3180_v30, %v3187_v31  ;;  %v3428_v55 = vcombine.low %v3196_v37, %v3203_v46  ;;  %v5747_v56 = vcombine.high %v3196_v37, %v3203_v46 }
 0x91c   :  { %v3283_v61 = vrot.slane %v3276_v25, %v7147_v27  ;;  %v3291_v62 = vrot.slane %v5742_v4, %v7147_v27  ;;  %v7685_v63 = vrot.slane %v3292_v12, %v7147_v27  ;;  %v3307_v17 = vrot.slane %v5743_v19, %v7147_v27 }
 0x91d   :  { %v3232_v60 = vrot.slane %v3224_v57, %v7147_v27  ;;  %v3239_v5 = vrot.slane %v3225_v59, %v7147_v27  ;;  %v3351_v7 = vrot.slane %v3344_v50, %v7147_v27  ;;  %v3359_v11 = vrot.slane %v5744_v47, %v7147_v27 }
 0x91e   :  { %v3308_v3 = vcombine.low %v3283_v61, %v3291_v62  ;;  %v3324_v6 = vcombine.low %v7685_v63, %v3307_v17  ;;  %v3367_v25 = vrot.slane %v3360_v54, %v7147_v27  ;;  %v3375_v4 = vrot.slane %v5745_v51, %v7147_v27 }
 0x91f   :  { %v3240_v35 = vcombine.low %v7645_v52, %v3232_v60  ;;  %v3241_v12 = vcombine.high %v7645_v52, %v3232_v60  ;;  %v3256_v19 = vcombine.low %v7648_v53, %v3239_v5  ;;  %v3257_v49 = vcombine.high %v7648_v53, %v3239_v5 }
 0x920   :  { %v3316_v20 = vrot.slane %v3308_v3, %v7159_v39  ;;  %v3332_v23 = vrot.slane %v3324_v6, %v7159_v39  ;;  %v3376_v21 = vcombine.low %v3351_v7, %v3359_v11  ;;  %v3392_v15 = vcombine.low %v3367_v25, %v3375_v4 }
 0x921   :  { %v3248_v22 = vrot.slane %v3240_v35, %v7159_v39  ;;  %v3255_v30 = vrot.slane %v3241_v12, %v7159_v39  ;;  %v3264_v31 = vrot.slane %v3256_v19, %v7159_v39  ;;  %v3271_v32 = vrot.slane %v3257_v49, %v7159_v39 }
 0x922   :  { %v3340_v33 = vcombine.low %v3316_v20, %v3332_v23  ;;  %v3384_v52 = vrot.slane %v3376_v21, %v7159_v39  ;;  %v3400_v40 = vrot.slane %v3392_v15, %v7159_v39  ;;  %v3419_v53 = vrot.slane %v3412_v48, %v7147_v27 }
 0x923   :  { %v3480_v42 = vcombine.low %v3248_v22, %v3255_v30  ;;  %v5748_v43 = vcombine.high %v3248_v22, %v3255_v30  ;;  %v3496_v41 = vcombine.low %v3264_v31, %v3271_v32  ;;  %v5749_v37 = vcombine.high %v3264_v31, %v3271_v32 }
 0x924   :  { %v3408_v46 = vcombine.low %v3384_v52, %v3400_v40  ;;  %v3427_v50 = vrot.slane %v5746_v13, %v7147_v27  ;;  %v3435_v47 = vrot.slane %v3428_v55, %v7147_v27  ;;  %v3443_v54 = vrot.slane %v5747_v56, %v7147_v27 }
 0x925   :  { %v3487_v51 = vrot.slane %v3480_v42, %v7147_v27  ;;  %v3495_v57 = vrot.slane %v5748_v43, %v7147_v27  ;;  %v3503_v59 = vrot.slane %v3496_v41, %v7147_v27  ;;  %v3511_v60 = vrot.slane %v5749_v37, %v7147_v27 }
 0x926   :  { %v4148_v48 = vpack.c.bf16 %v3408_v46, %v3340_v33  ;;  %v3444_v5 = vcombine.low %v3419_v53, %v3427_v50  ;;  %v3460_v3 = vcombine.low %v3435_v47, %v3443_v54  ;;  %v3309_v6 = vcombine.high %v3283_v61, %v3291_v62 }
 0x927   :  { %v3512_v35 = vcombine.low %v3487_v51, %v3495_v57  ;;  %v3528_v12 = vcombine.low %v3503_v59, %v3511_v60  ;;  %v3341_v19 = vcombine.high %v3316_v20, %v3332_v23  ;;  %v3409_v13 = vcombine.high %v3384_v52, %v3400_v40 }
 0x928   :  { %v4160_v55 = vsel %vm1243_vm2, %v4148_v48, 0  ;;  %v3452_v56 = vrot.slane %v3444_v5, %v7159_v39  ;;  %v3468_v49 = vrot.slane %v3460_v3, %v7159_v39  ;;  %v3323_v21 = vrot.slane %v3309_v6, %v7159_v39 }
 0x929   :  { %6021 = vmatpush3.bf16.xpose.msra.mxu0 %v4160_v55  ;;  %v3520_v15 = vrot.slane %v3512_v35, %v7159_v39  ;;  %v3536_v22 = vrot.slane %v3528_v12, %v7159_v39  ;;  %v7721_v30 = vpack.c.bf16 %v3409_v13, %v3341_v19  ;;  %v3325_v61 = vcombine.high %v7685_v63, %v3307_v17  ;;  %v5729_v12 = vld [vmem:[#allocation16] ss:$0 sm:$0xff] }
 0x92a   :  { %v3476_v62 = vcombine.low %v3452_v56, %v3468_v49  ;;  %6032 = vmatprep.subr.bf16.mxu0 %v6731_v0  ;;  %v3477_v20 = vcombine.high %v3452_v56, %v3468_v49  ;;  %v3377_v23 = vcombine.high %v3351_v7, %v3359_v11  ;;  %v3393_v31 = vcombine.high %v3367_v25, %v3375_v4 }
 0x92b   :  { %v3544_v32 = vcombine.low %v3520_v15, %v3536_v22  ;;  %v3545_v33 = vcombine.high %v3520_v15, %v3536_v22  ;;  %v3339_v52 = vrot.slane %v3325_v61, %v7159_v39  ;;  %v3445_v43 = vcombine.high %v3419_v53, %v3427_v50 }
 0x92c   :  { %v3391_v40 = vrot.slane %v3377_v23, %v7159_v39  ;;  %v3407_v42 = vrot.slane %v3393_v31, %v7159_v39  ;;  %v3461_v41 = vcombine.high %v3435_v47, %v3443_v54  ;;  %v3513_v17 = vcombine.high %v3487_v51, %v3495_v57 }
 0x92d   :  { %v4149_v37 = vpack.c.bf16 %v3544_v32, %v3476_v62  ;;  %v7728_v46 = vpack.c.bf16 %v3545_v33, %v3477_v20  ;;  %v3342_v63 = vcombine.low %v3323_v21, %v3339_v52  ;;  %v3459_v5 = vrot.slane %v3445_v43, %v7159_v39 }
 0x92e   :  { %v3410_v48 = vcombine.low %v3391_v40, %v3407_v42  ;;  %v3475_v7 = vrot.slane %v3461_v41, %v7159_v39  ;;  %v3529_v11 = vcombine.high %v3503_v59, %v3511_v60  ;;  %v3527_v4 = vrot.slane %v3513_v17, %v7159_v39 }
 0x92f   :  { %v4206_v25 = vsel %vm1243_vm2, %v4149_v37, 0  ;;  %v3343_v3 = vcombine.high %v3323_v21, %v3339_v52  ;;  %v3411_v47 = vcombine.high %v3391_v40, %v3407_v42 }
 0x930   :  { %6027 = vmatpush3.bf16.xpose.msra.mxu1 %v4206_v25  ;;  %v7734_v6 = vpack.c.bf16 %v3410_v48, %v3342_v63  ;;  %v3478_v53 = vcombine.low %v3459_v5, %v3475_v7  ;;  %v3543_v50 = vrot.slane %v3529_v11, %v7159_v39  ;;  %v3479_v54 = vcombine.high %v3459_v5, %v3475_v7 }
 0x931   :  { %6038 = vmatprep.subr.bf16.mxu1 %v6731_v0  ;;  %v7738_v57 = vpack.c.bf16 %v3411_v47, %v3343_v3 }
 0x932   :  { %v3546_v51 = vcombine.low %v3527_v4, %v3543_v50  ;;  %v3547_v35 = vcombine.high %v3527_v4, %v3543_v50 }
 0x934   :  { %v7740_v59 = vpack.c.bf16 %v3546_v51, %v3478_v53  ;;  %v7742_v60 = vpack.c.bf16 %v3547_v35, %v3479_v54 }
 0x9e8   :  { %v2585_v19 = vpop.f32.mrb[32].mxu0 }
 0x9e9   :  { %v2586_v13 = vadd.f32 %v5729_v12, %v2585_v19  ;;  %v6010_v55 = vpop.f32.mrb[33].mxu0 }
 0x9ea   :  { %v2588_v56 = vpop.f32.mrb[34].mxu0 }
 0x9eb   :  { %v2589_v49 = vadd.f32 %v5729_v12, %v2588_v56  ;;  %v6011_v21 = vpop.f32.mrb[35].mxu0  ;;  %2674 = vrot.lane.b32.xlu0 %v2586_v13, %s6734_s7 }
 0x9ed   :  { %2676 = vrot.lane.b32.xlu1 %v2589_v49, %s6734_s7 }
 0x9ef   :  { %2680 = vrot.lane.b32.xlu0 %v2586_v13, %s6733_s13 }
 0x9f1   :  { %2682 = vrot.lane.b32.xlu1 %v2589_v49, %s6733_s13 }
 0x9f3   :  { %2686 = vrot.lane.b32.xlu0 %v2586_v13, %s6735_s1 }
 0x9f5   :  { %2688 = vrot.lane.b32.xlu1 %v2589_v49, %s6735_s1 }
 0x9f7   :  { %3550 = vrot.lane.b32.xlu0 %v7561_v16, %s6736_s5 }
 0x9f9   :  { %3548 = vrot.lane.b32.xlu1 %v7555_v18, %s6736_s5 }
 0x9fb   :  { %3556 = vrot.lane.b32.xlu0 %v7596_v9, %s6736_s5 }
 0x9fd   :  { %3552 = vrot.lane.b32.xlu1 %v7557_v1, %s6736_s5 }
 0x9ff   :  { %3560 = vrot.lane.b32.xlu0 %v7600_v24, %s6736_s5 }
 0xa01   :  { %3554 = vrot.lane.b32.xlu1 %v7565_v2, %s6736_s5 }
 0xa03   :  { %3564 = vrot.lane.b32.xlu0 %v7602_v26, %s6736_s5 }
 0xa05   :  { %3558 = vrot.lane.b32.xlu1 %v7598_v10, %s6736_s5 }
 0xa07   :  { %3568 = vrot.lane.b32.xlu0 %v7606_v28, %s6736_s5 }
 0xa09   :  { %3562 = vrot.lane.b32.xlu1 %v7604_v36, %s6736_s5 }
 0xa0d   :  { %3566 = vrot.lane.b32.xlu1 %v7612_v29, %s6736_s5 }
 0xa11   :  { %3570 = vrot.lane.b32.xlu1 %v7630_v44, %s6736_s5 }
 0xa5d   :  { %v2675_v18 = vpop.permute.xlu0 %2674 }
 0xa5f   :  { %v2677_v1 = vpop.permute.xlu1 %2676 }
 0xa61   :  { %v2681_v16 = vpop.permute.xlu0 %2680 }
 0xa62   :  { %v2692_v2 = vcombine.low %v2586_v13, %v2681_v16  ;;  %v2693_v9 = vcombine.high %v2586_v13, %v2681_v16 }
 0xa63   :  { %v2683_v24 = vpop.permute.xlu1 %2682 }
 0xa64   :  { %v2700_v28 = vrot.slane %v2692_v2, %v7147_v27  ;;  %v2707_v22 = vrot.slane %v2693_v9, %v7147_v27  ;;  %v2760_v36 = vcombine.low %v2589_v49, %v2683_v24  ;;  %v2761_v61 = vcombine.high %v2589_v49, %v2683_v24 }
 0xa65   :  { %v2687_v26 = vpop.permute.xlu0 %2686 }
 0xa66   :  { %v2708_v10 = vcombine.low %v2675_v18, %v2687_v26  ;;  %v2709_v15 = vcombine.high %v2675_v18, %v2687_v26  ;;  %v2768_v40 = vrot.slane %v2760_v36, %v7147_v27  ;;  %v2775_v42 = vrot.slane %v2761_v61, %v7147_v27 }
 0xa67   :  { %v2689_v62 = vpop.permute.xlu1 %2688 }
 0xa68   :  { %v2716_v29 = vrot.slane %v2708_v10, %v7147_v27  ;;  %v2723_v44 = vrot.slane %v2709_v15, %v7147_v27  ;;  %v2776_v20 = vcombine.low %v2677_v1, %v2689_v62  ;;  %v2777_v23 = vcombine.high %v2677_v1, %v2689_v62 }
 0xa6a   :  { %v2724_v31 = vcombine.low %v2700_v28, %v2716_v29  ;;  %v2725_v32 = vcombine.high %v2700_v28, %v2716_v29  ;;  %v2740_v33 = vcombine.low %v2707_v22, %v2723_v44  ;;  %v2741_v52 = vcombine.high %v2707_v22, %v2723_v44 }
 0xa6b   :  { %v2784_v43 = vrot.slane %v2776_v20, %v7147_v27  ;;  %v2791_v41 = vrot.slane %v2777_v23, %v7147_v27  ;;  %v4252_v20 = vsel %vm1243_vm2, %v7721_v30, 0 }
 0xa6c   :  { %v2732_v37 = vrot.slane %v2724_v31, %v7159_v39  ;;  %v2739_v63 = vrot.slane %v2725_v32, %v7159_v39  ;;  %v2748_v17 = vrot.slane %v2740_v33, %v7159_v39  ;;  %v2755_v48 = vrot.slane %v2741_v52, %v7159_v39 }
 0xa6d   :  { %v2792_v5 = vcombine.low %v2768_v40, %v2784_v43  ;;  %v2793_v7 = vcombine.high %v2768_v40, %v2784_v43  ;;  %v2808_v11 = vcombine.low %v2775_v42, %v2791_v41  ;;  %v2809_v25 = vcombine.high %v2775_v42, %v2791_v41 }
 0xa6e   :  { %v2828_v4 = vcombine.low %v2732_v37, %v2739_v63  ;;  %v5738_v3 = vcombine.high %v2732_v37, %v2739_v63  ;;  %v2844_v53 = vcombine.low %v2748_v17, %v2755_v48  ;;  %v5739_v50 = vcombine.high %v2748_v17, %v2755_v48 }
 0xa6f   :  { %v2800_v47 = vrot.slane %v2792_v5, %v7159_v39  ;;  %v2807_v54 = vrot.slane %v2793_v7, %v7159_v39  ;;  %v2816_v51 = vrot.slane %v2808_v11, %v7159_v39  ;;  %v2823_v35 = vrot.slane %v2809_v25, %v7159_v39 }
 0xa70   :  { %v2835_v12 = vrot.slane %v2828_v4, %v7147_v27  ;;  %v2843_v19 = vrot.slane %v5738_v3, %v7147_v27  ;;  %v2851_v13 = vrot.slane %v2844_v53, %v7147_v27  ;;  %v2859_v55 = vrot.slane %v5739_v50, %v7147_v27 }
 0xa71   :  { %v2896_v56 = vcombine.low %v2800_v47, %v2807_v54  ;;  %v5740_v49 = vcombine.high %v2800_v47, %v2807_v54  ;;  %v2912_v21 = vcombine.low %v2816_v51, %v2823_v35  ;;  %v5741_v18 = vcombine.high %v2816_v51, %v2823_v35 }
 0xa72   :  { %v2860_v1 = vcombine.low %v2835_v12, %v2843_v19  ;;  %v2876_v16 = vcombine.low %v2851_v13, %v2859_v55  ;;  %v2861_v31 = vcombine.high %v2835_v12, %v2843_v19  ;;  %v2877_v32 = vcombine.high %v2851_v13, %v2859_v55 }
 0xa73   :  { %v2903_v2 = vrot.slane %v2896_v56, %v7147_v27  ;;  %v2911_v9 = vrot.slane %v5740_v49, %v7147_v27  ;;  %v2919_v24 = vrot.slane %v2912_v21, %v7147_v27  ;;  %v2927_v26 = vrot.slane %v5741_v18, %v7147_v27 }
 0xa74   :  { %v2868_v10 = vrot.slane %v2860_v1, %v7159_v39  ;;  %v2884_v15 = vrot.slane %v2876_v16, %v7159_v39  ;;  %v4298_v52 = vsel %vm1243_vm2, %v7728_v46, 0  ;;  %v2875_v41 = vrot.slane %v2861_v31, %v7159_v39 }
 0xa75   :  { %v2928_v28 = vcombine.low %v2903_v2, %v2911_v9  ;;  %v2944_v22 = vcombine.low %v2919_v24, %v2927_v26  ;;  %v2929_v30 = vcombine.high %v2903_v2, %v2911_v9  ;;  %v2945_v40 = vcombine.high %v2919_v24, %v2927_v26 }
 0xa76   :  { %v2892_v36 = vcombine.low %v2868_v10, %v2884_v15  ;;  %v2893_v33 = vcombine.high %v2868_v10, %v2884_v15  ;;  %v2891_v37 = vrot.slane %v2877_v32, %v7159_v39  ;;  %v4344_v63 = vsel %vm1243_vm2, %v7734_v6, 0 }
 0xa77   :  { %v2936_v61 = vrot.slane %v2928_v28, %v7159_v39  ;;  %v2952_v62 = vrot.slane %v2944_v22, %v7159_v39  ;;  %v2943_v17 = vrot.slane %v2929_v30, %v7159_v39  ;;  %v2959_v48 = vrot.slane %v2945_v40, %v7159_v39 }
 0xa78   :  { %v4140_v29 = vpack.c.bf16 %v2892_v36, %v2892_v36  ;;  %v4142_v43 = vpack.c.bf16 %v2893_v33, %v2893_v33  ;;  %v2894_v5 = vcombine.low %v2875_v41, %v2891_v37  ;;  %v4390_v7 = vsel %vm1243_vm2, %v7740_v59, 0 }
 0xa79   :  { %v2960_v44 = vcombine.low %v2936_v61, %v2952_v62  ;;  %v2961_v42 = vcombine.high %v2936_v61, %v2952_v62  ;;  %v2962_v6 = vcombine.low %v2943_v17, %v2959_v48  ;;  %v4436_v25 = vsel %vm1243_vm2, %v7738_v57, 0 }
 0xa7a   :  { %6023 = vmatmul.mubr.msk.bf16.vlgmr.msra.gmra.mrb[36].mxu0 %vm1243_vm2, %v4140_v29  ;;  %v4144_v11 = vpack.c.bf16 %v2894_v5, %v2894_v5  ;;  %v2895_v3 = vcombine.high %v2875_v41, %v2891_v37  ;;  %v4482_v59 = vsel %vm1243_vm2, %v7742_v60, 0  ;;  %v2963_v53 = vcombine.high %v2943_v17, %v2959_v48  ;;  %v5801_v60 = vld [vmem:[#allocation5] sm:$0xf]  }
 0xa7b   :  { %6033 = vmatpush3.bf16.xpose.msra.mxu0 %v4252_v20  ;;  %v4141_v23 = vpack.c.bf16 %v2960_v44, %v2960_v44  ;;  %6034 = vmatprep.mubr.msk.bf16.mxu0 %vm6732_vm0, %v6731_v0  ;;  %v4143_v46 = vpack.c.bf16 %v2961_v42, %v2961_v42  ;;  %v4145_v4 = vpack.c.bf16 %v2962_v6, %v2962_v6  ;;  %v5802_v47 = vunpack.c.0.s8 %v5801_v60 }
 0xa7c   :  { %6044 = vmatprep.subr.bf16.mxu0 %v6731_v0  ;;  %v4146_v57 = vpack.c.bf16 %v2895_v3, %v2895_v3  ;;  %v4147_v50 = vpack.c.bf16 %v2963_v53, %v2963_v53  ;;  %v5803_v54 = vunpack.c.1.s8 %v5801_v60  ;;  %v3549_v60 = vpop.permute.xlu1 %3548 }
 0xa7d   :  { %6029 = vmatmul.mubr.msk.bf16.vlgmr.msra.gmra.mrb[44].mxu1 %vm1243_vm2, %v4141_v23  ;;  %v2518_v51 = vcvt.s32.f32 %v5802_v47 }
 0xa7e   :  { %6039 = vmatpush3.bf16.xpose.msra.mxu1 %v4298_v52  ;;  %6040 = vmatprep.mubr.msk.bf16.mxu1 %vm6732_vm0, %v6731_v0  ;;  %v2519_v35 = vcvt.s32.f32 %v5803_v54  ;;  %v3551_v54 = vpop.permute.xlu0 %3550 }
 0xa7f   :  { %6050 = vmatprep.subr.bf16.mxu1 %v6731_v0  ;;  %vm2520_vm8 = vcmp.gt.f32.partialorder %v2518_v51, 0.0 }
 0xa80   :  { %v2522_v12 = vsel %vm2520_vm8, -1e+30, %v6731_v0  ;;  %vm2521_vm9 = vcmp.gt.f32.partialorder %v2519_v35, 0.0  ;;  %v7886_v47 = vpop.permute.xlu1 %3552 }
 0xa81   :  { %v2523_v56 = vsel %vm2521_vm9, -1e+30, %v6731_v0 }
 0xa82   :  { %6035 = vmatmul.mubr.msk.bf16.vlgmr.msra.gmra.mrb[40].mxu0 %vm1243_vm2, %v4142_v43  ;;  %v3557_v35 = vpop.permute.xlu0 %3556 }
 0xa83   :  { %6045 = vmatpush3.bf16.xpose.msra.mxu0 %v4344_v63  ;;  %6046 = vmatprep.mubr.msk.bf16.mxu0 %vm6732_vm0, %v6731_v0 }
 0xa84   :  { %6056 = vmatprep.subr.bf16.mxu0 %v6731_v0  ;;  %v7888_v51 = vpop.permute.xlu1 %3554 }
 0xa85   :  { %6041 = vmatmul.mubr.msk.bf16.vlgmr.msra.gmra.mrb[48].mxu1 %vm1243_vm2, %v4143_v46 }
 0xa86   :  { %6051 = vmatpush3.bf16.xpose.msra.mxu1 %v4390_v7  ;;  %6052 = vmatprep.mubr.msk.bf16.mxu1 %vm6732_vm0, %v6731_v0 }
 0xa87   :  { %6062 = vmatprep.subr.bf16.mxu1 %v6731_v0 }
 0xa8a   :  { %6047 = vmatmul.mubr.msk.bf16.vlgmr.msra.gmra.mrb[44].mxu0 %vm1243_vm2, %v4144_v11 }
 0xa8b   :  { %6057 = vmatpush3.bf16.xpose.msra.mxu0 %v4436_v25  ;;  %6058 = vmatprep.mubr.msk.bf16.mxu0 %vm6732_vm0, %v6731_v0 }
 0xa8c   :  { %6068 = vmatprep.subr.bf16.mxu0 %v6731_v0 }
 0xa8d   :  { %6053 = vmatmul.mubr.msk.bf16.vlgmr.msra.gmra.mrb[52].mxu1 %vm1243_vm2, %v4145_v4 }
 0xa8e   :  { %6063 = vmatpush3.bf16.xpose.msra.mxu1 %v4482_v59  ;;  %6064 = vmatprep.mubr.msk.bf16.mxu1 %vm6732_vm0, %v6731_v0 }
 0xa8f   :  { %6074 = vmatprep.subr.bf16.mxu1 %v6731_v0 }
 0xa92   :  { %6059 = vmatmul.mubr.msk.bf16.vlgmr.msra.gmra.mrb[48].mxu0 %vm1243_vm2, %v4146_v57 }
 0xa93   :  { %6070 = vmatprep.mubr.msk.bf16.mxu0 %vm6732_vm0, %v6731_v0 }
 0xa95   :  { %6065 = vmatmul.mubr.msk.bf16.vlgmr.msra.gmra.mrb[56].mxu1 %vm1243_vm2, %v4147_v50 }
 0xa96   :  { %6076 = vmatprep.mubr.msk.bf16.mxu1 %vm6732_vm0, %v6731_v0 }
 0xb4d   :  { %v4196_v19 = vpop.f32.mrb[36].mxu0 }
 0xb4e   :  { %v7849_v13 = vadd.f32 %v4196_v19, %v2522_v12  ;;  %v6024_v55 = vpop.f32.mrb[37].mxu0  ;;  %v7890_v19 = vpop.permute.xlu0 %3560 }
 0xb4f   :  { %v4199_v49 = vpop.f32.mrb[38].mxu0 }
 0xb50   :  { %v4242_v21 = vpop.f32.mrb[44].mxu1  ;;  %v6025_v18 = vpop.f32.mrb[39].mxu0  ;;  %v4524_v1 = vsel %vm2391_vm6, %v7849_v13, -inf }
 0xb51   :  { %v7854_v16 = vadd.f32 %v4242_v21, %v2523_v56  ;;  %v6030_v2 = vpop.f32.mrb[45].mxu1  ;;  %4525 = vmax.xlane.f32.xlu0 %v4524_v1 }
 0xb52   :  { %v4245_v9 = vpop.f32.mrb[46].mxu1 }
 0xb53   :  { %v6031_v24 = vpop.f32.mrb[47].mxu1  ;;  %v4527_v26 = vsel %vm2391_vm6, %v7854_v16, -inf }
 0xb54   :  { %4528 = vmax.xlane.f32.xlu1 %v4527_v26 }
 0xb55   :  { %v4288_v10 = vpop.f32.mrb[40].mxu0 }
 0xb56   :  { %v7858_v15 = vadd.f32 %v4288_v10, %v2522_v12  ;;  %v6036_v28 = vpop.f32.mrb[41].mxu0 }
 0xb57   :  { %v4291_v22 = vpop.f32.mrb[42].mxu0 }
 0xb58   :  { %v4334_v36 = vpop.f32.mrb[48].mxu1  ;;  %v6037_v61 = vpop.f32.mrb[43].mxu0  ;;  %v4530_v62 = vsel %vm2391_vm6, %v7858_v15, -inf }
 0xb59   :  { %v7862_v29 = vadd.f32 %v4334_v36, %v2523_v56  ;;  %v6042_v44 = vpop.f32.mrb[49].mxu1  ;;  %4531 = vmax.xlane.f32.xlu0 %v4530_v62 }
 0xb5a   :  { %v4337_v20 = vpop.f32.mrb[50].mxu1 }
 0xb5b   :  { %v6043_v23 = vpop.f32.mrb[51].mxu1  ;;  %v4533_v31 = vsel %vm2391_vm6, %v7862_v29, -inf }
 0xb5d   :  { %v4380_v32 = vpop.f32.mrb[44].mxu0  ;;  %4534 = vmax.xlane.f32.xlu0 %v4533_v31 }
 0xb5e   :  { %v7866_v33 = vadd.f32 %v4380_v32, %v2522_v12  ;;  %v6048_v52 = vpop.f32.mrb[45].mxu0 }
 0xb5f   :  { %v4383_v30 = vpop.f32.mrb[46].mxu0 }
 0xb60   :  { %v4426_v40 = vpop.f32.mrb[52].mxu1  ;;  %v6049_v42 = vpop.f32.mrb[47].mxu0  ;;  %v4536_v43 = vsel %vm2391_vm6, %v7866_v33, -inf }
 0xb61   :  { %v7870_v41 = vadd.f32 %v4426_v40, %v2523_v56  ;;  %v6054_v37 = vpop.f32.mrb[53].mxu1  ;;  %4537 = vmax.xlane.f32.xlu1 %v4536_v43 }
 0xb62   :  { %v4429_v63 = vpop.f32.mrb[54].mxu1 }
 0xb63   :  { %v6055_v46 = vpop.f32.mrb[55].mxu1  ;;  %v4539_v17 = vsel %vm2391_vm6, %v7870_v41, -inf }
 0xb64   :  { %4540 = vmax.xlane.f32.xlu0 %v4539_v17 }
 0xb65   :  { %v4472_v48 = vpop.f32.mrb[48].mxu0 }
 0xb66   :  { %v7874_v5 = vadd.f32 %v4472_v48, %v2522_v12  ;;  %v6060_v7 = vpop.f32.mrb[49].mxu0  ;;  %v3559_v12 = vpop.permute.xlu1 %3558 }
 0xb67   :  { %v4475_v6 = vpop.f32.mrb[50].mxu0 }
 0xb68   :  { %v4518_v11 = vpop.f32.mrb[56].mxu1  ;;  %v6061_v25 = vpop.f32.mrb[51].mxu0  ;;  %v4542_v4 = vsel %vm2391_vm6, %v7874_v5, -inf }
 0xb69   :  { %v7878_v3 = vadd.f32 %v4518_v11, %v2523_v56  ;;  %v6066_v59 = vpop.f32.mrb[57].mxu1  ;;  %4543 = vmax.xlane.f32.xlu1 %v4542_v4  ;;  %v3565_v56 = vpop.permute.xlu0 %3564 }
 0xb6a   :  { %v4521_v53 = vpop.f32.mrb[58].mxu1  ;;  %v7892_v55 = vpop.permute.xlu1 %3562  ;;  %v3596_v30 = vcombine.low %v3549_v60, %v3565_v56  ;;  %v3597_v40 = vcombine.high %v3549_v60, %v3565_v56 }
 0xb6b   :  { %v6067_v57 = vpop.f32.mrb[59].mxu1  ;;  %v4545_v50 = vsel %vm2391_vm6, %v7878_v3, -inf }
 0xb6c   :  { %4546 = vmax.xlane.f32.xlu0 %v4545_v50  ;;  %v3604_v4 = vrot.slane %v3596_v30, %v7147_v27  ;;  %v3611_v59 = vrot.slane %v3597_v40, %v7147_v27 }
 0xb6d   :  { %v7894_v21 = vpop.permute.xlu0 %3568 }
 0xb6e   :  { %v3567_v49 = vpop.permute.xlu1 %3566 }
 0xb6f   :  { %v3664_v44 = vcombine.low %v3551_v54, %v3567_v49  ;;  %v3665_v20 = vcombine.high %v3551_v54, %v3567_v49 }
 0xb71   :  { %v3672_v42 = vrot.slane %v3664_v44, %v7147_v27  ;;  %v3679_v43 = vrot.slane %v3665_v20, %v7147_v27 }
 0xb7a   :  { %3574 = vrot.lane.b32.xlu1 %v7650_v58, %s6736_s5  ;;  %v7896_v58 = vpop.permute.xlu1 %3570 }
 0xb82   :  { %3572 = vrot.lane.b32.xlu0 %v7622_v34, %s6736_s5 }
 0xbde   :  { %v4526_v18 = vpop.xlane.xlu0 %4525 }
 0xbdf   :  { %v4548_v34 = vsub.f32 %v7849_v13, %v4526_v18 }
 0xbe1   :  { %v4556_v1 = vmul.f32 1.442695, %v4548_v34  ;;  %v4529_v2 = vpop.xlane.xlu1 %4528 }
 0xbe2   :  { %v4549_v9 = vsub.f32 %v7854_v16, %v4529_v2 }
 0xbe3   :  { %6231 = vpow2.f32 %v4556_v1 }
 0xbe4   :  { %v4558_v24 = vmul.f32 1.442695, %v4549_v9 }
 0xbe6   :  { %6233 = vpow2.f32 %v4558_v24  ;;  %v7900_v26 = vpop.xlane.xlu0 %4531 }
 0xbea   :  { %v7908_v36 = vpop.xlane.xlu0 %4534 }
 0xbed   :  { %v7902_v10 = vpop.eup %6231 }
 0xbee   :  { %v4572_v28 = vsel %vm2391_vm6, %v7902_v10, 0.0  ;;  %v7912_v61 = vpop.xlane.xlu1 %4537 }
 0xbef   :  { %4573 = vadd.xlane.f32.xlu1 %v4572_v28 }
 0xbf0   :  { %v7906_v22 = vpop.eup %6233 }
 0xbf1   :  { %v4575_v13 = vsel %vm2391_vm6, %v7906_v22, 0.0  ;;  %v7914_v16 = vpop.xlane.xlu0 %4540 }
 0xbf2   :  { %4576 = vadd.xlane.f32.xlu0 %v4575_v13 }
 0xbf6   :  { %v7916_v62 = vpop.xlane.xlu1 %4543 }
 0xbf9   :  { %v7918_v23 = vpop.xlane.xlu0 %4546 }
 0xbfa   :  { %v3575_v31 = vpop.permute.xlu1 %3574 }
 0xbfb   :  { %v3680_v32 = vcombine.low %v3559_v12, %v3575_v31  ;;  %v3681_v52 = vcombine.high %v3559_v12, %v3575_v31 }
 0xbfd   :  { %v3688_v37 = vrot.slane %v3680_v32, %v7147_v27  ;;  %v3695_v63 = vrot.slane %v3681_v52, %v7147_v27  ;;  %v3573_v46 = vpop.permute.xlu0 %3572 }
 0xbfe   :  { %v3612_v17 = vcombine.low %v3557_v35, %v3573_v46  ;;  %v3613_v48 = vcombine.high %v3557_v35, %v3573_v46 }
 0xbff   :  { %v3696_v7 = vcombine.low %v3672_v42, %v3688_v37  ;;  %v3697_v6 = vcombine.high %v3672_v42, %v3688_v37  ;;  %v3712_v11 = vcombine.low %v3679_v43, %v3695_v63  ;;  %v3713_v25 = vcombine.high %v3679_v43, %v3695_v63 }
 0xc00   :  { %v3620_v53 = vrot.slane %v3612_v17, %v7147_v27  ;;  %v3627_v57 = vrot.slane %v3613_v48, %v7147_v27  ;;  %3578 = vrot.lane.b32.xlu1 %v7674_v45, %s6736_s5 }
 0xc01   :  { %v3704_v50 = vrot.slane %v3696_v7, %v7159_v39  ;;  %v3711_v60 = vrot.slane %v3697_v6, %v7159_v39  ;;  %v3720_v54 = vrot.slane %v3712_v11, %v7159_v39  ;;  %v3727_v35 = vrot.slane %v3713_v25, %v7159_v39 }
 0xc02   :  { %v3628_v12 = vcombine.low %v3604_v4, %v3620_v53  ;;  %v3629_v56 = vcombine.high %v3604_v4, %v3620_v53  ;;  %v3644_v49 = vcombine.low %v3611_v59, %v3627_v57  ;;  %v3645_v18 = vcombine.high %v3611_v59, %v3627_v57 }
 0xc03   :  { %v3936_v34 = vcombine.low %v3704_v50, %v3711_v60  ;;  %v5752_v1 = vcombine.high %v3704_v50, %v3711_v60  ;;  %v3952_v2 = vcombine.low %v3720_v54, %v3727_v35  ;;  %v5753_v9 = vcombine.high %v3720_v54, %v3727_v35 }
 0xc04   :  { %v3636_v24 = vrot.slane %v3628_v12, %v7159_v39  ;;  %v3643_v45 = vrot.slane %v3629_v56, %v7159_v39  ;;  %v3652_v28 = vrot.slane %v3644_v49, %v7159_v39  ;;  %v3659_v13 = vrot.slane %v3645_v18, %v7159_v39 }
 0xc05   :  { %v3943_v44 = vrot.slane %v3936_v34, %v7147_v27  ;;  %v3951_v20 = vrot.slane %v5752_v1, %v7147_v27  ;;  %v3959_v31 = vrot.slane %v3952_v2, %v7147_v27  ;;  %v3967_v32 = vrot.slane %v5753_v9, %v7147_v27 }
 0xc06   :  { %v3868_v52 = vcombine.low %v3636_v24, %v3643_v45  ;;  %v5750_v30 = vcombine.high %v3636_v24, %v3643_v45  ;;  %v3884_v40 = vcombine.low %v3652_v28, %v3659_v13  ;;  %v5751_v42 = vcombine.high %v3652_v28, %v3659_v13 }
 0xc07   :  { %v3968_v43 = vcombine.low %v3943_v44, %v3951_v20  ;;  %v3984_v37 = vcombine.low %v3959_v31, %v3967_v32  ;;  %v3969_v11 = vcombine.high %v3943_v44, %v3951_v20  ;;  %v3985_v60 = vcombine.high %v3959_v31, %v3967_v32 }
 0xc08   :  { %v3875_v63 = vrot.slane %v3868_v52, %v7147_v27  ;;  %v3883_v46 = vrot.slane %v5750_v30, %v7147_v27  ;;  %v3891_v17 = vrot.slane %v3884_v40, %v7147_v27  ;;  %v3899_v48 = vrot.slane %v5751_v42, %v7147_v27  ;;  %3576 = vrot.lane.b32.xlu0 %v7642_v38, %s6736_s5 }
 0xc09   :  { %v3976_v7 = vrot.slane %v3968_v43, %v7159_v39  ;;  %v3992_v6 = vrot.slane %v3984_v37, %v7159_v39  ;;  %v3983_v50 = vrot.slane %v3969_v11, %v7159_v39  ;;  %v4551_v56 = vsub.f32 %v7862_v29, %v7908_v36 }
 0xc0a   :  { %v3900_v25 = vcombine.low %v3875_v63, %v3883_v46  ;;  %v3916_v4 = vcombine.low %v3891_v17, %v3899_v48  ;;  %v3901_v59 = vcombine.high %v3875_v63, %v3883_v46  ;;  %v3917_v53 = vcombine.high %v3891_v17, %v3899_v48 }
 0xc0b   :  { %v4001_v57 = vcombine.high %v3976_v7, %v3992_v6  ;;  %v4000_v49 = vcombine.low %v3976_v7, %v3992_v6  ;;  %v3999_v18 = vrot.slane %v3985_v60, %v7159_v39  ;;  %v4550_v44 = vsub.f32 %v7858_v15, %v7900_v26 }
 0xc0c   :  { %v3908_v54 = vrot.slane %v3900_v25, %v7159_v39  ;;  %v3924_v35 = vrot.slane %v3916_v4, %v7159_v39  ;;  %v3915_v12 = vrot.slane %v3901_v59, %v7159_v39  ;;  %v3931_v38 = vrot.slane %v3917_v53, %v7159_v39 }
 0xc0d   :  { %v4002_v24 = vcombine.low %v3983_v50, %v3999_v18  ;;  %v4003_v45 = vcombine.high %v3983_v50, %v3999_v18  ;;  %v4562_v29 = vmul.f32 1.442695, %v4551_v56  ;;  %v4554_v36 = vsub.f32 %v7874_v5, %v7916_v62 }
 0xc0e   :  { %v3932_v34 = vcombine.low %v3908_v54, %v3924_v35  ;;  %v3933_v1 = vcombine.high %v3908_v54, %v3924_v35  ;;  %v3934_v2 = vcombine.low %v3915_v12, %v3931_v38  ;;  %v3935_v9 = vcombine.high %v3915_v12, %v3931_v38 }
 0xc0f   :  { %v4560_v32 = vmul.f32 1.442695, %v4550_v44  ;;  %v4552_v52 = vsub.f32 %v7866_v33, %v7912_v61  ;;  %6235 = vpow2.f32 %v4562_v29  ;;  %v4568_v30 = vmul.f32 1.442695, %v4554_v36 }
 0xc10   :  { %v4628_v28 = vpack.c.bf16 %v4000_v49, %v3932_v34  ;;  %v7958_v13 = vpack.c.bf16 %v4001_v57, %v3933_v1  ;;  %v7962_v20 = vpack.c.bf16 %v4002_v24, %v3934_v2  ;;  %v7964_v31 = vpack.c.bf16 %v4003_v45, %v3935_v9 }
 0xc11   :  { %6237 = vpow2.f32 %v4560_v32  ;;  %v4564_v40 = vmul.f32 1.442695, %v4552_v52  ;;  %v4553_v15 = vsub.f32 %v7870_v41, %v7914_v16  ;;  %v4555_v5 = vsub.f32 %v7878_v3, %v7918_v23 }
 0xc12   :  { %6069 = vmatpush3.bf16.msra.mxu0 %v4628_v28  ;;  %6239 = vpow2.f32 %v4568_v30  ;;  %v3800_v7 = vcombine.low %v7888_v51, %v7896_v58  ;;  %v3801_v6 = vcombine.high %v7888_v51, %v7896_v58  ;;  %v3732_v53 = vcombine.low %v7886_v47, %v7894_v21 }
 0xc13   :  { %6080 = vmatprep.subr.bf16.mxu0 %v6731_v0  ;;  %6241 = vpow2.f32 %v4564_v40  ;;  %v4566_v26 = vmul.f32 1.442695, %v4553_v15  ;;  %v4570_v42 = vmul.f32 1.442695, %v4555_v5  ;;  %v3733_v57 = vcombine.high %v7886_v47, %v7894_v21 }
 0xc14   :  { %v3808_v50 = vrot.slane %v3800_v7, %v7147_v27  ;;  %v3815_v60 = vrot.slane %v3801_v6, %v7147_v27  ;;  %v3740_v18 = vrot.slane %v3732_v53, %v7147_v27 }
 0xc15   :  { %6243 = vpow2.f32 %v4566_v26  ;;  %v3747_v47 = vrot.slane %v3733_v57, %v7147_v27 }
 0xc16   :  { %6245 = vpow2.f32 %v4570_v42 }
 0xc19   :  { %v7975_v62 = vpop.eup %6235 }
 0xc1a   :  { %v4581_v33 = vsel %vm2391_vm6, %v7975_v62, 0.0 }
 0xc1b   :  { %v7977_v43 = vpop.eup %6237 }
 0xc1c   :  { %v7981_v61 = vpop.eup %6239  ;;  %v4578_v41 = vsel %vm2391_vm6, %v7977_v43, 0.0 }
 0xc1d   :  { %v7985_v16 = vpop.eup %6241  ;;  %v4590_v3 = vsel %vm2391_vm6, %v7981_v61, 0.0 }
 0xc1e   :  { %v4584_v23 = vsel %vm2391_vm6, %v7985_v16, 0.0 }
 0xc1f   :  { %v7991_v37 = vpop.eup %6243 }
 0xc20   :  { %v4587_v63 = vsel %vm2391_vm6, %v7991_v37, 0.0  ;;  %v7995_v46 = vpop.eup %6245 }
 0xc21   :  { %v4593_v17 = vsel %vm2391_vm6, %v7995_v46, 0.0 }
 0xc24   :  { %4582 = vadd.xlane.f32.xlu1 %v4581_v33 }
 0xc27   :  { %4579 = vadd.xlane.f32.xlu0 %v4578_v41 }
 0xc28   :  { %4591 = vadd.xlane.f32.xlu1 %v4590_v3 }
 0xc2b   :  { %4585 = vadd.xlane.f32.xlu0 %v4584_v23 }
 0xc2f   :  { %4588 = vadd.xlane.f32.xlu0 %v4587_v63 }
 0xc33   :  { %4594 = vadd.xlane.f32.xlu0 %v4593_v17 }
 0xc7c   :  { %v4574_v48 = vpop.xlane.xlu1 %4573 }
 0xc7d   :  { %6247 = vrcp.f32 %v4574_v48 }
 0xc7f   :  { %v4577_v11 = vpop.xlane.xlu0 %4576 }
 0xc80   :  { %6249 = vrcp.f32 %v4577_v11  ;;  %v3579_v25 = vpop.permute.xlu1 %3578 }
 0xc81   :  { %v3816_v4 = vcombine.low %v7892_v55, %v3579_v25  ;;  %v3817_v59 = vcombine.high %v7892_v55, %v3579_v25 }
 0xc83   :  { %v3824_v54 = vrot.slane %v3816_v4, %v7147_v27  ;;  %v3831_v51 = vrot.slane %v3817_v59, %v7147_v27  ;;  %v3577_v58 = vpop.permute.xlu0 %3576 }
 0xc84   :  { %v3748_v35 = vcombine.low %v7890_v19, %v3577_v58  ;;  %v3749_v12 = vcombine.high %v7890_v19, %v3577_v58 }
 0xc85   :  { %v3832_v55 = vcombine.low %v3808_v50, %v3824_v54  ;;  %v3833_v38 = vcombine.high %v3808_v50, %v3824_v54  ;;  %v3848_v56 = vcombine.low %v3815_v60, %v3831_v51  ;;  %v3849_v49 = vcombine.high %v3815_v60, %v3831_v51 }
 0xc86   :  { %v3756_v21 = vrot.slane %v3748_v35, %v7147_v27  ;;  %v3763_v34 = vrot.slane %v3749_v12, %v7147_v27 }
 0xc87   :  { %v6248_v1 = vpop.eup %6247  ;;  %v3840_v2 = vrot.slane %v3832_v55, %v7159_v39  ;;  %v3847_v9 = vrot.slane %v3833_v38, %v7159_v39  ;;  %v3856_v24 = vrot.slane %v3848_v56, %v7159_v39  ;;  %v3863_v19 = vrot.slane %v3849_v49, %v7159_v39 }
 0xc88   :  { %v4604_v45 = vmul.f32 %v6248_v1, %v7902_v10  ;;  %v3764_v28 = vcombine.low %v3740_v18, %v3756_v21  ;;  %v3765_v44 = vcombine.high %v3740_v18, %v3756_v21  ;;  %v3780_v29 = vcombine.low %v3747_v47, %v3763_v34 }
 0xc89   :  { %v4072_v36 = vcombine.low %v3840_v2, %v3847_v9  ;;  %v5756_v32 = vcombine.high %v3840_v2, %v3847_v9  ;;  %v4088_v52 = vcombine.low %v3856_v24, %v3863_v19  ;;  %v5757_v30 = vcombine.high %v3856_v24, %v3863_v19 }
 0xc8a   :  { %v6250_v40 = vpop.eup %6249  ;;  %4612 = vst.msk [vmem:[#allocation28] sm:$0xff] %vm2391_vm6, %v4604_v45  ;;  %v3772_v15 = vrot.slane %v3764_v28, %v7159_v39  ;;  %v3779_v26 = vrot.slane %v3765_v44, %v7159_v39  ;;  %v3781_v5 = vcombine.high %v3747_v47, %v3763_v34  ;;  %v3788_v42 = vrot.slane %v3780_v29, %v7159_v39 }
 0xc8b   :  { %v4605_v33 = vmul.f32 %v6250_v40, %v7906_v22  ;;  %v4079_v10 = vrot.slane %v4072_v36, %v7147_v27  ;;  %v4087_v41 = vrot.slane %v5756_v32, %v7147_v27  ;;  %v4095_v3 = vrot.slane %v4088_v52, %v7147_v27 }
 0xc8c   :  { %v4103_v23 = vrot.slane %v5757_v30, %v7147_v27  ;;  %v3795_v63 = vrot.slane %v3781_v5, %v7159_v39  ;;  %v4004_v17 = vcombine.low %v3772_v15, %v3779_v26  ;;  %v5754_v48 = vcombine.high %v3772_v15, %v3779_v26 }
 0xc8d   :  { %4613 = vst.msk [vmem:[#allocation28 + $0x8] sm:$0xff] %vm2391_vm6, %v4605_v33  ;;  %v4620_v7 = vpack.c.bf16 %v4604_v45, %v4604_v45  ;;  %v4104_v6 = vcombine.low %v4079_v10, %v4087_v41  ;;  %v4105_v11 = vcombine.high %v4079_v10, %v4087_v41  ;;  %v4621_v32 = vpack.c.bf16 %v4605_v33, %v4605_v33 }
 0xc8e   :  { %v4011_v25 = vrot.slane %v4004_v17, %v7147_v27  ;;  %v4019_v22 = vrot.slane %v5754_v48, %v7147_v27  ;;  %v4020_v4 = vcombine.low %v3788_v42, %v3795_v63  ;;  %v5755_v59 = vcombine.high %v3788_v42, %v3795_v63 }
 0xc8f   :  { %6071 = vmatmul.mubr.msk.bf16.vlgmr.msra.gmra.mrb[52].mxu0 %vm2391_vm6, %v4620_v7  ;;  %v4112_v53 = vrot.slane %v4104_v6, %v7159_v39  ;;  %v4120_v57 = vcombine.low %v4095_v3, %v4103_v23  ;;  %v4121_v50 = vcombine.high %v4095_v3, %v4103_v23  ;;  %v4119_v12 = vrot.slane %v4105_v11, %v7159_v39 }
 0xc90   :  { %v4027_v60 = vrot.slane %v4020_v4, %v7147_v27  ;;  %v4035_v54 = vrot.slane %v5755_v59, %v7147_v27  ;;  %6081 = vmatpush3.bf16.msra.mxu0 %v7958_v13  ;;  %v4036_v51 = vcombine.low %v4011_v25, %v4019_v22  ;;  %v4037_v58 = vcombine.high %v4011_v25, %v4019_v22 }
 0xc91   :  { %v4128_v35 = vrot.slane %v4120_v57, %v7159_v39  ;;  %v4135_v55 = vrot.slane %v4121_v50, %v7159_v39  ;;  %6082 = vmatprep.mubr.msk.bf16.mxu0 %vm6732_vm0, %v6731_v0  ;;  %6092 = vmatprep.subr.bf16.mxu0 %v6731_v0 }
 0xc92   :  { %v4044_v38 = vrot.slane %v4036_v51, %v7159_v39  ;;  %v4052_v56 = vcombine.low %v4027_v60, %v4035_v54  ;;  %v4051_v49 = vrot.slane %v4037_v58, %v7159_v39  ;;  %v4053_v18 = vcombine.high %v4027_v60, %v4035_v54 }
 0xc93   :  { %v4136_v21 = vcombine.low %v4112_v53, %v4128_v35  ;;  %v4137_v34 = vcombine.high %v4112_v53, %v4128_v35  ;;  %v4138_v1 = vcombine.low %v4119_v12, %v4135_v55  ;;  %v4139_v2 = vcombine.high %v4119_v12, %v4135_v55 }
 0xc94   :  { %v4060_v13 = vrot.slane %v4052_v56, %v7159_v39  ;;  %v4067_v47 = vrot.slane %v4053_v18, %v7159_v39 }
 0xc96   :  { %v4068_v9 = vcombine.low %v4044_v38, %v4060_v13  ;;  %v4069_v24 = vcombine.high %v4044_v38, %v4060_v13  ;;  %v4070_v19 = vcombine.low %v4051_v49, %v4067_v47  ;;  %v4071_v45 = vcombine.high %v4051_v49, %v4067_v47 }
 0xc98   :  { %v4629_v28 = vpack.c.bf16 %v4136_v21, %v4068_v9  ;;  %v4631_v44 = vpack.c.bf16 %v4137_v34, %v4069_v24  ;;  %v4633_v29 = vpack.c.bf16 %v4138_v1, %v4070_v19  ;;  %v4635_v36 = vpack.c.bf16 %v4139_v2, %v4071_v45 }
 0xc9a   :  { %6075 = vmatpush3.bf16.msra.mxu1 %v4629_v28 }
 0xc9b   :  { %6086 = vmatprep.subr.bf16.mxu1 %v6731_v0 }
 0xc9d   :  { %6077 = vmatmul.mubr.msk.bf16.vlgmr.msra.gmra.mrb[60].mxu1 %vm2391_vm6, %v4621_v32 }
 0xc9e   :  { %6087 = vmatpush3.bf16.msra.mxu1 %v4631_v44  ;;  %6088 = vmatprep.mubr.msk.bf16.mxu1 %vm6732_vm0, %v6731_v0 }
 0xc9f   :  { %6098 = vmatprep.subr.bf16.mxu1 %v6731_v0 }
 0xcb1   :  { %v4583_v52 = vpop.xlane.xlu1 %4582 }
 0xcb2   :  { %6251 = vrcp.f32 %v4583_v52 }
 0xcb4   :  { %v4580_v30 = vpop.xlane.xlu0 %4579 }
 0xcb5   :  { %6253 = vrcp.f32 %v4580_v30  ;;  %v4592_v40 = vpop.xlane.xlu1 %4591 }
 0xcb6   :  { %6255 = vrcp.f32 %v4592_v40 }
 0xcb8   :  { %v4586_v15 = vpop.xlane.xlu0 %4585 }
 0xcb9   :  { %6257 = vrcp.f32 %v4586_v15 }
 0xcbc   :  { %v6252_v26 = vpop.eup %6251  ;;  %v4589_v5 = vpop.xlane.xlu0 %4588 }
 0xcbd   :  { %v4607_v42 = vmul.f32 %v6252_v26, %v7975_v62  ;;  %6259 = vrcp.f32 %v4589_v5 }
 0xcbf   :  { %v6254_v33 = vpop.eup %6253  ;;  %4615 = vst.msk [vmem:[#allocation28 + $0x18] sm:$0xff] %vm2391_vm6, %v4607_v42  ;;  %v4623_v10 = vpack.c.bf16 %v4607_v42, %v4607_v42 }
 0xcc0   :  { %v6256_v41 = vpop.eup %6255  ;;  %v4606_v3 = vmul.f32 %v6254_v33, %v7977_v43  ;;  %v4595_v23 = vpop.xlane.xlu0 %4594 }
 0xcc1   :  { %v4610_v63 = vmul.f32 %v6256_v41, %v7981_v61  ;;  %6261 = vrcp.f32 %v4595_v23  ;;  %6089 = vmatmul.mubr.msk.bf16.vlgmr.msra.gmra.mrb[64].mxu1 %vm2391_vm6, %v4623_v10 }
 0xcc2   :  { %4614 = vst.msk [vmem:[#allocation28 + $0x10] sm:$0xff] %vm2391_vm6, %v4606_v3  ;;  %6099 = vmatpush3.bf16.msra.mxu1 %v4633_v29  ;;  %v4622_v17 = vpack.c.bf16 %v4606_v3, %v4606_v3  ;;  %6100 = vmatprep.mubr.msk.bf16.mxu1 %vm6732_vm0, %v6731_v0 }
 0xcc3   :  { %v6258_v62 = vpop.eup %6257  ;;  %4618 = vst.msk [vmem:[#allocation28 + $0x30] sm:$0xff] %vm2391_vm6, %v4610_v63  ;;  %6110 = vmatprep.subr.bf16.mxu1 %v6731_v0 }
 0xcc4   :  { %v4608_v43 = vmul.f32 %v6258_v62, %v7985_v16  ;;  %6083 = vmatmul.mubr.msk.bf16.vlgmr.msra.gmra.mrb[56].mxu0 %vm2391_vm6, %v4622_v17 }
 0xcc5   :  { %6093 = vmatpush3.bf16.msra.mxu0 %v7962_v20  ;;  %6094 = vmatprep.mubr.msk.bf16.mxu0 %vm6732_vm0, %v6731_v0  ;;  %v4626_v20 = vpack.c.bf16 %v4610_v63, %v4610_v63 }
 0xcc6   :  { %4616 = vst.msk [vmem:[#allocation28 + $0x20] sm:$0xff] %vm2391_vm6, %v4608_v43  ;;  %6104 = vmatprep.subr.bf16.mxu0 %v6731_v0  ;;  %v4624_v7 = vpack.c.bf16 %v4608_v43, %v4608_v43 }
 0xcc7   :  { %v6260_v61 = vpop.eup %6259 }
 0xcc8   :  { %v4609_v48 = vmul.f32 %v6260_v61, %v7991_v37 }
 0xcca   :  { %4617 = vst.msk [vmem:[#allocation28 + $0x28] sm:$0xff] %vm2391_vm6, %v4609_v48  ;;  %v4625_v6 = vpack.c.bf16 %v4609_v48, %v4609_v48 }
 0xccb   :  { %v6262_v11 = vpop.eup %6261 }
 0xccc   :  { %v4611_v16 = vmul.f32 %v6262_v11, %v7995_v46  ;;  %6095 = vmatmul.mubr.msk.bf16.vlgmr.msra.gmra.mrb[60].mxu0 %vm2391_vm6, %v4624_v7  ;;  %6101 = vmatmul.mubr.msk.bf16.vlgmr.msra.gmra.mrb[68].mxu1 %vm2391_vm6, %v4625_v6 }
 0xccd   :  { %6105 = vmatpush3.bf16.msra.mxu0 %v7964_v31  ;;  %6111 = vmatpush3.bf16.msra.mxu1 %v4635_v36 }
 0xcce   :  { %4619 = vst.msk [vmem:[#allocation28 + $0x38] sm:$0xff] %vm2391_vm6, %v4611_v16  ;;  %6106 = vmatprep.mubr.msk.bf16.mxu0 %vm6732_vm0, %v6731_v0  ;;  %6112 = vmatprep.mubr.msk.bf16.mxu1 %vm6732_vm0, %v6731_v0  ;;  %v4627_v37 = vpack.c.bf16 %v4611_v16, %v4611_v16 }
 0xccf   :  { %6116 = vmatprep.subr.bf16.mxu0 %v6731_v0  ;;  %6124 = vmatprep.subr.bf16.mxu1 %v6731_v0 }
 0xcd4   :  { %6107 = vmatmul.mubr.msk.bf16.vlgmr.msra.gmra.mrb[64].mxu0 %vm2391_vm6, %v4626_v20  ;;  %6113 = vmatmul.mubr.msk.bf16.vlgmr.msra.gmra.mrb[72].mxu1 %vm2391_vm6, %v4627_v37 }
 0xcd5   :  { %6120 = vmatprep.mubr.msk.bf16.mxu0 %vm6732_vm0, %v6731_v0  ;;  %6128 = vmatprep.mubr.msk.bf16.mxu1 %vm6732_vm0, %v6731_v0 }
 0xd62   :  { %v4673_v31 = vpop.f32.mrb[52].mxu0 }
 0xd63   :  { %v6072_v46 = vpop.f32.mrb[53].mxu0 }
 0xd64   :  { %v4676_v25 = vpop.f32.mrb[54].mxu0 }
 0xd65   :  { %v6073_v22 = vpop.f32.mrb[55].mxu0 }
 0xd70   :  { %v4716_v4 = vpop.f32.mrb[60].mxu1 }
 0xd71   :  { %v6078_v59 = vpop.f32.mrb[61].mxu1 }
 0xd72   :  { %v4719_v53 = vpop.f32.mrb[62].mxu1 }
 0xd73   :  { %v6079_v57 = vpop.f32.mrb[63].mxu1 }
 0xd94   :  { %v4802_v50 = vpop.f32.mrb[64].mxu1 }
 0xd95   :  { %v6090_v60 = vpop.f32.mrb[65].mxu1 }
 0xd96   :  { %v4805_v54 = vpop.f32.mrb[66].mxu1 }
 0xd97   :  { %v4759_v51 = vpop.f32.mrb[56].mxu0  ;;  %v6091_v58 = vpop.f32.mrb[67].mxu1 }
 0xd98   :  { %v6084_v35 = vpop.f32.mrb[57].mxu0 }
 0xd99   :  { %v4762_v12 = vpop.f32.mrb[58].mxu0  ;;  %v6187_v35 = vld [vmem:[%s8296_s14] sm:$0xff]  }
 0xd9a   :  { %v6085_v55 = vpop.f32.mrb[59].mxu0  ;;  %6117 = vmatpush3.bf16.msra.mxu0 %v6187_v35 }
 0xd9b   :  { %6118 = vmatprep.subr.bf16.mxu0 %v6731_v0 }
 0xd9f   :  { %v4845_v38 = vpop.f32.mrb[60].mxu0  ;;  %v4888_v56 = vpop.f32.mrb[68].mxu1 }
 0xda0   :  { %v4980_v49 = vcombine.low %v4673_v31, %v4845_v38  ;;  %v4981_v18 = vcombine.high %v4673_v31, %v4845_v38  ;;  %v5048_v13 = vcombine.low %v4716_v4, %v4888_v56  ;;  %v5049_v47 = vcombine.high %v4716_v4, %v4888_v56  ;;  %v6096_v21 = vpop.f32.mrb[61].mxu0  ;;  %v6102_v34 = vpop.f32.mrb[69].mxu1 }
 0xda1   :  { %v4848_v1 = vpop.f32.mrb[62].mxu0  ;;  %v4891_v2 = vpop.f32.mrb[70].mxu1 }
 0xda2   :  { %v6097_v9 = vpop.f32.mrb[63].mxu0  ;;  %v6103_v24 = vpop.f32.mrb[71].mxu1  ;;  %v4988_v30 = vrot.slane %v4980_v49, %v7147_v27  ;;  %v4995_v40 = vrot.slane %v4981_v18, %v7147_v27  ;;  %v5056_v23 = vrot.slane %v5048_v13, %v7147_v27  ;;  %v5063_v63 = vrot.slane %v5049_v47, %v7147_v27 }
 0xda7   :  { %v4931_v19 = vpop.f32.mrb[64].mxu0  ;;  %v4974_v45 = vpop.f32.mrb[72].mxu1 }
 0xda8   :  { %v4996_v28 = vcombine.low %v4759_v51, %v4931_v19  ;;  %v4997_v44 = vcombine.high %v4759_v51, %v4931_v19  ;;  %v5064_v29 = vcombine.low %v4802_v50, %v4974_v45  ;;  %v5065_v36 = vcombine.high %v4802_v50, %v4974_v45  ;;  %v6108_v32 = vpop.f32.mrb[65].mxu0  ;;  %v6114_v52 = vpop.f32.mrb[73].mxu1 }
 0xda9   :  { %v4934_v15 = vpop.f32.mrb[66].mxu0  ;;  %v4977_v26 = vpop.f32.mrb[74].mxu1 }
 0xdaa   :  { %v5004_v5 = vrot.slane %v4996_v28, %v7147_v27  ;;  %v5011_v42 = vrot.slane %v4997_v44, %v7147_v27  ;;  %v5072_v33 = vrot.slane %v5064_v29, %v7147_v27  ;;  %v5079_v10 = vrot.slane %v5065_v36, %v7147_v27  ;;  %v6109_v41 = vpop.f32.mrb[67].mxu0  ;;  %v6115_v3 = vpop.f32.mrb[75].mxu1  ;;  %v6188_v28 = vld [vmem:[%s8296_s14 + $0x8] sm:$0xff]  }
 0xdab   :  { %6119 = vmatpush3.bf16.msra.mxu0 %v6188_v28  ;;  %v5782_v28 = vld [vmem:[#allocation22] ss:$0 sm:$0xff] }
 0xdac   :  { %v5012_v17 = vcombine.low %v4988_v30, %v5004_v5  ;;  %v5013_v62 = vcombine.high %v4988_v30, %v5004_v5  ;;  %v5028_v43 = vcombine.low %v4995_v40, %v5011_v42  ;;  %v5029_v61 = vcombine.high %v4995_v40, %v5011_v42  ;;  %6132 = vmatprep.subr.bf16.mxu0 %v6731_v0 }
 0xdad   :  { %v5080_v48 = vcombine.low %v5056_v23, %v5072_v33  ;;  %v5081_v7 = vcombine.high %v5056_v23, %v5072_v33  ;;  %v5096_v6 = vcombine.low %v5063_v63, %v5079_v10  ;;  %v5097_v11 = vcombine.high %v5063_v63, %v5079_v10 }
 0xdae   :  { %v5020_v16 = vrot.slane %v5012_v17, %v7159_v39  ;;  %v5027_v20 = vrot.slane %v5013_v62, %v7159_v39  ;;  %v5036_v37 = vrot.slane %v5028_v43, %v7159_v39  ;;  %v5043_v31 = vrot.slane %v5029_v61, %v7159_v39 }
 0xdaf   :  { %v5088_v46 = vrot.slane %v5080_v48, %v7159_v39  ;;  %v5095_v25 = vrot.slane %v5081_v7, %v7159_v39  ;;  %v5104_v22 = vrot.slane %v5096_v6, %v7159_v39  ;;  %v5111_v4 = vrot.slane %v5097_v11, %v7159_v39 }
 0xdb0   :  { %v5116_v59 = vcombine.low %v5020_v16, %v5027_v20  ;;  %v5774_v53 = vcombine.high %v5020_v16, %v5027_v20  ;;  %v5132_v57 = vcombine.low %v5036_v37, %v5043_v31  ;;  %v5775_v50 = vcombine.high %v5036_v37, %v5043_v31  ;;  %v5778_v37 = vld [vmem:[#allocation20] ss:$0 sm:$0xff] }
 0xdb1   :  { %v5184_v60 = vcombine.low %v5088_v46, %v5095_v25  ;;  %v5776_v54 = vcombine.high %v5088_v46, %v5095_v25  ;;  %v5200_v51 = vcombine.low %v5104_v22, %v5111_v4  ;;  %v5777_v58 = vcombine.high %v5104_v22, %v5111_v4 }
 0xdb2   :  { %v5123_v12 = vrot.slane %v5116_v59, %v7147_v27  ;;  %v5131_v55 = vrot.slane %v5774_v53, %v7147_v27  ;;  %v5139_v38 = vrot.slane %v5132_v57, %v7147_v27  ;;  %v5147_v56 = vrot.slane %v5775_v50, %v7147_v27 }
 0xdb3   :  { %v5191_v49 = vrot.slane %v5184_v60, %v7147_v27  ;;  %v5199_v18 = vrot.slane %v5776_v54, %v7147_v27  ;;  %v5207_v13 = vrot.slane %v5200_v51, %v7147_v27  ;;  %v5215_v47 = vrot.slane %v5777_v58, %v7147_v27 }
 0xdb4   :  { %v5148_v21 = vcombine.low %v5123_v12, %v5131_v55  ;;  %v5164_v34 = vcombine.low %v5139_v38, %v5147_v56  ;;  %v5149_v1 = vcombine.high %v5123_v12, %v5131_v55  ;;  %v5165_v2 = vcombine.high %v5139_v38, %v5147_v56 }
 0xdb5   :  { %v5216_v9 = vcombine.low %v5191_v49, %v5199_v18  ;;  %v5232_v24 = vcombine.low %v5207_v13, %v5215_v47  ;;  %v5217_v19 = vcombine.high %v5191_v49, %v5199_v18  ;;  %v5233_v45 = vcombine.high %v5207_v13, %v5215_v47  ;;  %v6190_v18 = vld [vmem:[%s8300_s18 + $0x8] sm:$0xff]   ;;  %v6191_v13 = vld [vmem:[%s8302_s20] sm:$0xff]  }
 0xdb6   :  { %v5156_v44 = vrot.slane %v5148_v21, %v7159_v39  ;;  %v5172_v29 = vrot.slane %v5164_v34, %v7159_v39  ;;  %v5163_v27 = vrot.slane %v5149_v1, %v7159_v39  ;;  %v5179_v36 = vrot.slane %v5165_v2, %v7159_v39  ;;  %v6192_v47 = vld [vmem:[%s8302_s20 + $0x8] sm:$0xff]  }
 0xdb7   :  { %v5224_v32 = vrot.slane %v5216_v9, %v7159_v39  ;;  %v5240_v52 = vrot.slane %v5232_v24, %v7159_v39  ;;  %v5231_v30 = vrot.slane %v5217_v19, %v7159_v39  ;;  %v5247_v40 = vrot.slane %v5233_v45, %v7159_v39 }
 0xdb8   :  { %v5181_v15 = vcombine.high %v5156_v44, %v5172_v29  ;;  %v5183_v26 = vcombine.high %v5163_v27, %v5179_v36  ;;  %v5182_v5 = vcombine.low %v5163_v27, %v5179_v36  ;;  %v5180_v42 = vcombine.low %v5156_v44, %v5172_v29  ;;  %v5783_v36 = vld [vmem:[#allocation23] ss:$0 sm:$0xff] }
 0xdb9   :  { %v5249_v33 = vcombine.high %v5224_v32, %v5240_v52  ;;  %v5250_v10 = vcombine.low %v5231_v30, %v5247_v40  ;;  %v5251_v41 = vcombine.high %v5231_v30, %v5247_v40  ;;  %v5248_v3 = vcombine.low %v5224_v32, %v5240_v52 }
 0xdba   :  { %5254 = vrot.lane.b32.xlu1 %v5181_v15, %s6739_s0  ;;  %v6193_v15 = vld [vmem:[%s8302_s20 + $0x10] sm:$0xff]  }
 0xdbb   :  { %5256 = vrot.lane.b32.xlu0 %v5249_v33, %s6739_s0 }
 0xdbe   :  { %5262 = vrot.lane.b32.xlu1 %v5182_v5, %s6740_s30  ;;  %v5784_v5 = vld [vmem:[%s8301_s19] ss:$0 sm:$0xff]  ;;  %s6742_s19 = smov [#allocation26]  }
 0xdbf   :  { %5270 = vrot.lane.b32.xlu0 %v5183_v26, %s6741_s3  ;;  %v6194_v26 = vld [vmem:[%s8302_s20 + $0x18] sm:$0xff]  }
 0xdc2   :  { %5264 = vrot.lane.b32.xlu1 %v5250_v10, %s6740_s30 }
 0xdc6   :  { %5272 = vrot.lane.b32.xlu1 %v5251_v41, %s6741_s3 }
 0xe2c   :  { %v5255_v39 = vpop.permute.xlu1 %5254 }
 0xe2d   :  { %v5257_v23 = vpop.permute.xlu0 %5256  ;;  %v5276_v63 = vsel %vm1243_vm2, %v5180_v42, %v5255_v39 }
 0xe2e   :  { %v5277_v7 = vsel %vm1243_vm2, %v5248_v3, %v5257_v23 }
 0xe30   :  { %v5263_v17 = vpop.permute.xlu1 %5262 }
 0xe31   :  { %v5271_v62 = vpop.permute.xlu0 %5270  ;;  %v5278_v43 = vsel %vm2391_vm6, %v5276_v63, %v5263_v17 }
 0xe32   :  { %v5280_v61 = vsel %vm2394_vm7, %v5278_v43, %v5271_v62 }
 0xe33   :  { %5282 = vst.msk [vmem:[#allocation31] sm:$0xff] %vm298_vm1, %v5280_v61 }
 0xe34   :  { %v5265_v48 = vpop.permute.xlu1 %5264 }
 0xe35   :  { %v5279_v6 = vsel %vm2391_vm6, %v5277_v7, %v5265_v48 }
 0xe38   :  { %v5273_v11 = vpop.permute.xlu1 %5272 }
 0xe39   :  { %v5281_v16 = vsel %vm2394_vm7, %v5279_v6, %v5273_v11 }
 0xe3a   :  { %5283 = vst.msk [vmem:[#allocation31 + $0x8] sm:$0xff] %vm298_vm1, %v5281_v16  ;;  %v5284_v20 = vpack.c.bf16 %v5281_v16, %v5280_v61 }
 0xe3c   :  { %6121 = vmatmul.mubr.msk.bf16.vlgmr.msra.gmra.mrb[68].mxu0 %vm298_vm1, %v5284_v20 }
 0xe3d   :  { %6140 = vmatprep.mubr.msk.bf16.mxu0 %vm6732_vm0, %v6731_v0  ;;  %6133 = vmatpush3.bf16.msra.mxu0 %v6191_v13 }
 0xe3e   :  { %6134 = vmatprep.subr.bf16.mxu0 %v6731_v0 }
 0xe41   :  { %6135 = vmatpush3.bf16.msra.mxu0 %v6192_v47 }
 0xe42   :  { %6136 = vmatprep.subr.bf16.mxu0 %v6731_v0 }
 0xe45   :  { %6137 = vmatpush3.bf16.msra.mxu0 %v6193_v15 }
 0xe46   :  { %6138 = vmatprep.subr.bf16.mxu0 %v6731_v0 }
 0xe49   :  { %6139 = vmatpush3.bf16.msra.mxu0 %v6194_v26 }
 0xf0f   :  { %v5345_v31 = vpop.f32.mrb[68].mxu0 }
 0xf10   :  { %v5346_v46 = vadd.f32 %v5778_v37, %v5345_v31  ;;  %v6122_v25 = vpop.f32.mrb[69].mxu0 }
 0xf11   :  { %v5348_v22 = vpop.f32.mrb[70].mxu0 }
 0xf12   :  { %v5352_v4 = vadd.f32 %v5346_v46, %v7587_v8  ;;  %v5349_v59 = vadd.f32 %v5778_v37, %v5348_v22  ;;  %v6123_v53 = vpop.f32.mrb[71].mxu0 }
 0xf14   :  { %v5353_v57 = vadd.f32 %v5349_v59, %v7589_v14  ;;  %v5356_v50 = vsel %vm298_vm1, %v5352_v4, 0.0  ;;  %v6189_v14 = vld [vmem:[%s8300_s18] sm:$0xff]  }
 0xf15   :  { %5357 = vadd.xlane.f32.xlu0 %v5356_v50  ;;  %6125 = vmatpush3.bf16.msra.mxu1 %v6189_v14 }
 0xf16   :  { %v5359_v60 = vsel %vm298_vm1, %v5353_v57, 0.0  ;;  %6126 = vmatprep.subr.bf16.mxu1 %v6731_v0  ;;  %v5788_v0 = vld [vmem:[%s8303_s21] ss:$0 sm:$0xff]  ;;  %s5618_s21 = sshll.u32 %s6742_s19, 4  ;;  %s5619_s21 = int_to_ptr.vmem [resolvable:$true] %s5618_s21 }
 0xf17   :  { %5360 = vadd.xlane.f32.xlu1 %v5359_v60  ;;  %s6581_s6 = scalar_lea.vmem %s5619_s21, 1024  ;;  %p6586_p1 = scmp.lt.s32.totalorder %s5619_s21, %s5619_s21 }
 0xf18   :  { %p6582_p0 = scmp.ne.s32.totalorder %s5619_s21, %s6581_s6  ;;  %p6587_p2 = scmp.lt.s32.totalorder %s6581_s6, %s6581_s6 }
 0xf19   :  { %6127 = vmatpush3.bf16.msra.mxu1 %v6190_v18 }
 0xf1a   :  { %p6588_p3 = por %p6587_p2, %p6586_p1 }
 0xf1c   :  { %p6589_p4 = pnand %p6588_p3, %p6582_p0 }
 0xfa2   :  { %v5358_v54 = vpop.xlane.xlu0 %5357 }
 0xfa3   :  { %v5362_v51 = vmul.f32 0.03125, %v5358_v54 }
 0xfa4   :  { %v5361_v58 = vpop.xlane.xlu1 %5360 }
 0xfa5   :  { %v5364_v35 = vsub.f32 %v5352_v4, %v5362_v51  ;;  %v5363_v12 = vmul.f32 0.03125, %v5361_v58 }
 0xfa7   :  { %v5365_v55 = vsub.f32 %v5353_v57, %v5363_v12  ;;  %v5366_v38 = vmul.f32 %v5364_v35, %v5364_v35 }
 0xfa9   :  { %v5368_v56 = vsel %vm298_vm1, %v5366_v38, 0.0  ;;  %v5367_v8 = vmul.f32 %v5365_v55, %v5365_v55 }
 0xfaa   :  { %5369 = vadd.xlane.f32.xlu0 %v5368_v56 }
 0xfab   :  { %v5371_v49 = vsel %vm298_vm1, %v5367_v8, 0.0 }
 0xfae   :  { %5372 = vadd.xlane.f32.xlu0 %v5371_v49 }
0x1037   :  { %v5370_v21 = vpop.xlane.xlu0 %5369 }
0x1038   :  { %v5374_v34 = vmul.f32 0.03125, %v5370_v21 }
0x103a   :  { %v5376_v1 = vadd.f32 1e-05, %v5374_v34 }
0x103b   :  { %v5373_v2 = vpop.xlane.xlu0 %5372 }
0x103c   :  { %6263 = vrsqrt.f32 %v5376_v1  ;;  %v5375_v9 = vmul.f32 0.03125, %v5373_v2 }
0x103e   :  { %v5377_v24 = vadd.f32 1e-05, %v5375_v9 }
0x1040   :  { %6265 = vrsqrt.f32 %v5377_v24 }
0x1046   :  { %v6264_v19 = vpop.eup %6263 }
0x1047   :  { %v5380_v45 = vmul.f32 %v6264_v19, %v5364_v35 }
0x1049   :  { %v5388_v29 = vmul.f32 %v5782_v28, %v5380_v45 }
0x104a   :  { %v6266_v44 = vpop.eup %6265 }
0x104b   :  { %v5381_v27 = vmul.f32 %v6266_v44, %v5365_v55  ;;  %v5396_v52 = vadd.f32 %v5783_v36, %v5388_v29 }
0x104d   :  { %v5389_v32 = vmul.f32 %v5782_v28, %v5381_v27 }
0x104f   :  { %v5397_v30 = vadd.f32 %v5783_v36, %v5389_v32 }
0x1051   :  { %v5398_v40 = vpack.c.bf16 %v5397_v30, %v5396_v52 }
0x1053   :  { %6129 = vmatmul.mubr.msk.bf16.vlgmr.msra.gmra.mrb[76].mxu1 %vm298_vm1, %v5398_v40 }
0x1126   :  { %v5459_v42 = vpop.f32.mrb[76].mxu1 }
0x1127   :  { %v5460_v33 = vadd.f32 %v5784_v5, %v5459_v42  ;;  %v6130_v10 = vpop.f32.mrb[77].mxu1 }
0x1128   :  { %v5462_v41 = vpop.f32.mrb[78].mxu1 }
0x1129   :  { %v5463_v3 = vadd.f32 %v5784_v5, %v5462_v41  ;;  %v6131_v39 = vpop.f32.mrb[79].mxu1  ;;  %v5466_v23 = vmax.f32 %v5460_v33, 0.0 }
0x112b   :  { %v5467_v63 = vmax.f32 %v5463_v3, 0.0 }
0x112d   :  { %v5468_v17 = vpack.c.bf16 %v5467_v63, %v5466_v23 }
0x112f   :  { %6141 = vmatmul.mubr.msk.bf16.vlgmr.msra.gmra.mrb[72].mxu0 %vm5508_vm10, %v5468_v17 }
0x1202   :  { %v5546_v62 = vpop.f32.mrb[72].mxu0 }
0x1203   :  { %v5547_v43 = vadd.f32 %v5788_v0, %v5546_v62  ;;  %v6142_v61 = vpop.f32.mrb[73].mxu0 }
0x1204   :  { %v5549_v48 = vpop.f32.mrb[74].mxu0 }
0x1205   :  { %v5553_v7 = vadd.f32 %v5547_v43, %v5396_v52  ;;  %v5550_v6 = vadd.f32 %v5788_v0, %v5549_v48  ;;  %v6143_v11 = vpop.f32.mrb[75].mxu0 }
0x1207   :  { %v5554_v16 = vadd.f32 %v5550_v6, %v5397_v30  ;;  %v5557_v20 = vsel %vm298_vm1, %v5553_v7, 0.0 }
0x1208   :  { %5558 = vadd.xlane.f32.xlu1 %v5557_v20 }
0x1209   :  { %v5560_v37 = vsel %vm298_vm1, %v5554_v16, 0.0 }
0x120a   :  { %5561 = vadd.xlane.f32.xlu0 %v5560_v37 }
0x1295   :  { %v5559_v31 = vpop.xlane.xlu1 %5558 }
0x1296   :  { %v5563_v46 = vmul.f32 0.03125, %v5559_v31 }
0x1297   :  { %v5562_v25 = vpop.xlane.xlu0 %5561 }
0x1298   :  { %v8187_v22 = vsub.f32 %v5553_v7, %v5563_v46  ;;  %v5564_v4 = vmul.f32 0.03125, %v5562_v25 }
0x129a   :  { %v8189_v59 = vsub.f32 %v5554_v16, %v5564_v4  ;;  %v5567_v53 = vmul.f32 %v8187_v22, %v8187_v22 }
0x129c   :  { %v5569_v57 = vsel %vm298_vm1, %v5567_v53, 0.0  ;;  %v5568_v50 = vmul.f32 %v8189_v59, %v8189_v59 }
0x129d   :  { %5570 = vadd.xlane.f32.xlu1 %v5569_v57 }
0x129e   :  { %v5572_v60 = vsel %vm298_vm1, %v5568_v50, 0.0 }
0x129f   :  { %5573 = vadd.xlane.f32.xlu0 %v5572_v60 }
0x12a0   :  { %6592 = shalt.err (!%p6589_p4)
}
0x12a1   :  { %s6593_s1 = scalar_lea.hbm %s8307_s25, 1024 }
0x12a2   :  { %p6594_p5 = scmp.ne.s32.totalorder %s8307_s25, %s6593_s1  ;;  %p6597_p6 = scmp.lt.u32.totalorder %s6593_s1, %s8307_s25 }
0x12a4   :  { %p6599_p7 = pnand %p6597_p6, %p6594_p5 }
0x12a6   :  { %6602 = shalt.err (!%p6599_p7)
}
0x12a7   :  { %s6744_s29 = smov 128   ;;  %s6603_s16 = scalar_lea.vmem %s5643_s23, 256 }
0x12a8   :  { %5624 = dma.vmem_to_hbm [thread:$0]  %s5619_s21, 1024, %s8307_s25, [#allocation27], %s6744_s29, %s6744_s29, %s6739_s0  }
0x12a9   :  { %p6604_p8 = scmp.ne.s32.totalorder %s5643_s23, %s6603_s16  ;;  %p6608_p9 = scmp.lt.s32.totalorder %s5643_s23, %s5643_s23 }
0x12aa   :  { %p6609_p10 = scmp.lt.s32.totalorder %s6603_s16, %s6603_s16 }
0x12ac   :  { %p6610_p11 = por %p6609_p10, %p6608_p9 }
0x12ae   :  { %p6611_p12 = pnand %p6610_p11, %p6604_p8 }
0x12b0   :  { %6614 = shalt.err (!%p6611_p12)
}
0x12b1   :  { %s6615_s17 = scalar_lea.hbm %s8309_s27, 256 }
0x12b2   :  { %p6616_p13 = scmp.ne.s32.totalorder %s8309_s27, %s6615_s17  ;;  %p6619_p0 = scmp.lt.u32.totalorder %s6615_s17, %s8309_s27 }
0x12b4   :  { %p6621_p1 = pnand %p6619_p0, %p6616_p13 }
0x12b6   :  { %6624 = shalt.err (!%p6621_p1)
}
0x12b7   :  { %5648 = dma.vmem_to_hbm [thread:$0]  %s5643_s23, 256, %s8309_s27, [#allocation30], %s6744_s29, %s6744_s29, %s6739_s0  }
0x12b8   :  { %s6745_s20 = smov [#allocation28]  }
0x12b9   :  { %s5630_s19 = sshll.u32 %s6745_s20, 4  ;;  %s5631_s19 = int_to_ptr.vmem [resolvable:$true] %s5630_s19 }
0x12ba   :  { %s6625_s21 = scalar_lea.vmem %s5631_s19, 1024  ;;  %p6630_p3 = scmp.lt.s32.totalorder %s5631_s19, %s5631_s19 }
0x12bb   :  { %p6626_p2 = scmp.ne.s32.totalorder %s5631_s19, %s6625_s21  ;;  %p6631_p4 = scmp.lt.s32.totalorder %s6625_s21, %s6625_s21 }
0x12bd   :  { %p6632_p5 = por %p6631_p4, %p6630_p3 }
0x12bf   :  { %p6633_p6 = pnand %p6632_p5, %p6626_p2 }
0x12c1   :  { %6636 = shalt.err (!%p6633_p6)
}
0x12c2   :  { %s6637_s13 = scalar_lea.hbm %s8308_s26, 1024 }
0x12c3   :  { %p6638_p7 = scmp.ne.s32.totalorder %s8308_s26, %s6637_s13  ;;  %p6641_p8 = scmp.lt.u32.totalorder %s6637_s13, %s8308_s26 }
0x12c5   :  { %p6643_p9 = pnand %p6641_p8, %p6638_p7 }
0x12c7   :  { %6646 = shalt.err (!%p6643_p9)
}
0x12c8   :  { %5636 = dma.vmem_to_hbm [thread:$0]  %s5631_s19, 1024, %s8308_s26, [#allocation27], %s6744_s29, %s6744_s29, %s6739_s0  }
0x12c9   :  { %s6746_s30 = smov [#allocation31]  }
0x12ca   :  { %s5654_s3 = sshll.u32 %s6746_s30, 4  ;;  %s5655_s3 = int_to_ptr.vmem [resolvable:$true] %s5654_s3 }
0x12cb   :  { %s6647_s8 = scalar_lea.vmem %s5655_s3, 256  ;;  %p6652_p11 = scmp.lt.s32.totalorder %s5655_s3, %s5655_s3 }
0x12cc   :  { %p6648_p10 = scmp.ne.s32.totalorder %s5655_s3, %s6647_s8  ;;  %p6653_p12 = scmp.lt.s32.totalorder %s6647_s8, %s6647_s8 }
0x12ce   :  { %p6654_p13 = por %p6653_p12, %p6652_p11 }
0x12d0   :  { %p6655_p0 = pnand %p6654_p13, %p6648_p10 }
0x12d2   :  { %6658 = shalt.err (!%p6655_p0)
}
0x12d3   :  { %s6659_s9 = scalar_lea.hbm %s8310_s28, 256 }
0x12d4   :  { %p6660_p1 = scmp.ne.s32.totalorder %s8310_s28, %s6659_s9  ;;  %p6663_p2 = scmp.lt.u32.totalorder %s6659_s9, %s8310_s28 }
0x12d6   :  { %p6665_p3 = pnand %p6663_p2, %p6660_p1 }
0x12d8   :  { %6668 = shalt.err (!%p6665_p3)
}
0x12d9   :  { %5660 = dma.vmem_to_hbm [thread:$0]  %s5655_s3, 256, %s8310_s28, [#allocation30], %s6744_s29, %s6744_s29, %s6739_s0  }
0x12da   :  { %v5794_v56 = vld [vmem:[%s8304_s22] ss:$0 sm:$0xff]  ;;  %s8360_s19 = sld [smem:[#allocation56_spill]]  ;;  %s6747_s28 = smov [#allocation25]  }
0x12db   :  { %s5606_s21 = sshll.u32 %s6747_s28, 4  ;;  %s5607_s21 = int_to_ptr.vmem [resolvable:$true] %s5606_s21 }
0x12dc   :  { %s6669_s22 = scalar_lea.vmem %s5607_s21, 256  ;;  %p6674_p5 = scmp.lt.s32.totalorder %s5607_s21, %s5607_s21 }
0x12dd   :  { %p6670_p4 = scmp.ne.s32.totalorder %s5607_s21, %s6669_s22  ;;  %p6675_p6 = scmp.lt.s32.totalorder %s6669_s22, %s6669_s22 }
0x12df   :  { %p6676_p7 = por %p6675_p6, %p6674_p5 }
0x12e0   :  { %v5795_v14 = vld [vmem:[%s8360_s19] ss:$0 sm:$0xff] }
0x12e1   :  { %p6677_p8 = pnand %p6676_p7, %p6670_p4 }
0x132a   :  { %v5571_v54 = vpop.xlane.xlu1 %5570 }
0x132b   :  { %v5575_v51 = vmul.f32 0.03125, %v5571_v54 }
0x132c   :  { %v5574_v58 = vpop.xlane.xlu0 %5573 }
0x132d   :  { %v5577_v35 = vadd.f32 1e-05, %v5575_v51  ;;  %v5576_v12 = vmul.f32 0.03125, %v5574_v58 }
0x132f   :  { %6267 = vrsqrt.f32 %v5577_v35  ;;  %v5578_v55 = vadd.f32 1e-05, %v5576_v12 }
0x1331   :  { %6269 = vrsqrt.f32 %v5578_v55 }
0x1339   :  { %v6268_v38 = vpop.eup %6267 }
0x133a   :  { %v5581_v8 = vmul.f32 %v6268_v38, %v8187_v22 }
0x133b   :  { %v6270_v49 = vpop.eup %6269 }
0x133c   :  { %v5589_v18 = vmul.f32 %v5794_v56, %v5581_v8  ;;  %v5582_v13 = vmul.f32 %v6270_v49, %v8189_v59 }
0x133e   :  { %v5590_v47 = vmul.f32 %v5794_v56, %v5582_v13  ;;  %v5597_v21 = vadd.f32 %v5795_v14, %v5589_v18 }
0x1340   :  { %v5598_v34 = vadd.f32 %v5795_v14, %v5590_v47  ;;  %5599 = vst.msk [vmem:[#allocation25] sm:$0xff] %vm298_vm1, %v5597_v21 }
0x1342   :  { %5600 = vst.msk [vmem:[#allocation25 + $0x8] sm:$0xff] %vm298_vm1, %v5598_v34 }
0x1343   :  { %6680 = shalt.err (!%p6677_p8)
}
0x1344   :  { %s8361_s13 = sld [smem:[#allocation57_spill]] }
0x134a   :  { %s6681_s7 = scalar_lea.hbm %s8361_s13, 256 }
0x134b   :  { %p6682_p9 = scmp.ne.s32.totalorder %s8361_s13, %s6681_s7  ;;  %p6685_p10 = scmp.lt.u32.totalorder %s6681_s7, %s8361_s13 }
0x134d   :  { %p6687_p11 = pnand %p6685_p10, %p6682_p9 }
0x134f   :  { %6690 = shalt.err (!%p6687_p11)
}
0x1350   :  { %5612 = dma.vmem_to_hbm [thread:$0]  %s5607_s21, 256, %s8361_s13, [#allocation4], %s6744_s29, %s6744_s29, %s6739_s0  }
0x1351   :  { %6707 = dma.done.wait [#allocation4], 256  }
0x1352   :  { %6708 = vsyncadd [#allocation4], 4294967040 }
0x1353   :  { %6709 = dma.done.wait [#allocation27], 2048  }
0x1354   :  { %6710 = vsyncadd [#allocation27], 4294965248 }
0x1355   :  { %6711 = dma.done.wait [#allocation30], 512  }
0x1356   :  { %6712 = vsyncadd [#allocation30], 4294966784 }
0x1357   :  { %5676 = vsyncpa [#allocation3], 1 }
0x1358   :  { %5677 = vsyncpa [#allocation6], 1 }
0x1359   :  { %5678 = vsyncpa [#allocation9], 1 }
0x135a   :  { %5679 = vsyncpa [#allocation12], 1 }
0x135b   :  { %5680 = vsyncpa [#allocation15], 1 }
0x135c   :  { %5681 = vsyncpa [#allocation18], 1 }
0x135d   :  { %5682 = vsyncpa [#allocation21], 1 }
0x135e   :  { %5683 = vsyncpa [#allocation24], 1 }
0x135f   :  { %5684 = vsyncpa [#allocation4], 1 }
0x1360   :  { %5685 = vsyncpa [#allocation27], 1 }
0x1361   :  { %5686 = vsyncpa [#allocation30], 1 }

</bundles_post_ra>
